<compile_context>
chip_gen: v7x
topology: tpu7x:2x2x1
jax: 0.10.0
libtpu: 0.0.40
codegen_flags: <defaults>
</compile_context>

<pallas_src>
import functools

import jax
import jax.numpy as jnp
from jax.experimental import pallas as pl
from jax.experimental.pallas import tpu as pltpu


def _round_up(x, m):
    return ((x + m - 1) // m) * m


def _layernorm(v, gamma, beta, h_true=None, eps=1e-5):
    """LayerNorm over the true hidden width; padded lanes (v==0, gamma==beta==0) stay 0."""
    hp = v.shape[-1]
    h_true = hp if h_true is None else h_true
    inv_h = 1.0 / float(h_true)
    mu = jnp.sum(v, axis=-1, keepdims=True) * inv_h
    diff = v - mu
    if h_true != hp:
        lane_valid = jax.lax.broadcasted_iota(jnp.int32, (1,) * (v.ndim - 1) + (hp,),
                                              v.ndim - 1) < h_true
        diff = diff * lane_valid.astype(v.dtype)
    var = jnp.sum(diff * diff, axis=-1, keepdims=True) * inv_h
    return diff * jax.lax.rsqrt(var + eps) * gamma + beta


def _intra_context_kernel(bert_ref, wmb_ref, cmap_ref, cmapt_ref,
                          adj_ref, dvec_ref, mask_ref,
                          wd_ref, bd_ref, wg_ref, bg_ref, gamma_ref, beta_ref,
                          feat_ref, *, w_true, c_true, h_true, mxu_bf16):
    f32 = jnp.float32
    cast = (lambda a: a.astype(jnp.bfloat16)) if mxu_bf16 else (lambda a: a)

    x = bert_ref[...]                      # [BT, S, Db]  (seq indicator already in wmb)
    m = wmb_ref[...]                       # [BT, W, S]   (one_hot(word_mapback)*indi)^T
    cmap = cmap_ref[...]                   # [BT, C, W]   con_node_leaf_token_map
    wd, bd = wd_ref[...], bd_ref[...]
    gamma, beta = gamma_ref[...], beta_ref[...]

    bt, wp, _ = m.shape
    cp = cmap.shape[1]
    db = x.shape[-1]
    hp = wd.shape[-1]

    # token -> word aggregation (bert_out_con); wmb already carries the indicator mask.
    boc = jnp.einsum('bws,bsd->bwd', cast(m), cast(x), preferred_element_type=f32)
    wnt = jnp.sum(m, axis=-1, keepdims=True)                                   # [BT, W, 1]
    boc = boc * pl.reciprocal(jnp.where(wnt == 0.0, 1.0, wnt), approx=True)

    # word -> constituent aggregation (pre-dense).
    bct = jnp.einsum('bcw,bwd->bcd', cast(cmap), cast(boc), preferred_element_type=f32)
    cwnt = jnp.sum(cmap, axis=-1, keepdims=True)
    bct = bct * pl.reciprocal(jnp.where(cwnt == 0.0, 1.0, cwnt), approx=True)

    # Shared-weight dense on boc (-> q) and bct, fused into ONE MXU pass by row-concat so
    # each Wd matmul presents bt*(Wp+Cp) rows (fills the 256-row MXUs on v6e/v7x).
    rows_w = bt * wp
    stacked = jnp.concatenate(
        [boc.reshape(rows_w, db), bct.reshape(bt * cp, db)], axis=0)
    y = jnp.dot(cast(stacked), cast(wd), preferred_element_type=f32) + bd
    q = y[:rows_w].reshape(bt, wp, hp)                                         # dense(boc)
    bct_h = y[rows_w:].reshape(bt, cp, hp)                                     # dense(bct)

    # bert_out = bmm(one_hot, dense(.)) / wnt == q on every row with wnt>0, exactly 0 else.
    bo = q * (wnt > 0.0).astype(f32)

    # GCN layer: (D @ adj @ D) @ bct @ Wg + bg, diagonal D applied as row scaling.
    d = dvec_ref[...]                                                          # [BT, C, 1]
    gcn = d * jnp.einsum('bij,bjh->bih', cast(adj_ref[...]), cast(d * bct_h),
                         preferred_element_type=f32)
    con_node = jnp.dot(cast(gcn.reshape(bt * cp, hp)), cast(wg_ref[...]),
                       preferred_element_type=f32).reshape(bt, cp, hp) + bg_ref[...]
    if c_true != cp:                               # zero out padded constituent rows (bg leak)
        c_valid = jax.lax.broadcasted_iota(jnp.int32, (1, cp, 1), 1) < c_true
        con_node = con_node * c_valid.astype(f32)

    # word -> constituent attention; softmax over the WORD axis (torch dim=1), keeping the
    # original mask-by-multiplication semantics for real words.
    score = jnp.einsum('bwh,bch->bwc', cast(q), cast(con_node), preferred_element_type=f32)
    sm = cmapt_ref[...] * score                                                # [BT, W, C]
    e = jnp.exp(sm - jnp.max(sm, axis=1, keepdims=True))
    if w_true != wp:                               # padded word rows leave the softmax
        w_valid = jax.lax.broadcasted_iota(jnp.int32, (1, wp, 1), 1) < w_true
        e = e * w_valid.astype(f32)
    weights = e * pl.reciprocal(jnp.sum(e, axis=1, keepdims=True), approx=True)

    out = jnp.einsum('bwc,bch->bwh', cast(weights), cast(con_node),
                     preferred_element_type=f32)
    out = _layernorm(out, gamma, beta, h_true)
    out = out + q                                  # residual with dense(bert_out_con) == q
    out = _layernorm(out, gamma, beta, h_true)

    # TODO(synk): graph_encoder stubbed as identity -> graph_out == bert_out, so the
    #             graph_enc + bert_enc pooled terms collapse into 2 * bert_enc.
    msk = mask_ref[...]                                                        # [BT, W, 1]
    asp = jnp.sum(msk, axis=1, keepdims=True)
    inv_asp = pl.reciprocal(jnp.where(asp == 0.0, 1.0, asp), approx=True)
    bert_enc = jnp.sum(bo * msk, axis=1, keepdims=True) * inv_asp              # [BT, 1, H]
    con_con = jnp.sum(out * msk, axis=1, keepdims=True) * inv_asp
    feat_ref[...] = (2.0 * bert_enc + con_con)[:, 0, :]                        # [BT, Hp]


def intra_context_pallas(bert_sliced, wmb_oh_t, cn_map, con_adj, dvec,
                         aspect_mask, Wd, bd, Wg, bg, gamma, beta, *,
                         batch_tile=16, min_grid_steps=1, mxu_bf16=False,
                         vmem_limit_bytes=48 * 1024 * 1024):
    B, S, Db = bert_sliced.shape
    W = wmb_oh_t.shape[1]
    C = cn_map.shape[1]
    H = Wd.shape[1]

    # Batch pack: whole batch in one lane-dense step (no batch padding), or 8-aligned tiles.
    # For v7x megacore pass min_grid_steps=2 so both TensorCores get balanced steps; on
    # v5e/v6e a single big step (fewer ~0.35us step overheads) is preferred.
    if min_grid_steps <= 1 and B <= batch_tile:
        bt = B
    else:
        per_step = -(-B // max(min_grid_steps, 1))
        bt = max(8, min(_round_up(per_step, 8), max(8, (batch_tile // 8) * 8)))
    Bp = _round_up(B, bt)
    Wp = _round_up(W, 8)
    Cp = _round_up(C, 8)
    Hp = _round_up(H, 128)       # lane-dense hidden width (output stores, MXU columns)

    def pad(a, tgt):
        cfg = [(0, t - s) for s, t in zip(a.shape, tgt)]
        return jnp.pad(a, cfg) if any(p for _, p in cfg) else a

    bert_p = pad(bert_sliced, (Bp, S, Db))
    wmb_p = pad(wmb_oh_t, (Bp, Wp, S))
    cmap_p = pad(cn_map, (Bp, Cp, Wp))
    cmapt_p = pad(jnp.swapaxes(cn_map, 1, 2), (Bp, Wp, Cp))
    adj_p = pad(con_adj, (Bp, Cp, Cp))
    dvec_p = pad(dvec, (Bp, Cp, 1))
    mask_p = pad(aspect_mask[..., None], (Bp, Wp, 1))
    Wd_p = pad(Wd, (Db, Hp))
    Wg_p = pad(Wg, (Hp, Hp))
    bd_p, bg_p = pad(bd, (1, Hp)), pad(bg, (1, Hp))
    gamma_p, beta_p = pad(gamma, (1, Hp)), pad(beta, (1, Hp))

    batch3 = lambda r, c: pl.BlockSpec((bt, r, c), lambda i: (i, 0, 0))
    shared = lambda r, c: pl.BlockSpec((r, c), lambda i: (0, 0))

    feat = pl.pallas_call(
        functools.partial(_intra_context_kernel, w_true=W, c_true=C, h_true=H,
                          mxu_bf16=mxu_bf16),
        out_shape=jax.ShapeDtypeStruct((Bp, Hp), jnp.float32),
        grid=(Bp // bt,),
        in_specs=[
            batch3(S, Db),     # sliced BERT token states
            batch3(Wp, S),     # one_hot(word_mapback)^T * indicator
            batch3(Cp, Wp),    # con_node_leaf_token_map
            batch3(Wp, Cp),    # con_node_leaf_token_map^T (attention mask layout)
            batch3(Cp, Cp),    # con_node_adj
            batch3(Cp, 1),     # diag of the degree matrix D^{-1/2}
            batch3(Wp, 1),     # aspect mask
            shared(Db, Hp),    # dense weight (cols padded to Hp)
            shared(1, Hp),     # dense bias
            shared(Hp, Hp),    # GCN weight
            shared(1, Hp),     # GCN bias
            shared(1, Hp),     # layernorm gamma
            shared(1, Hp),     # layernorm beta
        ],
        out_specs=pl.BlockSpec((bt, Hp), lambda i: (i, 0)),
        compiler_params=pltpu.CompilerParams(
            dimension_semantics=("parallel",),
            vmem_limit_bytes=vmem_limit_bytes),
    )(bert_p, wmb_p, cmap_p, cmapt_p, adj_p, dvec_p, mask_p,
      Wd_p, bd_p, Wg_p, bg_p, gamma_p, beta_p)
    return feat[:B, :H]


def reference_jax(bert_sliced, indi, wmb_oh_t, cn_map, con_adj, Dm, aspect_mask,
                  Wd, bd, Wg, bg, gamma, beta):
    """Pure-JAX replica of the original (un-deduplicated, unpadded) module math."""
    x = bert_sliced * indi
    m = wmb_oh_t
    boc = jnp.einsum('bws,bsd->bwd', m, x)
    bo = jnp.einsum('bws,bsh->bwh', m, x @ Wd + bd)
    wnt = m.sum(-1)
    wnt = jnp.where(wnt == 0.0, 1.0, wnt)
    bo = bo / wnt[..., None]
    boc = boc / wnt[..., None]
    bct = jnp.einsum('bcw,bwd->bcd', cn_map, boc)
    cwnt = cn_map.sum(-1)
    cwnt = jnp.where(cwnt == 0.0, 1.0, cwnt)
    bct = bct / cwnt[..., None]
    bct = bct @ Wd + bd
    w2 = jnp.einsum('bij,bjk,bkl->bil', Dm, con_adj, Dm)
    con_node = jnp.einsum('bij,bjh->bih', w2, bct) @ Wg + bg
    q = boc @ Wd + bd
    score = jnp.einsum('bwh,bch->bwc', q, con_node)
    score_masked = jnp.swapaxes(cn_map, 1, 2) * score
    weights = jax.nn.softmax(score_masked, axis=1)
    out = jnp.einsum('bwc,bch->bwh', weights, con_node)
    out = _layernorm(out, gamma, beta)
    out = out + q
    out = _layernorm(out, gamma, beta)
    graph_out = bo                                   # graph encoder stubbed as identity
    asp = aspect_mask.sum(1, keepdims=True)
    mk = aspect_mask[..., None]
    bert_enc = (bo * mk).sum(1) / asp
    graph_enc = (graph_out * mk).sum(1) / asp
    con_con = (out * mk).sum(1) / asp
    return graph_enc + con_con + bert_enc


if __name__ == "__main__":
    key = jax.random.PRNGKey(0)
    B, S, W, C, Db, H = 10, 16, 12, 10, 32, 16
    ks = jax.random.split(key, 12)

    # synthetic BERT outputs (stand-in for context_encoder)
    bert_out_full = jax.random.normal(ks[0], (B, S + 2, Db), jnp.float32)
    bert_pooler = jax.random.normal(ks[1], (B, Db), jnp.float32)
    bert_lengths = jax.random.randint(ks[2], (B,), 6, S + 1)
    word_mapback = jax.random.randint(ks[3], (B, S), 0, W)
    aspect_mask = jnp.zeros((B, W), jnp.float32).at[:, 2:5].set(1.0)
    cn_map = (jax.random.uniform(ks[4], (B, C, W)) > 0.6).astype(jnp.float32)
    con_adj = (jax.random.uniform(ks[5], (B, C, C)) > 0.5).astype(jnp.float32)
    con_adj = jnp.minimum(con_adj + jnp.eye(C)[None], 1.0)
    deg = con_adj.sum(-1)
    dvec = (1.0 / jnp.sqrt(deg))[..., None]            # diag of D^{-1/2}, [B, C, 1]
    Dm = jnp.eye(C)[None] * dvec                       # full D^{-1/2} (reference only)

    # deterministic parameters (dense, GCN linear, layernorm)
    Wd = jax.random.normal(ks[6], (Db, H), jnp.float32) * 0.1
    bd = jax.random.normal(ks[7], (1, H), jnp.float32) * 0.1
    Wg = jax.random.normal(ks[8], (H, H), jnp.float32) * 0.1
    bg = jax.random.normal(ks[9], (1, H), jnp.float32) * 0.1
    gamma = jnp.ones((1, H), jnp.float32)
    beta = jnp.zeros((1, H), jnp.float32)

    # glue: slice BERT output, build indicator & one-hot word mapping (not hot path);
    # the indicator is folded into wmb_oh_t so the kernel never sees it.
    indi = (jnp.arange(S)[None, :] < bert_lengths[:, None]).astype(jnp.float32)[..., None]
    bert_sliced = bert_out_full[:, 1:S + 1, :]
    wmb_oh = jax.nn.one_hot(word_mapback, W, dtype=jnp.float32) * indi   # [B, S, W]
    wmb_oh_t = jnp.swapaxes(wmb_oh, 1, 2)                                # [B, W, S]

    feat = intra_context_pallas(bert_sliced, wmb_oh_t, cn_map, con_adj, dvec,
                                aspect_mask, Wd, bd, Wg, bg, gamma, beta,
                                batch_tile=16)
    as_features = jnp.concatenate([feat, bert_pooler], axis=-1)          # [B, H + Db]
    jax.block_until_ready(as_features)

    # correctness check against a pure-JAX reference of the original math
    # (tolerance covers the EUP approximate-reciprocal path used in the kernel).
    ref_feat = reference_jax(bert_sliced, indi, wmb_oh_t, cn_map, con_adj, Dm,
                             aspect_mask, Wd, bd, Wg, bg, gamma, beta)
    assert jnp.allclose(feat, ref_feat, atol=5e-3, rtol=5e-3), (feat, ref_feat)
    print("KERNEL_OK")
</pallas_src>

<mosaic_0001>
module attributes {stable_mosaic.version = 11 : i64} {
  func.func @_intra_context_kernel(%arg0: i32, %arg1: memref<10x16x32xf32, #tpu.memory_space<vmem>>, %arg2: memref<10x16x16xf32, #tpu.memory_space<vmem>>, %arg3: memref<10x16x16xf32, #tpu.memory_space<vmem>>, %arg4: memref<10x16x16xf32, #tpu.memory_space<vmem>>, %arg5: memref<10x16x16xf32, #tpu.memory_space<vmem>>, %arg6: memref<10x16x1xf32, #tpu.memory_space<vmem>>, %arg7: memref<10x16x1xf32, #tpu.memory_space<vmem>>, %arg8: memref<32x128xf32, #tpu.memory_space<vmem>>, %arg9: memref<1x128xf32, #tpu.memory_space<vmem>>, %arg10: memref<128x128xf32, #tpu.memory_space<vmem>>, %arg11: memref<1x128xf32, #tpu.memory_space<vmem>>, %arg12: memref<1x128xf32, #tpu.memory_space<vmem>>, %arg13: memref<1x128xf32, #tpu.memory_space<vmem>>, %arg14: memref<10x128xf32, #tpu.memory_space<vmem>>) attributes {dimension_semantics = [#tpu.dimension_semantics<parallel>], iteration_bounds = array<i64: 1>, scalar_prefetch = 0 : i64, scratch_operands = 0 : i64, tpu.core_type = #tpu.core_type<tc>, window_params = [{transform_indices = @transform_0, window_bounds = array<i64: 10, 16, 32>}, {transform_indices = @transform_1, window_bounds = array<i64: 10, 16, 16>}, {transform_indices = @transform_2, window_bounds = array<i64: 10, 16, 16>}, {transform_indices = @transform_3, window_bounds = array<i64: 10, 16, 16>}, {transform_indices = @transform_4, window_bounds = array<i64: 10, 16, 16>}, {transform_indices = @transform_5, window_bounds = array<i64: 10, 16, 1>}, {transform_indices = @transform_6, window_bounds = array<i64: 10, 16, 1>}, {pipeline_mode = #tpu.pipeline_mode<synchronous>, transform_indices = @transform_7, window_bounds = array<i64: 32, 128>}, {pipeline_mode = #tpu.pipeline_mode<synchronous>, transform_indices = @transform_8, window_bounds = array<i64: 1, 128>}, {pipeline_mode = #tpu.pipeline_mode<synchronous>, transform_indices = @transform_9, window_bounds = array<i64: 128, 128>}, {pipeline_mode = #tpu.pipeline_mode<synchronous>, transform_indices = @transform_10, window_bounds = array<i64: 1, 128>}, {pipeline_mode = #tpu.pipeline_mode<synchronous>, transform_indices = @transform_11, window_bounds = array<i64: 1, 128>}, {pipeline_mode = #tpu.pipeline_mode<synchronous>, transform_indices = @transform_12, window_bounds = array<i64: 1, 128>}, {transform_indices = @transform_13, window_bounds = array<i64: 10, 128>}]} {
    %c0 = arith.constant 0 : index
    %c0_0 = arith.constant 0 : index
    %c0_1 = arith.constant 0 : index
    %0 = vector.load %arg1[%c0, %c0_0, %c0_1] : memref<10x16x32xf32, #tpu.memory_space<vmem>>, vector<10x16x32xf32>
    %c0_2 = arith.constant 0 : index
    %c0_3 = arith.constant 0 : index
    %c0_4 = arith.constant 0 : index
    %1 = vector.load %arg2[%c0_2, %c0_3, %c0_4] : memref<10x16x16xf32, #tpu.memory_space<vmem>>, vector<10x16x16xf32>
    %c0_5 = arith.constant 0 : index
    %c0_6 = arith.constant 0 : index
    %c0_7 = arith.constant 0 : index
    %2 = vector.load %arg3[%c0_5, %c0_6, %c0_7] : memref<10x16x16xf32, #tpu.memory_space<vmem>>, vector<10x16x16xf32>
    %c0_8 = arith.constant 0 : index
    %c0_9 = arith.constant 0 : index
    %3 = vector.load %arg8[%c0_8, %c0_9] : memref<32x128xf32, #tpu.memory_space<vmem>>, vector<32x128xf32>
    %c0_10 = arith.constant 0 : index
    %c0_11 = arith.constant 0 : index
    %4 = vector.load %arg9[%c0_10, %c0_11] : memref<1x128xf32, #tpu.memory_space<vmem>>, vector<1x128xf32>
    %c0_12 = arith.constant 0 : index
    %c0_13 = arith.constant 0 : index
    %5 = vector.load %arg12[%c0_12, %c0_13] : memref<1x128xf32, #tpu.memory_space<vmem>>, vector<1x128xf32>
    %c0_14 = arith.constant 0 : index
    %c0_15 = arith.constant 0 : index
    %6 = vector.load %arg13[%c0_14, %c0_15] : memref<1x128xf32, #tpu.memory_space<vmem>>, vector<1x128xf32>
    "tpu.trace_start"() <{level = 10 : i32, message = "bws,bsd->bwd"}> : () -> ()
    %cst = arith.constant dense<0.000000e+00> : vector<10x16x32xf32>
    %7 = tpu.matmul %1, %0, %cst {dimension_numbers = #tpu.dot_dimension_numbers<[2], [1], [1], [2], [0, 0, 0, 1, 1, 2], [0], [0]>} : vector<10x16x16xf32>, vector<10x16x32xf32>, vector<10x16x32xf32> -> vector<10x16x32xf32>
    "tpu.trace_stop"() : () -> ()
    %cst_16 = arith.constant dense<0.000000e+00> : vector<10x16xf32>
    %8 = vector.multi_reduction <add>, %1, %cst_16 [2] : vector<10x16x16xf32> to vector<10x16xf32>
    %9 = vector.shape_cast %8 : vector<10x16xf32> to vector<10x16x1xf32>
    %cst_17 = arith.constant 0.000000e+00 : f32
    %10 = vector.broadcast %cst_17 : f32 to vector<10x16x1xf32>
    %11 = arith.cmpf oeq, %9, %10 : vector<10x16x1xf32>
    %cst_18 = arith.constant 1.000000e+00 : f32
    %12 = vector.broadcast %cst_18 : f32 to vector<10x16x1xf32>
    %13 = arith.select %11, %12, %9 : vector<10x16x1xi1>, vector<10x16x1xf32>
    %14 = tpu.reciprocal %13 {approx = true} : vector<10x16x1xf32> -> vector<10x16x1xf32>
    %15 = vector.broadcast %14 : vector<10x16x1xf32> to vector<10x16x32xf32>
    %16 = arith.mulf %7, %15 : vector<10x16x32xf32>
    "tpu.trace_start"() <{level = 10 : i32, message = "bcw,bwd->bcd"}> : () -> ()
    %cst_19 = arith.constant dense<0.000000e+00> : vector<10x16x32xf32>
    %17 = tpu.matmul %2, %16, %cst_19 {dimension_numbers = #tpu.dot_dimension_numbers<[2], [1], [1], [2], [0, 0, 0, 1, 1, 2], [0], [0]>} : vector<10x16x16xf32>, vector<10x16x32xf32>, vector<10x16x32xf32> -> vector<10x16x32xf32>
    "tpu.trace_stop"() : () -> ()
    %cst_20 = arith.constant dense<0.000000e+00> : vector<10x16xf32>
    %18 = vector.multi_reduction <add>, %2, %cst_20 [2] : vector<10x16x16xf32> to vector<10x16xf32>
    %19 = vector.shape_cast %18 : vector<10x16xf32> to vector<10x16x1xf32>
    %cst_21 = arith.constant 0.000000e+00 : f32
    %20 = vector.broadcast %cst_21 : f32 to vector<10x16x1xf32>
    %21 = arith.cmpf oeq, %19, %20 : vector<10x16x1xf32>
    %cst_22 = arith.constant 1.000000e+00 : f32
    %22 = vector.broadcast %cst_22 : f32 to vector<10x16x1xf32>
    %23 = arith.select %21, %22, %19 : vector<10x16x1xi1>, vector<10x16x1xf32>
    %24 = tpu.reciprocal %23 {approx = true} : vector<10x16x1xf32> -> vector<10x16x1xf32>
    %25 = vector.broadcast %24 : vector<10x16x1xf32> to vector<10x16x32xf32>
    %26 = arith.mulf %17, %25 : vector<10x16x32xf32>
    %27 = vector.shape_cast %16 : vector<10x16x32xf32> to vector<160x32xf32>
    %28 = vector.shape_cast %26 : vector<10x16x32xf32> to vector<160x32xf32>
    %29 = tpu.concatenate %27, %28 in 0 : vector<160x32xf32>, vector<160x32xf32> -> vector<320x32xf32>
    %cst_23 = arith.constant dense<0.000000e+00> : vector<320x128xf32>
    %30 = tpu.matmul %29, %3, %cst_23 {dimension_numbers = #tpu.dot_dimension_numbers<[1], [0], [0], [1], [0, 0, 1, 1], [], []>} : vector<320x32xf32>, vector<32x128xf32>, vector<320x128xf32> -> vector<320x128xf32>
    %31 = vector.broadcast %4 : vector<1x128xf32> to vector<320x128xf32>
    %32 = arith.addf %30, %31 : vector<320x128xf32>
    %33 = vector.extract_strided_slice %32 {offsets = [0, 0], sizes = [160, 128], strides = [1, 1]} : vector<320x128xf32> to vector<160x128xf32>
    %34 = vector.shape_cast %33 : vector<160x128xf32> to vector<10x16x128xf32>
    %35 = vector.extract_strided_slice %32 {offsets = [160, 0], sizes = [160, 128], strides = [1, 1]} : vector<320x128xf32> to vector<160x128xf32>
    %36 = vector.shape_cast %35 : vector<160x128xf32> to vector<10x16x128xf32>
    %cst_24 = arith.constant 0.000000e+00 : f32
    %37 = vector.broadcast %cst_24 : f32 to vector<10x16x1xf32>
    %38 = arith.cmpf ogt, %9, %37 : vector<10x16x1xf32>
    %39 = arith.extui %38 : vector<10x16x1xi1> to vector<10x16x1xi32>
    %40 = arith.sitofp %39 : vector<10x16x1xi32> to vector<10x16x1xf32>
    %41 = vector.broadcast %40 : vector<10x16x1xf32> to vector<10x16x128xf32>
    %42 = arith.mulf %34, %41 : vector<10x16x128xf32>
    %c0_25 = arith.constant 0 : index
    %c0_26 = arith.constant 0 : index
    %c0_27 = arith.constant 0 : index
    %43 = vector.load %arg6[%c0_25, %c0_26, %c0_27] : memref<10x16x1xf32, #tpu.memory_space<vmem>>, vector<10x16x1xf32>
    %c0_28 = arith.constant 0 : index
    %c0_29 = arith.constant 0 : index
    %c0_30 = arith.constant 0 : index
    %44 = vector.load %arg5[%c0_28, %c0_29, %c0_30] : memref<10x16x16xf32, #tpu.memory_space<vmem>>, vector<10x16x16xf32>
    %45 = vector.broadcast %43 : vector<10x16x1xf32> to vector<10x16x128xf32>
    %46 = arith.mulf %45, %36 : vector<10x16x128xf32>
    "tpu.trace_start"() <{level = 10 : i32, message = "bij,bjh->bih"}> : () -> ()
    %cst_31 = arith.constant dense<0.000000e+00> : vector<10x16x128xf32>
    %47 = tpu.matmul %44, %46, %cst_31 {dimension_numbers = #tpu.dot_dimension_numbers<[2], [1], [1], [2], [0, 0, 0, 1, 1, 2], [0], [0]>} : vector<10x16x16xf32>, vector<10x16x128xf32>, vector<10x16x128xf32> -> vector<10x16x128xf32>
    "tpu.trace_stop"() : () -> ()
    %48 = vector.broadcast %43 : vector<10x16x1xf32> to vector<10x16x128xf32>
    %49 = arith.mulf %48, %47 : vector<10x16x128xf32>
    %50 = vector.shape_cast %49 : vector<10x16x128xf32> to vector<160x128xf32>
    %c0_32 = arith.constant 0 : index
    %c0_33 = arith.constant 0 : index
    %51 = vector.load %arg10[%c0_32, %c0_33] : memref<128x128xf32, #tpu.memory_space<vmem>>, vector<128x128xf32>
    %cst_34 = arith.constant dense<0.000000e+00> : vector<160x128xf32>
    %52 = tpu.matmul %50, %51, %cst_34 {dimension_numbers = #tpu.dot_dimension_numbers<[1], [0], [0], [1], [0, 0, 1, 1], [], []>} : vector<160x128xf32>, vector<128x128xf32>, vector<160x128xf32> -> vector<160x128xf32>
    %53 = vector.shape_cast %52 : vector<160x128xf32> to vector<10x16x128xf32>
    %c0_35 = arith.constant 0 : index
    %c0_36 = arith.constant 0 : index
    %54 = vector.load %arg11[%c0_35, %c0_36] : memref<1x128xf32, #tpu.memory_space<vmem>>, vector<1x128xf32>
    %55 = vector.shape_cast %54 : vector<1x128xf32> to vector<1x1x128xf32>
    %56 = vector.broadcast %55 : vector<1x1x128xf32> to vector<10x16x128xf32>
    %57 = arith.addf %53, %56 : vector<10x16x128xf32>
    %58 = tpu.iota {dimensions = array<i32: 1>} : vector<1x16x1xi32>
    %c10_i32 = arith.constant 10 : i32
    %59 = vector.broadcast %c10_i32 : i32 to vector<1x16x1xi32>
    %60 = arith.cmpi slt, %58, %59 : vector<1x16x1xi32>
    %61 = arith.extui %60 : vector<1x16x1xi1> to vector<1x16x1xi32>
    %62 = arith.sitofp %61 : vector<1x16x1xi32> to vector<1x16x1xf32>
    %63 = vector.broadcast %62 : vector<1x16x1xf32> to vector<10x16x128xf32>
    %64 = arith.mulf %57, %63 : vector<10x16x128xf32>
    "tpu.trace_start"() <{level = 10 : i32, message = "bwh,bch->bwc"}> : () -> ()
    %cst_37 = arith.constant dense<0.000000e+00> : vector<10x16x16xf32>
    %65 = tpu.matmul %34, %64, %cst_37 {dimension_numbers = #tpu.dot_dimension_numbers<[2], [2], [1], [1], [0, 0, 0, 1, 1, 1], [0], [0]>} : vector<10x16x128xf32>, vector<10x16x128xf32>, vector<10x16x16xf32> -> vector<10x16x16xf32>
    "tpu.trace_stop"() : () -> ()
    %c0_38 = arith.constant 0 : index
    %c0_39 = arith.constant 0 : index
    %c0_40 = arith.constant 0 : index
    %66 = vector.load %arg4[%c0_38, %c0_39, %c0_40] : memref<10x16x16xf32, #tpu.memory_space<vmem>>, vector<10x16x16xf32>
    %67 = arith.mulf %66, %65 : vector<10x16x16xf32>
    %cst_41 = arith.constant dense<0xFF800000> : vector<10x16xf32>
    %68 = vector.multi_reduction <maximumf>, %67, %cst_41 [1] : vector<10x16x16xf32> to vector<10x16xf32>
    %69 = vector.shape_cast %68 : vector<10x16xf32> to vector<10x1x16xf32>
    %70 = vector.broadcast %69 : vector<10x1x16xf32> to vector<10x16x16xf32>
    %71 = arith.subf %67, %70 : vector<10x16x16xf32>
    %72 = math.exp %71 : vector<10x16x16xf32>
    %73 = tpu.iota {dimensions = array<i32: 1>} : vector<1x16x1xi32>
    %c12_i32 = arith.constant 12 : i32
    %74 = vector.broadcast %c12_i32 : i32 to vector<1x16x1xi32>
    %75 = arith.cmpi slt, %73, %74 : vector<1x16x1xi32>
    %76 = arith.extui %75 : vector<1x16x1xi1> to vector<1x16x1xi32>
    %77 = arith.sitofp %76 : vector<1x16x1xi32> to vector<1x16x1xf32>
    %78 = vector.broadcast %77 : vector<1x16x1xf32> to vector<10x16x16xf32>
    %79 = arith.mulf %72, %78 : vector<10x16x16xf32>
    %cst_42 = arith.constant dense<0.000000e+00> : vector<10x16xf32>
    %80 = vector.multi_reduction <add>, %79, %cst_42 [1] : vector<10x16x16xf32> to vector<10x16xf32>
    %81 = vector.shape_cast %80 : vector<10x16xf32> to vector<10x1x16xf32>
    %82 = tpu.reciprocal %81 {approx = true} : vector<10x1x16xf32> -> vector<10x1x16xf32>
    %83 = vector.broadcast %82 : vector<10x1x16xf32> to vector<10x16x16xf32>
    %84 = arith.mulf %79, %83 : vector<10x16x16xf32>
    "tpu.trace_start"() <{level = 10 : i32, message = "bwc,bch->bwh"}> : () -> ()
    %cst_43 = arith.constant dense<0.000000e+00> : vector<10x16x128xf32>
    %85 = tpu.matmul %84, %64, %cst_43 {dimension_numbers = #tpu.dot_dimension_numbers<[2], [1], [1], [2], [0, 0, 0, 1, 1, 2], [0], [0]>} : vector<10x16x16xf32>, vector<10x16x128xf32>, vector<10x16x128xf32> -> vector<10x16x128xf32>
    "tpu.trace_stop"() : () -> ()
    %cst_44 = arith.constant dense<0.000000e+00> : vector<10x16xf32>
    %86 = vector.multi_reduction <add>, %85, %cst_44 [2] : vector<10x16x128xf32> to vector<10x16xf32>
    %87 = vector.shape_cast %86 : vector<10x16xf32> to vector<10x16x1xf32>
    %cst_45 = arith.constant 6.250000e-02 : f32
    %88 = vector.broadcast %cst_45 : f32 to vector<10x16x1xf32>
    %89 = arith.mulf %87, %88 : vector<10x16x1xf32>
    %90 = vector.broadcast %89 : vector<10x16x1xf32> to vector<10x16x128xf32>
    %91 = arith.subf %85, %90 : vector<10x16x128xf32>
    %92 = tpu.iota {dimensions = array<i32: 2>} : vector<1x1x128xi32>
    %c16_i32 = arith.constant 16 : i32
    %93 = vector.broadcast %c16_i32 : i32 to vector<1x1x128xi32>
    %94 = arith.cmpi slt, %92, %93 : vector<1x1x128xi32>
    %95 = arith.extui %94 : vector<1x1x128xi1> to vector<1x1x128xi32>
    %96 = arith.sitofp %95 : vector<1x1x128xi32> to vector<1x1x128xf32>
    %97 = vector.broadcast %96 : vector<1x1x128xf32> to vector<10x16x128xf32>
    %98 = arith.mulf %91, %97 : vector<10x16x128xf32>
    %99 = arith.mulf %98, %98 : vector<10x16x128xf32>
    %cst_46 = arith.constant dense<0.000000e+00> : vector<10x16xf32>
    %100 = vector.multi_reduction <add>, %99, %cst_46 [2] : vector<10x16x128xf32> to vector<10x16xf32>
    %101 = vector.shape_cast %100 : vector<10x16xf32> to vector<10x16x1xf32>
    %cst_47 = arith.constant 6.250000e-02 : f32
    %102 = vector.broadcast %cst_47 : f32 to vector<10x16x1xf32>
    %103 = arith.mulf %101, %102 : vector<10x16x1xf32>
    %cst_48 = arith.constant 9.99999974E-6 : f32
    %104 = vector.broadcast %cst_48 : f32 to vector<10x16x1xf32>
    %105 = arith.addf %103, %104 : vector<10x16x1xf32>
    %106 = math.rsqrt %105 : vector<10x16x1xf32>
    %107 = vector.broadcast %106 : vector<10x16x1xf32> to vector<10x16x128xf32>
    %108 = arith.mulf %98, %107 : vector<10x16x128xf32>
    %109 = vector.shape_cast %5 : vector<1x128xf32> to vector<1x1x128xf32>
    %110 = vector.broadcast %109 : vector<1x1x128xf32> to vector<10x16x128xf32>
    %111 = arith.mulf %108, %110 : vector<10x16x128xf32>
    %112 = vector.shape_cast %6 : vector<1x128xf32> to vector<1x1x128xf32>
    %113 = vector.broadcast %112 : vector<1x1x128xf32> to vector<10x16x128xf32>
    %114 = arith.addf %111, %113 : vector<10x16x128xf32>
    %115 = arith.addf %114, %34 : vector<10x16x128xf32>
    %cst_49 = arith.constant dense<0.000000e+00> : vector<10x16xf32>
    %116 = vector.multi_reduction <add>, %115, %cst_49 [2] : vector<10x16x128xf32> to vector<10x16xf32>
    %117 = vector.shape_cast %116 : vector<10x16xf32> to vector<10x16x1xf32>
    %cst_50 = arith.constant 6.250000e-02 : f32
    %118 = vector.broadcast %cst_50 : f32 to vector<10x16x1xf32>
    %119 = arith.mulf %117, %118 : vector<10x16x1xf32>
    %120 = vector.broadcast %119 : vector<10x16x1xf32> to vector<10x16x128xf32>
    %121 = arith.subf %115, %120 : vector<10x16x128xf32>
    %122 = tpu.iota {dimensions = array<i32: 2>} : vector<1x1x128xi32>
    %c16_i32_51 = arith.constant 16 : i32
    %123 = vector.broadcast %c16_i32_51 : i32 to vector<1x1x128xi32>
    %124 = arith.cmpi slt, %122, %123 : vector<1x1x128xi32>
    %125 = arith.extui %124 : vector<1x1x128xi1> to vector<1x1x128xi32>
    %126 = arith.sitofp %125 : vector<1x1x128xi32> to vector<1x1x128xf32>
    %127 = vector.broadcast %126 : vector<1x1x128xf32> to vector<10x16x128xf32>
    %128 = arith.mulf %121, %127 : vector<10x16x128xf32>
    %129 = arith.mulf %128, %128 : vector<10x16x128xf32>
    %cst_52 = arith.constant dense<0.000000e+00> : vector<10x16xf32>
    %130 = vector.multi_reduction <add>, %129, %cst_52 [2] : vector<10x16x128xf32> to vector<10x16xf32>
    %131 = vector.shape_cast %130 : vector<10x16xf32> to vector<10x16x1xf32>
    %cst_53 = arith.constant 6.250000e-02 : f32
    %132 = vector.broadcast %cst_53 : f32 to vector<10x16x1xf32>
    %133 = arith.mulf %131, %132 : vector<10x16x1xf32>
    %cst_54 = arith.constant 9.99999974E-6 : f32
    %134 = vector.broadcast %cst_54 : f32 to vector<10x16x1xf32>
    %135 = arith.addf %133, %134 : vector<10x16x1xf32>
    %136 = math.rsqrt %135 : vector<10x16x1xf32>
    %137 = vector.broadcast %136 : vector<10x16x1xf32> to vector<10x16x128xf32>
    %138 = arith.mulf %128, %137 : vector<10x16x128xf32>
    %139 = vector.shape_cast %5 : vector<1x128xf32> to vector<1x1x128xf32>
    %140 = vector.broadcast %139 : vector<1x1x128xf32> to vector<10x16x128xf32>
    %141 = arith.mulf %138, %140 : vector<10x16x128xf32>
    %142 = vector.shape_cast %6 : vector<1x128xf32> to vector<1x1x128xf32>
    %143 = vector.broadcast %142 : vector<1x1x128xf32> to vector<10x16x128xf32>
    %144 = arith.addf %141, %143 : vector<10x16x128xf32>
    %c0_55 = arith.constant 0 : index
    %c0_56 = arith.constant 0 : index
    %c0_57 = arith.constant 0 : index
    %145 = vector.load %arg7[%c0_55, %c0_56, %c0_57] : memref<10x16x1xf32, #tpu.memory_space<vmem>>, vector<10x16x1xf32>
    %cst_58 = arith.constant dense<0.000000e+00> : vector<10x1xf32>
    %146 = vector.multi_reduction <add>, %145, %cst_58 [1] : vector<10x16x1xf32> to vector<10x1xf32>
    %147 = vector.shape_cast %146 : vector<10x1xf32> to vector<10x1x1xf32>
    %cst_59 = arith.constant 0.000000e+00 : f32
    %148 = vector.broadcast %cst_59 : f32 to vector<10x1x1xf32>
    %149 = arith.cmpf oeq, %147, %148 : vector<10x1x1xf32>
    %cst_60 = arith.constant 1.000000e+00 : f32
    %150 = vector.broadcast %cst_60 : f32 to vector<10x1x1xf32>
    %151 = arith.select %149, %150, %147 : vector<10x1x1xi1>, vector<10x1x1xf32>
    %152 = tpu.reciprocal %151 {approx = true} : vector<10x1x1xf32> -> vector<10x1x1xf32>
    %153 = vector.broadcast %145 : vector<10x16x1xf32> to vector<10x16x128xf32>
    %154 = arith.mulf %42, %153 : vector<10x16x128xf32>
    %cst_61 = arith.constant dense<0.000000e+00> : vector<10x128xf32>
    %155 = vector.multi_reduction <add>, %154, %cst_61 [1] : vector<10x16x128xf32> to vector<10x128xf32>
    %156 = vector.shape_cast %155 : vector<10x128xf32> to vector<10x1x128xf32>
    %157 = vector.broadcast %152 : vector<10x1x1xf32> to vector<10x1x128xf32>
    %158 = arith.mulf %156, %157 : vector<10x1x128xf32>
    %159 = vector.broadcast %145 : vector<10x16x1xf32> to vector<10x16x128xf32>
    %160 = arith.mulf %144, %159 : vector<10x16x128xf32>
    %cst_62 = arith.constant dense<0.000000e+00> : vector<10x128xf32>
    %161 = vector.multi_reduction <add>, %160, %cst_62 [1] : vector<10x16x128xf32> to vector<10x128xf32>
    %162 = vector.shape_cast %161 : vector<10x128xf32> to vector<10x1x128xf32>
    %163 = vector.broadcast %152 : vector<10x1x1xf32> to vector<10x1x128xf32>
    %164 = arith.mulf %162, %163 : vector<10x1x128xf32>
    %cst_63 = arith.constant 2.000000e+00 : f32
    %165 = vector.broadcast %cst_63 : f32 to vector<10x1x128xf32>
    %166 = arith.mulf %165, %158 : vector<10x1x128xf32>
    %167 = arith.addf %166, %164 : vector<10x1x128xf32>
    %168 = vector.shape_cast %167 : vector<10x1x128xf32> to vector<10x128xf32>
    %c0_64 = arith.constant 0 : index
    %c0_65 = arith.constant 0 : index
    %169 = vector.load %arg14[%c0_64, %c0_65] : memref<10x128xf32, #tpu.memory_space<vmem>>, vector<10x128xf32>
    tpu.vector_store %arg14[%c0_64, %c0_65], %168 {strides = array<i32>} : memref<10x128xf32, #tpu.memory_space<vmem>>, vector<10x128xf32>,
    return
  }
  func.func @transform_0(%arg0: i32) -> (i32, i32, i32) {
    %c0_i32 = arith.constant 0 : i32
    %c0_i32_0 = arith.constant 0 : i32
    %c0_i32_1 = arith.constant 0 : i32
    return %arg0, %c0_i32, %c0_i32_0 : i32, i32, i32
  }
  func.func @transform_1(%arg0: i32) -> (i32, i32, i32) {
    %c0_i32 = arith.constant 0 : i32
    %c0_i32_0 = arith.constant 0 : i32
    %c0_i32_1 = arith.constant 0 : i32
    return %arg0, %c0_i32, %c0_i32_0 : i32, i32, i32
  }
  func.func @transform_2(%arg0: i32) -> (i32, i32, i32) {
    %c0_i32 = arith.constant 0 : i32
    %c0_i32_0 = arith.constant 0 : i32
    %c0_i32_1 = arith.constant 0 : i32
    return %arg0, %c0_i32, %c0_i32_0 : i32, i32, i32
  }
  func.func @transform_3(%arg0: i32) -> (i32, i32, i32) {
    %c0_i32 = arith.constant 0 : i32
    %c0_i32_0 = arith.constant 0 : i32
    %c0_i32_1 = arith.constant 0 : i32
    return %arg0, %c0_i32, %c0_i32_0 : i32, i32, i32
  }
  func.func @transform_4(%arg0: i32) -> (i32, i32, i32) {
    %c0_i32 = arith.constant 0 : i32
    %c0_i32_0 = arith.constant 0 : i32
    %c0_i32_1 = arith.constant 0 : i32
    return %arg0, %c0_i32, %c0_i32_0 : i32, i32, i32
  }
  func.func @transform_5(%arg0: i32) -> (i32, i32, i32) {
    %c0_i32 = arith.constant 0 : i32
    %c0_i32_0 = arith.constant 0 : i32
    %c0_i32_1 = arith.constant 0 : i32
    return %arg0, %c0_i32, %c0_i32_0 : i32, i32, i32
  }
  func.func @transform_6(%arg0: i32) -> (i32, i32, i32) {
    %c0_i32 = arith.constant 0 : i32
    %c0_i32_0 = arith.constant 0 : i32
    %c0_i32_1 = arith.constant 0 : i32
    return %arg0, %c0_i32, %c0_i32_0 : i32, i32, i32
  }
  func.func @transform_7(%arg0: i32) -> (i32, i32) {
    %c0_i32 = arith.constant 0 : i32
    %c0_i32_0 = arith.constant 0 : i32
    %c0_i32_1 = arith.constant 0 : i32
    return %c0_i32, %c0_i32_0 : i32, i32
  }
  func.func @transform_8(%arg0: i32) -> (i32, i32) {
    %c0_i32 = arith.constant 0 : i32
    %c0_i32_0 = arith.constant 0 : i32
    %c0_i32_1 = arith.constant 0 : i32
    return %c0_i32, %c0_i32_0 : i32, i32
  }
  func.func @transform_9(%arg0: i32) -> (i32, i32) {
    %c0_i32 = arith.constant 0 : i32
    %c0_i32_0 = arith.constant 0 : i32
    %c0_i32_1 = arith.constant 0 : i32
    return %c0_i32, %c0_i32_0 : i32, i32
  }
  func.func @transform_10(%arg0: i32) -> (i32, i32) {
    %c0_i32 = arith.constant 0 : i32
    %c0_i32_0 = arith.constant 0 : i32
    %c0_i32_1 = arith.constant 0 : i32
    return %c0_i32, %c0_i32_0 : i32, i32
  }
  func.func @transform_11(%arg0: i32) -> (i32, i32) {
    %c0_i32 = arith.constant 0 : i32
    %c0_i32_0 = arith.constant 0 : i32
    %c0_i32_1 = arith.constant 0 : i32
    return %c0_i32, %c0_i32_0 : i32, i32
  }
  func.func @transform_12(%arg0: i32) -> (i32, i32) {
    %c0_i32 = arith.constant 0 : i32
    %c0_i32_0 = arith.constant 0 : i32
    %c0_i32_1 = arith.constant 0 : i32
    return %c0_i32, %c0_i32_0 : i32, i32
  }
  func.func @transform_13(%arg0: i32) -> (i32, i32) {
    %c0_i32 = arith.constant 0 : i32
    %c0_i32_0 = arith.constant 0 : i32
    return %arg0, %c0_i32 : i32, i32
  }
}

</mosaic_0001>

<bundles_post_ra>
// kernel: tpu_custom_call.1
= control target key start
LH: loop header
LB: loop body
LE: loop exit
PB: predicated region body
PF: predicated region fallthrough
CT: control target
= control target key end

     0   :  { %18 = vsyncpa [#allocation3], 0  ;;  %s10601_s0 = inlined_call_operand.vmem [shape: f32[10,16,32], index: 0, kind: input, shape index: {}]   ;;  %s10602_s1 = inlined_call_operand.vmem [shape: f32[10,16,16], index: 1, kind: input, shape index: {}]   ;;  %s10603_s2 = inlined_call_operand.hbm [shape: f32[10,16,16], index: 2, kind: input, shape index: {}]   ;;  %s10604_s3 = inlined_call_operand.hbm [shape: f32[10,16,16], index: 3, kind: input, shape index: {}]   ;;  %s10605_s4 = inlined_call_operand.hbm [shape: f32[10,16,16], index: 4, kind: input, shape index: {}]   ;;  %s10606_s5 = inlined_call_operand.vmem [shape: f32[10,16,1], index: 5, kind: input, shape index: {}]   ;;  %s10607_s6 = inlined_call_operand.vmem [shape: f32[10,16,1], index: 6, kind: input, shape index: {}]   ;;  %s10608_s7 = inlined_call_operand.vmem [shape: f32[32,128], index: 7, kind: input, shape index: {}]   ;;  %s10609_s8 = inlined_call_operand.vmem [shape: f32[1,128], index: 8, kind: input, shape index: {}]   ;;  %s10610_s9 = inlined_call_operand.hbm [shape: f32[128,128], index: 9, kind: input, shape index: {}]   ;;  %s10611_s10 = inlined_call_operand.vmem [shape: f32[1,128], index: 10, kind: input, shape index: {}]   ;;  %s10612_s11 = inlined_call_operand.vmem [shape: f32[1,128], index: 11, kind: input, shape index: {}]   ;;  %s10613_s12 = inlined_call_operand.vmem [shape: f32[1,128], index: 12, kind: input, shape index: {}]   ;;  %s10614_s13 = inlined_call_operand.hbm [shape: f32[10,128], index: 13, kind: output, shape index: {}]  }
   0x1   :  { %19 = vsyncpa [#allocation6], 0 }
   0x2   :  { %20 = vsyncpa [#allocation9], 0 }
   0x3   :  { %21 = vsyncpa [#allocation4], 0  ;;  %s8338_s25 = smov [#allocation5]   ;;  %s8339_s27 = smov [#allocation2]  }
   0x4   :  { %s43_s26 = sshll.u32 %s8338_s25, 4  ;;  %s31_s28 = sshll.u32 %s8339_s27, 4  ;;  %s44_s26 = int_to_ptr.vmem [resolvable:$true] %s43_s26  ;;  %s8417_s28 = int_to_ptr.vmem [resolvable:$true] %s31_s28 }
   0x5   :  { %s8220_s14 = scalar_lea.hbm %s10604_s3, 2560 }
   0x6   :  { %p8221_p0 = scmp.ne.s32.totalorder %s10604_s3, %s8220_s14  ;;  %p8224_p1 = scmp.lt.u32.totalorder %s8220_s14, %s10604_s3 }
   0x8   :  { %p8226_p2 = pnand %p8224_p1, %p8221_p0 }
   0xa   :  { %8229 = shalt.err (!%p8226_p2)
}
   0xb   :  { %s8230_s19 = scalar_lea.vmem %s44_s26, 2560  ;;  %p8235_p4 = scmp.lt.s32.totalorder %s44_s26, %s44_s26 }
   0xc   :  { %p8231_p3 = scmp.ne.s32.totalorder %s44_s26, %s8230_s19  ;;  %p8236_p5 = scmp.lt.s32.totalorder %s8230_s19, %s8230_s19 }
   0xe   :  { %p8237_p6 = por %p8236_p5, %p8235_p4 }
  0x10   :  { %p8238_p7 = pnand %p8237_p6, %p8231_p3 }
  0x12   :  { %8241 = shalt.err (!%p8238_p7)
}
  0x13   :  { %s8340_s20 = smov 128   ;;  %s8341_s21 = smov 8  }
  0x14   :  { %49 = dma.hbm_to_vmem [thread:$0]  %s10604_s3, 2560, %s44_s26, [#allocation6], %s8340_s20, %s8340_s20, %s8341_s21  }
  0x15   :  { %s8242_s27 = scalar_lea.hbm %s10603_s2, 2560 }
  0x16   :  { %p8243_p8 = scmp.ne.s32.totalorder %s10603_s2, %s8242_s27  ;;  %p8246_p9 = scmp.lt.u32.totalorder %s8242_s27, %s10603_s2 }
  0x18   :  { %p8248_p10 = pnand %p8246_p9, %p8243_p8 }
  0x1a   :  { %8251 = shalt.err (!%p8248_p10)
}
  0x1b   :  { %s8252_s16 = scalar_lea.vmem %s8417_s28, 2560  ;;  %p8257_p12 = scmp.lt.s32.totalorder %s8417_s28, %s8417_s28 }
  0x1c   :  { %p8253_p11 = scmp.ne.s32.totalorder %s8417_s28, %s8252_s16  ;;  %p8258_p13 = scmp.lt.s32.totalorder %s8252_s16, %s8252_s16 }
  0x1e   :  { %p8259_p0 = por %p8258_p13, %p8257_p12 }
  0x20   :  { %p8260_p1 = pnand %p8259_p0, %p8253_p11 }
  0x22   :  { %8263 = shalt.err (!%p8260_p1)
}
  0x23   :  { %37 = dma.hbm_to_vmem [thread:$0]  %s10603_s2, 2560, %s8417_s28, [#allocation3], %s8340_s20, %s8340_s20, %s8341_s21  }
  0x24   :  { %s8342_s17 = smov [#allocation7]   ;;  %s8343_s19 = smov [#allocation8]  }
  0x25   :  { %s55_s18 = sshll.u32 %s8342_s17, 4  ;;  %s75_s22 = sshll.u32 %s8343_s19, 4  ;;  %s56_s18 = int_to_ptr.vmem [resolvable:$true] %s55_s18  ;;  %s8454_s22 = int_to_ptr.vmem [resolvable:$true] %s75_s22 }
  0x26   :  { %s8264_s25 = scalar_lea.hbm %s10605_s4, 2560 }
  0x27   :  { %p8265_p2 = scmp.ne.s32.totalorder %s10605_s4, %s8264_s25  ;;  %p8268_p3 = scmp.lt.u32.totalorder %s8264_s25, %s10605_s4 }
  0x29   :  { %p8270_p4 = pnand %p8268_p3, %p8265_p2 }
  0x2b   :  { %8273 = shalt.err (!%p8270_p4)
}
  0x2c   :  { %s8274_s2 = scalar_lea.vmem %s56_s18, 2560  ;;  %p8279_p6 = scmp.lt.s32.totalorder %s56_s18, %s56_s18 }
  0x2d   :  { %p8275_p5 = scmp.ne.s32.totalorder %s56_s18, %s8274_s2  ;;  %p8280_p7 = scmp.lt.s32.totalorder %s8274_s2, %s8274_s2 }
  0x2f   :  { %p8281_p8 = por %p8280_p7, %p8279_p6 }
  0x31   :  { %p8282_p9 = pnand %p8281_p8, %p8275_p5 }
  0x33   :  { %8285 = shalt.err (!%p8282_p9)
}
  0x34   :  { %61 = dma.hbm_to_vmem [thread:$0]  %s10605_s4, 2560, %s56_s18, [#allocation6], %s8340_s20, %s8340_s20, %s8341_s21  }
  0x35   :  { %s8286_s26 = scalar_lea.hbm %s10610_s9, 2048 }
  0x36   :  { %p8287_p10 = scmp.ne.s32.totalorder %s10610_s9, %s8286_s26  ;;  %p8290_p11 = scmp.lt.u32.totalorder %s8286_s26, %s10610_s9 }
  0x38   :  { %p8292_p12 = pnand %p8290_p11, %p8287_p10 }
  0x3a   :  { %8295 = shalt.err (!%p8292_p12)
}
  0x3b   :  { %s8296_s25 = scalar_lea.vmem %s8454_s22, 2048  ;;  %p8301_p0 = scmp.lt.s32.totalorder %s8454_s22, %s8454_s22 }
  0x3c   :  { %p8297_p13 = scmp.ne.s32.totalorder %s8454_s22, %s8296_s25  ;;  %p8302_p1 = scmp.lt.s32.totalorder %s8296_s25, %s8296_s25 }
  0x3e   :  { %p8303_p2 = por %p8302_p1, %p8301_p0 }
  0x40   :  { %p8304_p3 = pnand %p8303_p2, %p8297_p13 }
  0x42   :  { %8307 = shalt.err (!%p8304_p3)
}
  0x43   :  { %81 = dma.hbm_to_vmem [thread:$0]  %s10610_s9, 2048, %s8454_s22, [#allocation9], %s8340_s20, %s8340_s20, %s8341_s21  }
  0x44   :  { %8330 = dma.done.wait [#allocation3], 2560  }
  0x45   :  { %8331 = vsyncadd [#allocation3], 4294964736 }
  0x46   :  { %8332 = dma.done.wait [#allocation6], 5120  }
  0x47   :  { %8333 = vsyncadd [#allocation6], 4294962176 }
  0x48   :  { %8334 = dma.done.wait [#allocation9], 2048  }
  0x49   :  { %8335 = vsyncadd [#allocation9], 4294965248  ;;  %vm167_vm0 = vcmask 130048   ;;  %v100_v0 = vld [vmem:[%s10601_s0] sm:$0xff]  ;;  %v101_v1 = vld [vmem:[%s10601_s0 + $0x8] sm:$0xff]  ;;  %vm6280_vm1 = vcmask 7168  }
  0x4a   :  { %v120_v2 = vld [vmem:[%s10602_s1] sm:$0xff]  ;;  %v7726_v3 = vpack.c.bf16 %v101_v1, %v100_v0  ;;  %v121_v4 = vld [vmem:[%s10602_s1 + $0x8] sm:$0xff]  ;;  %v102_v5 = vld [vmem:[%s10601_s0 + $0x10] sm:$0xff] }
  0x4b   :  { %7250 = vmatprep.mubr.msk.f32.mxu0 %vm167_vm0, %v120_v2  ;;  %v103_v6 = vld [vmem:[%s10601_s0 + $0x18] sm:$0xff]  ;;  %v978_v7 = vsel %vm167_vm0, %v120_v2, 0.0  ;;  %v104_v9 = vld [vmem:[%s10601_s0 + $0x20] sm:$0xff]  ;;  %v105_v10 = vld [vmem:[%s10601_s0 + $0x28] sm:$0xff]  ;;  %v981_v14 = vsel %vm167_vm0, %v121_v4, 0.0 }
  0x4c   :  { %v7730_v8 = vpack.c.bf16 %v103_v6, %v102_v5  ;;  %v122_v11 = vld [vmem:[%s10602_s1 + $0x10] sm:$0xff]  ;;  %979 = vadd.xlane.f32.xlu0 %v978_v7  ;;  %7727 = vmatprep.subr.bf16.mxu0 %v7726_v3  ;;  %v7734_v12 = vpack.c.bf16 %v105_v10, %v104_v9  ;;  %v108_v15 = vld [vmem:[%s10601_s0 + $0x40] sm:$0xff]  ;;  %v109_v16 = vld [vmem:[%s10601_s0 + $0x48] sm:$0xff] }
  0x4d   :  { %7257 = vmatprep.mubr.msk.f32.mxu1 %vm167_vm0, %v122_v11  ;;  %v984_v13 = vsel %vm167_vm0, %v122_v11, 0.0  ;;  %7729 = vmatpush3.bf16.msra.mxu0 %v7726_v3  ;;  %v8532_v17 = vld [vmem:[%s10602_s1 + $0x20] sm:$0xff]  ;;  %v7742_v18 = vpack.c.bf16 %v109_v16, %v108_v15  ;;  %v106_v19 = vld [vmem:[%s10601_s0 + $0x30] sm:$0xff]  ;;  %v107_v20 = vld [vmem:[%s10601_s0 + $0x38] sm:$0xff] }
  0x4e   :  { %7731 = vmatprep.subr.bf16.mxu1 %v7730_v8  ;;  %7735 = vmatprep.subr.bf16.mxu0 %v7734_v12  ;;  %v123_v21 = vld [vmem:[%s10602_s1 + $0x18] sm:$0xff]  ;;  %v7738_v22 = vpack.c.bf16 %v107_v20, %v106_v19  ;;  %v112_v23 = vld [vmem:[%s10601_s0 + $0x60] sm:$0xff]  ;;  %v113_v24 = vld [vmem:[%s10601_s0 + $0x68] sm:$0xff]  ;;  %v990_v54 = vsel %vm167_vm0, %v8532_v17, 0.0 }
  0x4f   :  { %7733 = vmatpush3.bf16.msra.mxu1 %v7730_v8  ;;  %985 = vadd.xlane.f32.xlu1 %v984_v13  ;;  %v8553_v25 = vld [vmem:[%s10602_s1 + $0x30] sm:$0xff]  ;;  %v125_v26 = vld [vmem:[%s10602_s1 + $0x28] sm:$0xff]  ;;  %v8564_v27 = vld [vmem:[%s10602_s1 + $0x40] sm:$0xff]  ;;  %v7750_v28 = vpack.c.bf16 %v113_v24, %v112_v23  ;;  %v987_v37 = vsel %vm167_vm0, %v123_v21, 0.0 }
  0x50   :  { %982 = vadd.xlane.f32.xlu0 %v981_v14  ;;  %7251 = vmatmul.mubr.msk.f32.vlgmr.msra.gmra.mrb[0].mxu0 %vm167_vm0, %v121_v4  ;;  %v110_v29 = vld [vmem:[%s10601_s0 + $0x50] sm:$0xff]  ;;  %v111_v30 = vld [vmem:[%s10601_s0 + $0x58] sm:$0xff]  ;;  %v116_v31 = vld [vmem:[%s10601_s0 + $0x80] sm:$0xff]  ;;  %v993_v51 = vsel %vm167_vm0, %v125_v26, 0.0  ;;  %v996_v57 = vsel %vm167_vm0, %v8553_v25, 0.0  ;;  %v1002_v59 = vsel %vm167_vm0, %v8564_v27, 0.0 }
  0x51   :  { %7737 = vmatpush3.bf16.msra.mxu0 %v7734_v12  ;;  %7264 = vmatprep.mubr.msk.f32.mxu0 %vm167_vm0, %v8532_v17  ;;  %v117_v32 = vld [vmem:[%s10601_s0 + $0x88] sm:$0xff]  ;;  %v7746_v33 = vpack.c.bf16 %v111_v30, %v110_v29  ;;  %v127_v34 = vld [vmem:[%s10602_s1 + $0x38] sm:$0xff]  ;;  %v114_v35 = vld [vmem:[%s10601_s0 + $0x70] sm:$0xff] }
  0x52   :  { %7258 = vmatmul.mubr.msk.f32.vlgmr.msra.gmra.mrb[0].mxu1 %vm167_vm0, %v123_v21  ;;  %7743 = vmatprep.subr.bf16.mxu0 %v7742_v18  ;;  %v115_v36 = vld [vmem:[%s10601_s0 + $0x78] sm:$0xff]  ;;  %v129_v38 = vld [vmem:[%s10602_s1 + $0x48] sm:$0xff]  ;;  %v132_v39 = vld [vmem:[%s10602_s1 + $0x60] sm:$0xff]  ;;  %v7758_v40 = vpack.c.bf16 %v117_v32, %v116_v31  ;;  %v999_v56 = vsel %vm167_vm0, %v127_v34, 0.0 }
  0x53   :  { %7739 = vmatprep.subr.bf16.mxu1 %v7738_v22  ;;  %7271 = vmatprep.mubr.msk.f32.mxu1 %vm167_vm0, %v8553_v25  ;;  %v130_v41 = vld [vmem:[%s10602_s1 + $0x50] sm:$0xff]  ;;  %v7754_v42 = vpack.c.bf16 %v115_v36, %v114_v35  ;;  %v119_v44 = vld [vmem:[%s10601_s0 + $0x98] sm:$0xff]  ;;  %v133_v46 = vld [vmem:[%s10602_s1 + $0x68] sm:$0xff]  ;;  %v1005_v58 = vsel %vm167_vm0, %v129_v38, 0.0  ;;  %v1014_v63 = vsel %vm167_vm0, %v132_v39, 0.0 }
  0x54   :  { %7265 = vmatmul.mubr.msk.f32.vlgmr.msra.gmra.mrb[2].mxu0 %vm167_vm0, %v125_v26  ;;  %7741 = vmatpush3.bf16.msra.mxu1 %v7738_v22  ;;  %v118_v43 = vld [vmem:[%s10601_s0 + $0x90] sm:$0xff]  ;;  %v131_v45 = vld [vmem:[%s10602_s1 + $0x58] sm:$0xff]  ;;  %v136_v47 = vld [vmem:[%s10602_s1 + $0x80] sm:$0xff]  ;;  %v1008_v61 = vsel %vm167_vm0, %v130_v41, 0.0  ;;  %v1017_v62 = vsel %vm167_vm0, %v133_v46, 0.0 }
  0x55   :  { %7745 = vmatpush3.bf16.msra.mxu0 %v7742_v18  ;;  %7278 = vmatprep.mubr.msk.f32.mxu0 %vm167_vm0, %v8564_v27  ;;  %v7762_v48 = vpack.c.bf16 %v119_v44, %v118_v43  ;;  %v134_v49 = vld [vmem:[%s10602_s1 + $0x70] sm:$0xff]  ;;  %v135_v50 = vld [vmem:[%s10602_s1 + $0x78] sm:$0xff]  ;;  %v137_v52 = vld [vmem:[%s10602_s1 + $0x88] sm:$0xff]  ;;  %v1011_v60 = vsel %vm167_vm0, %v131_v45, 0.0  ;;  %v1026_v3 = vsel %vm167_vm0, %v136_v47, 0.0  ;;  %v8344_v44 = vmov 0  }
  0x56   :  { %7751 = vmatprep.subr.bf16.mxu0 %v7750_v28  ;;  %7747 = vmatprep.subr.bf16.mxu1 %v7746_v33  ;;  %v138_v53 = vld [vmem:[%s10602_s1 + $0x90] sm:$0xff]  ;;  %v139_v55 = vld [vmem:[%s10602_s1 + $0x98] sm:$0xff]  ;;  %v1023_v0 = vsel %vm167_vm0, %v135_v50, 0.0  ;;  %v1020_v1 = vsel %vm167_vm0, %v134_v49, 0.0  ;;  %v1029_v2 = vsel %vm167_vm0, %v137_v52, 0.0  ;;  %v140_v6 = vld [vmem:[#allocation2] sm:$0xff] }
  0x57   :  { %7272 = vmatmul.mubr.msk.f32.vlgmr.msra.gmra.mrb[2].mxu1 %vm167_vm0, %v127_v34  ;;  %988 = vadd.xlane.f32.xlu1 %v987_v37  ;;  %v1035_v4 = vsel %vm167_vm0, %v139_v55, 0.0  ;;  %v1032_v5 = vsel %vm167_vm0, %v138_v53, 0.0  ;;  %v142_v7 = vld [vmem:[#allocation2 + $0x10] sm:$0xff]  ;;  %v8665_v8 = vld [vmem:[#allocation2 + $0x8] sm:$0xff]  ;;  %v8669_v10 = vld [vmem:[#allocation2 + $0x18] sm:$0xff]  ;;  %v1928_v20 = vsel %vm167_vm0, %v140_v6, 0.0 }
  0x58   :  { %7279 = vmatmul.mubr.msk.f32.vlgmr.msra.gmra.mrb[4].mxu0 %vm167_vm0, %v129_v38  ;;  %7749 = vmatpush3.bf16.msra.mxu1 %v7746_v33  ;;  %v1931_v9 = vsel %vm167_vm0, %v8665_v8, 0.0  ;;  %v1937_v11 = vsel %vm167_vm0, %v8669_v10, 0.0  ;;  %v8673_v12 = vld [vmem:[#allocation2 + $0x28] sm:$0xff]  ;;  %v8677_v14 = vld [vmem:[#allocation2 + $0x38] sm:$0xff]  ;;  %v1934_v23 = vsel %vm167_vm0, %v142_v7, 0.0  ;;  %v8695_v24 = vld [vmem:[#allocation2 + $0x20] sm:$0xff] }
  0x59   :  { %7753 = vmatpush3.bf16.msra.mxu0 %v7750_v28  ;;  %7292 = vmatprep.mubr.msk.f32.mxu0 %vm167_vm0, %v132_v39  ;;  %v1943_v13 = vsel %vm167_vm0, %v8673_v12, 0.0  ;;  %v1949_v15 = vsel %vm167_vm0, %v8677_v14, 0.0  ;;  %v8681_v16 = vld [vmem:[#allocation2 + $0x48] sm:$0xff]  ;;  %v8685_v18 = vld [vmem:[#allocation2 + $0x58] sm:$0xff]  ;;  %v1940_v27 = vsel %vm167_vm0, %v8695_v24, 0.0  ;;  %v8703_v28 = vld [vmem:[#allocation2 + $0x30] sm:$0xff] }
  0x5a   :  { %7759 = vmatprep.subr.bf16.mxu0 %v7758_v40  ;;  %7285 = vmatprep.mubr.msk.f32.mxu1 %vm167_vm0, %v130_v41  ;;  %v1955_v17 = vsel %vm167_vm0, %v8681_v16, 0.0  ;;  %v1961_v19 = vsel %vm167_vm0, %v8685_v18, 0.0  ;;  %v8690_v21 = vld [vmem:[#allocation2 + $0x68] sm:$0xff]  ;;  %v8697_v25 = vld [vmem:[#allocation2 + $0x78] sm:$0xff]  ;;  %v1946_v31 = vsel %vm167_vm0, %v8703_v28, 0.0  ;;  %v8711_v32 = vld [vmem:[#allocation2 + $0x40] sm:$0xff] }
  0x5b   :  { %7286 = vmatmul.mubr.msk.f32.vlgmr.msra.gmra.mrb[4].mxu1 %vm167_vm0, %v131_v45  ;;  %7755 = vmatprep.subr.bf16.mxu1 %v7754_v42  ;;  %v1967_v22 = vsel %vm167_vm0, %v8690_v21, 0.0  ;;  %v1973_v26 = vsel %vm167_vm0, %v8697_v25, 0.0  ;;  %v8705_v29 = vld [vmem:[#allocation2 + $0x88] sm:$0xff]  ;;  %v8713_v33 = vld [vmem:[#allocation2 + $0x98] sm:$0xff]  ;;  %v1952_v35 = vsel %vm167_vm0, %v8711_v32, 0.0  ;;  %v8719_v36 = vld [vmem:[#allocation2 + $0x50] sm:$0xff] }
  0x5c   :  { %7293 = vmatmul.mubr.msk.f32.vlgmr.msra.gmra.mrb[6].mxu0 %vm167_vm0, %v133_v46  ;;  %7757 = vmatpush3.bf16.msra.mxu1 %v7754_v42  ;;  %v1979_v30 = vsel %vm167_vm0, %v8705_v29, 0.0  ;;  %v1985_v34 = vsel %vm167_vm0, %v8713_v33, 0.0  ;;  %v1958_v37 = vsel %vm167_vm0, %v8719_v36, 0.0  ;;  %v8723_v38 = vld [vmem:[#allocation2 + $0x60] sm:$0xff]  ;;  %v2541_v45 = vld [vmem:[%s10606_s5 + $0x8] sm:$0xff]  ;;  %v8738_v46 = vld [vmem:[#allocation2 + $0x90] sm:$0xff] }
  0x5d   :  { %7761 = vmatpush3.bf16.msra.mxu0 %v7758_v40  ;;  %7306 = vmatprep.mubr.msk.f32.mxu0 %vm167_vm0, %v136_v47  ;;  %v1964_v39 = vsel %vm167_vm0, %v8723_v38, 0.0  ;;  %v8727_v40 = vld [vmem:[#allocation2 + $0x70] sm:$0xff]  ;;  %v8731_v42 = vld [vmem:[#allocation2 + $0x80] sm:$0xff]  ;;  %v1982_v47 = vsel %vm167_vm0, %v8738_v46, 0.0 }
  0x5e   :  { %7299 = vmatprep.mubr.msk.f32.mxu1 %vm167_vm0, %v134_v49  ;;  %7763 = vmatprep.subr.bf16.mxu1 %v7762_v48  ;;  %v1970_v41 = vsel %vm167_vm0, %v8727_v40, 0.0  ;;  %v1976_v43 = vsel %vm167_vm0, %v8731_v42, 0.0 }
  0x5f   :  { %7300 = vmatmul.mubr.msk.f32.vlgmr.msra.gmra.mrb[6].mxu1 %vm167_vm0, %v135_v50  ;;  %994 = vadd.xlane.f32.xlu1 %v993_v51  ;;  %v2543_v50 = vld [vmem:[%s10606_s5 + $0x18] sm:$0xff] }
  0x60   :  { %7307 = vmatmul.mubr.msk.f32.vlgmr.msra.gmra.mrb[8].mxu0 %vm167_vm0, %v137_v52  ;;  %7765 = vmatpush3.bf16.msra.mxu1 %v7762_v48  ;;  %v2542_v48 = vld [vmem:[%s10606_s5 + $0x10] sm:$0xff]  ;;  %v8755_v52 = vld [vmem:[%s10607_s6 + $0x8] sm:$0xff] }
  0x61   :  { %7313 = vmatprep.mubr.msk.f32.mxu1 %vm167_vm0, %v138_v53  ;;  %991 = vadd.xlane.f32.xlu0 %v990_v54  ;;  %v8760_v53 = vld [vmem:[%s10607_s6] sm:$0xff]  ;;  %v6282_v54 = vsel %vm6280_vm1, %v8755_v52, 0.0 }
  0x62   :  { %7320 = vmatprep.mubr.msk.f32.mxu0 %vm167_vm0, %v140_v6  ;;  %7976 = vset.pattern.permute.xlu1 %v8344_v44  ;;  %v2545_v6 = vld [vmem:[%s10606_s5 + $0x28] sm:$0xff] }
  0x63   :  { %7314 = vmatmul.mubr.msk.f32.vlgmr.msra.gmra.mrb[8].mxu1 %vm167_vm0, %v139_v55  ;;  %1000 = vadd.xlane.f32.xlu1 %v999_v56  ;;  %v6281_v55 = vsel %vm6280_vm1, %v8760_v53, 0.0  ;;  %v2544_v56 = vld [vmem:[%s10606_s5 + $0x20] sm:$0xff] }
  0x64   :  { %7327 = vmatprep.mubr.msk.f32.mxu1 %vm167_vm0, %v142_v7  ;;  %7975 = vset.pattern.permute.xlu0 %v8344_v44  ;;  %v2550_v44 = vld [vmem:[%s10606_s5 + $0x50] sm:$0xff] }
  0x65   :  { %997 = vadd.xlane.f32.xlu0 %v996_v57  ;;  %v8769_v57 = vadd.f32 %v6282_v54, %v6281_v55  ;;  %v8885_v54 = vld [vmem:[%s10607_s6 + $0x50] sm:$0xff] }
  0x66   :  { %v6326_v55 = vsel %vm6280_vm1, %v8885_v54, 0.0 }
  0x67   :  { %1006 = vadd.xlane.f32.xlu1 %v1005_v58  ;;  %v8774_v58 = vld [vmem:[%s10607_s6 + $0x18] sm:$0xff] }
  0x69   :  { %1003 = vadd.xlane.f32.xlu0 %v1002_v59  ;;  %v8779_v59 = vld [vmem:[%s10607_s6 + $0x10] sm:$0xff] }
  0x6b   :  { %1012 = vadd.xlane.f32.xlu1 %v1011_v60  ;;  %v6291_v60 = vsel %vm6280_vm1, %v8774_v58, 0.0 }
  0x6d   :  { %1009 = vadd.xlane.f32.xlu0 %v1008_v61  ;;  %v6290_v61 = vsel %vm6280_vm1, %v8779_v59, 0.0 }
  0x6f   :  { %1018 = vadd.xlane.f32.xlu1 %v1017_v62  ;;  %v8788_v62 = vld [vmem:[%s10607_s6 + $0x28] sm:$0xff] }
  0x71   :  { %1015 = vadd.xlane.f32.xlu0 %v1014_v63 }
  0x73   :  { %1024 = vadd.xlane.f32.xlu1 %v1023_v0  ;;  %v6300_v0 = vsel %vm6280_vm1, %v8788_v62, 0.0 }
  0x75   :  { %1021 = vadd.xlane.f32.xlu0 %v1020_v1  ;;  %v8797_v1 = vld [vmem:[%s10607_s6 + $0x20] sm:$0xff] }
  0x77   :  { %1030 = vadd.xlane.f32.xlu1 %v1029_v2 }
  0x79   :  { %1027 = vadd.xlane.f32.xlu0 %v1026_v3  ;;  %v8801_v3 = vadd.f32 %v6291_v60, %v6290_v61  ;;  %v8894_v60 = vld [vmem:[%s10607_s6 + $0x68] sm:$0xff]  ;;  %v8899_v61 = vld [vmem:[%s10607_s6 + $0x60] sm:$0xff] }
  0x7b   :  { %1036 = vadd.xlane.f32.xlu1 %v1035_v4  ;;  %10698 = vst [vmem:[#allocation19_spill] sm:$0xff] %v8801_v3  ;;  %v6299_v4 = vsel %vm6280_vm1, %v8797_v1, 0.0 }
  0x7d   :  { %1033 = vadd.xlane.f32.xlu0 %v1032_v5  ;;  %v8808_v5 = vld [vmem:[%s10607_s6 + $0x38] sm:$0xff] }
  0x7e   :  { %v6309_v7 = vsel %vm6280_vm1, %v8808_v5, 0.0 }
  0x7f   :  { %1932 = vadd.xlane.f32.xlu1 %v1931_v9  ;;  %v8818_v9 = vld [vmem:[%s10607_s6 + $0x30] sm:$0xff] }
  0x81   :  { %1929 = vadd.xlane.f32.xlu0 %v1928_v20 }
  0x83   :  { %1938 = vadd.xlane.f32.xlu1 %v1937_v11  ;;  %v8820_v11 = vadd.f32 %v6300_v0, %v6299_v4  ;;  %v2552_v0 = vld [vmem:[%s10606_s5 + $0x60] sm:$0xff]  ;;  %v6336_v4 = vsel %vm6280_vm1, %v8894_v60, 0.0 }
  0x85   :  { %1935 = vadd.xlane.f32.xlu0 %v1934_v23  ;;  %v8839_v23 = vld [vmem:[%s10607_s6 + $0x48] sm:$0xff] }
  0x87   :  { %1944 = vadd.xlane.f32.xlu1 %v1943_v13  ;;  %v6308_v13 = vsel %vm6280_vm1, %v8818_v9, 0.0 }
  0x89   :  { %1941 = vadd.xlane.f32.xlu0 %v1940_v27  ;;  %v6318_v27 = vsel %vm6280_vm1, %v8839_v23, 0.0 }
  0x8b   :  { %1950 = vadd.xlane.f32.xlu1 %v1949_v15  ;;  %v8824_v15 = vadd.f32 %v6309_v7, %v6308_v13  ;;  %v2553_v7 = vld [vmem:[%s10606_s5 + $0x68] sm:$0xff]  ;;  %v8914_v13 = vld [vmem:[%s10607_s6 + $0x78] sm:$0xff] }
  0x8d   :  { %1947 = vadd.xlane.f32.xlu0 %v1946_v31  ;;  %10699 = vst [vmem:[#allocation20_spill] sm:$0xff] %v8824_v15  ;;  %v4527_v15 = vld [vmem:[#allocation5 + $0x50] sm:$0xff] }
  0x8f   :  { %1956 = vadd.xlane.f32.xlu1 %v1955_v17 }
  0x91   :  { %1953 = vadd.xlane.f32.xlu0 %v1952_v35 }
  0x93   :  { %1962 = vadd.xlane.f32.xlu1 %v1961_v19  ;;  %v2546_v19 = vld [vmem:[%s10606_s5 + $0x30] sm:$0xff] }
  0x95   :  { %1959 = vadd.xlane.f32.xlu0 %v1958_v37  ;;  %v2548_v37 = vld [vmem:[%s10606_s5 + $0x40] sm:$0xff] }
  0x97   :  { %1968 = vadd.xlane.f32.xlu1 %v1967_v22  ;;  %v2547_v22 = vld [vmem:[%s10606_s5 + $0x38] sm:$0xff] }
  0x99   :  { %1965 = vadd.xlane.f32.xlu0 %v1964_v39 }
  0x9b   :  { %1974 = vadd.xlane.f32.xlu1 %v1973_v26  ;;  %v2540_v26 = vld [vmem:[%s10606_s5] sm:$0xff] }
  0x9d   :  { %1971 = vadd.xlane.f32.xlu0 %v1970_v41  ;;  %v2549_v41 = vld [vmem:[%s10606_s5 + $0x48] sm:$0xff] }
  0x9f   :  { %1980 = vadd.xlane.f32.xlu1 %v1979_v30  ;;  %v8849_v30 = vld [vmem:[%s10607_s6 + $0x40] sm:$0xff] }
  0xa1   :  { %1977 = vadd.xlane.f32.xlu0 %v1976_v43 }
  0xa3   :  { %1986 = vadd.xlane.f32.xlu1 %v1985_v34  ;;  %v6317_v34 = vsel %vm6280_vm1, %v8849_v30, 0.0 }
  0xa4   :  { %v8860_v39 = vadd.f32 %v6318_v27, %v6317_v34  ;;  %v8925_v27 = vld [vmem:[%s10607_s6 + $0x70] sm:$0xff] }
  0xa5   :  { %1983 = vadd.xlane.f32.xlu0 %v1982_v47 }
  0xa6   :  { %10704 = vst [vmem:[#allocation25_spill] sm:$0xff] %v8860_v39 }
  0xb4   :  { %2587 = vperm.xlu1 %7976, %v2541_v45   ;;  %v8873_v45 = vld [vmem:[%s10607_s6 + $0x58] sm:$0xff] }
  0xb8   :  { %2592 = vperm.xlu1 %7976, %v2542_v48   ;;  %v2551_v48 = vld [vmem:[%s10606_s5 + $0x58] sm:$0xff] }
  0xbb   :  { %2582 = vperm.xlu0 %7975, %v2540_v26   ;;  %v6345_v26 = vsel %vm6280_vm1, %v8914_v13, 0.0 }
  0xbc   :  { %2597 = vperm.xlu1 %7976, %v2543_v50   ;;  %v6327_v50 = vsel %vm6280_vm1, %v8873_v45, 0.0 }
  0xbf   :  { %2627 = vperm.xlu0 %7975, %v2549_v41   ;;  %v2554_v41 = vld [vmem:[%s10606_s5 + $0x70] sm:$0xff] }
  0xc0   :  { %2602 = vperm.xlu1 %7976, %v2544_v56   ;;  %v8889_v56 = vadd.f32 %v6327_v50, %v6326_v55  ;;  %v2556_v55 = vld [vmem:[%s10606_s5 + $0x80] sm:$0xff] }
  0xc2   :  { %10707 = vst [vmem:[#allocation28_spill] sm:$0xff] %v8889_v56 }
  0xc3   :  { %2637 = vperm.xlu0 %7975, %v2551_v48   ;;  %v2555_v48 = vld [vmem:[%s10606_s5 + $0x78] sm:$0xff] }
  0xc4   :  { %2607 = vperm.xlu1 %7976, %v2545_v6   ;;  %v6335_v6 = vsel %vm6280_vm1, %v8899_v61, 0.0 }
  0xc7   :  { %2647 = vperm.xlu0 %7975, %v2553_v7  }
  0xc8   :  { %2612 = vperm.xlu1 %7976, %v2546_v19  }
  0xcb   :  { %2657 = vperm.xlu0 %7975, %v2555_v48  }
  0xcc   :  { %2617 = vperm.xlu1 %7976, %v2547_v22   ;;  %v8918_v22 = vadd.f32 %v6336_v4, %v6335_v6  ;;  %v2557_v4 = vld [vmem:[%s10606_s5 + $0x88] sm:$0xff] }
  0xce   :  { %10709 = vst [vmem:[#allocation30_spill] sm:$0xff] %v8918_v22  ;;  %v10730_v22 = vmov 0.0  }
  0xcf   :  { %2667 = vperm.xlu0 %7975, %v2557_v4  }
  0xd0   :  { %2622 = vperm.xlu1 %7976, %v2548_v37   ;;  %v6344_v37 = vsel %vm6280_vm1, %v8925_v27, 0.0 }
  0xd4   :  { %2632 = vperm.xlu1 %7976, %v2550_v44   ;;  %v8934_v44 = vadd.f32 %v6345_v26, %v6344_v37  ;;  %v2558_v26 = vld [vmem:[%s10606_s5 + $0x90] sm:$0xff] }
  0xd6   :  { %10711 = vst [vmem:[#allocation32_spill] sm:$0xff] %v8934_v44  ;;  %v3535_v44 = vld [vmem:[#allocation8 + $0x28] sm:$0xff] }
  0xd8   :  { %2642 = vperm.xlu1 %7976, %v2552_v0  }
  0xd9   :  { %v8750_v51 = vpop.xlane.xlu0 %979 }
  0xda   :  { %10695 = vst [vmem:[#allocation16_spill] sm:$0xff] %v8750_v51  ;;  %vm1038_vm3 = vcmp.eq.f32.partialorder %v8750_v51, 0.0 }
  0xdb   :  { %v1058_v7 = vsel %vm1038_vm3, 1.0, %v8750_v51 }
  0xdc   :  { %v8745_v49 = vpop.xlane.xlu1 %985  ;;  %2652 = vperm.xlu1 %7976, %v2554_v41   ;;  %v2559_v41 = vld [vmem:[%s10606_s5 + $0x98] sm:$0xff] }
  0xdd   :  { %10694 = vst [vmem:[#allocation15_spill] sm:$0xff] %v8745_v49  ;;  %v8799_v2 = vpop.xlane.xlu0 %982  ;;  %vm1040_vm5 = vcmp.eq.f32.partialorder %v8745_v49, 0.0  ;;  %2677 = vperm.xlu0 %7975, %v2559_v41  }
  0xde   :  { %10697 = vst [vmem:[#allocation18_spill] sm:$0xff] %v8799_v2  ;;  %vm1039_vm2 = vcmp.eq.f32.partialorder %v8799_v2, 0.0  ;;  %v1060_v48 = vsel %vm1040_vm5, 1.0, %v8745_v49  ;;  %v3530_v49 = vld [vmem:[#allocation8] sm:$0xff] }
  0xdf   :  { %v1059_v6 = vsel %vm1039_vm2, 1.0, %v8799_v2 }
  0xe0   :  { %2662 = vperm.xlu1 %7976, %v2556_v55   ;;  %7977 = vrcp.f32 %v1059_v6 }
  0xe1   :  { %7979 = vrcp.f32 %v1058_v7  ;;  %6403 = vperm.xlu0 %7975, %v8760_v53  }
  0xe4   :  { %v8790_v63 = vpop.xlane.xlu1 %988  ;;  %2672 = vperm.xlu1 %7976, %v2558_v26  }
  0xe5   :  { %10696 = vst [vmem:[#allocation17_spill] sm:$0xff] %v8790_v63  ;;  %vm1041_vm4 = vcmp.eq.f32.partialorder %v8790_v63, 0.0  ;;  %6418 = vperm.xlu0 %7975, %v8774_v58  }
  0xe6   :  { %v1061_v37 = vsel %vm1041_vm4, 1.0, %v8790_v63 }
  0xe7   :  { %7981 = vrcp.f32 %v1061_v37 }
  0xe8   :  { %7983 = vrcp.f32 %v1060_v48  ;;  %6408 = vperm.xlu1 %7976, %v8755_v52  }
  0xe9   :  { %6428 = vperm.xlu0 %7975, %v8788_v62  }
  0xea   :  { %v7978_v53 = vpop.eup %7977 }
  0xec   :  { %v8826_v17 = vpop.xlane.xlu1 %994  ;;  %6413 = vperm.xlu1 %7976, %v8779_v59  }
  0xed   :  { %10700 = vst [vmem:[#allocation21_spill] sm:$0xff] %v8826_v17  ;;  %vm1043_vm6 = vcmp.eq.f32.partialorder %v8826_v17, 0.0  ;;  %6438 = vperm.xlu0 %7975, %v8808_v5  }
  0xee   :  { %v8831_v20 = vpop.xlane.xlu0 %991  ;;  %v1063_v4 = vsel %vm1043_vm6, 1.0, %v8826_v17 }
  0xef   :  { %10701 = vst [vmem:[#allocation22_spill] sm:$0xff] %v8831_v20  ;;  %vm1042_vm7 = vcmp.eq.f32.partialorder %v8831_v20, 0.0  ;;  %7985 = vrcp.f32 %v1063_v4 }
  0xf0   :  { %v8851_v31 = vpop.xlane.xlu1 %1000  ;;  %v1062_v63 = vsel %vm1042_vm7, 1.0, %v8831_v20  ;;  %6423 = vperm.xlu1 %7976, %v8797_v1  }
  0xf1   :  { %10702 = vst [vmem:[#allocation23_spill] sm:$0xff] %v8851_v31  ;;  %vm1045_vm8 = vcmp.eq.f32.partialorder %v8851_v31, 0.0  ;;  %7987 = vrcp.f32 %v1062_v63  ;;  %6448 = vperm.xlu0 %7975, %v8839_v23  }
  0xf2   :  { %v8855_v35 = vpop.xlane.xlu0 %997  ;;  %v1065_v6 = vsel %vm1045_vm8, 1.0, %v8851_v31  ;;  %vm2074_vm8 = vcmask 261120  }
  0xf3   :  { %10703 = vst [vmem:[#allocation24_spill] sm:$0xff] %v8855_v35  ;;  %vm1044_vm9 = vcmp.eq.f32.partialorder %v8855_v35, 0.0  ;;  %7989 = vrcp.f32 %v1065_v6 }
  0xf4   :  { %v8865_v43 = vpop.xlane.xlu1 %1006  ;;  %v1064_v7 = vsel %vm1044_vm9, 1.0, %v8855_v35  ;;  %6433 = vperm.xlu1 %7976, %v8818_v9  }
  0xf5   :  { %10705 = vst [vmem:[#allocation26_spill] sm:$0xff] %v8865_v43  ;;  %vm1047_vm10 = vcmp.eq.f32.partialorder %v8865_v43, 0.0  ;;  %7991 = vrcp.f32 %v1064_v7  ;;  %6458 = vperm.xlu0 %7975, %v8873_v45  }
  0xf6   :  { %v8875_v47 = vpop.xlane.xlu0 %1003  ;;  %v1067_v17 = vsel %vm1047_vm10, 1.0, %v8865_v43 }
  0xf7   :  { %10706 = vst [vmem:[#allocation27_spill] sm:$0xff] %v8875_v47  ;;  %vm1046_vm11 = vcmp.eq.f32.partialorder %v8875_v47, 0.0  ;;  %7993 = vrcp.f32 %v1067_v17  ;;  %v7980_v17 = vpop.eup %7979 }
  0xf8   :  { %v8916_v19 = vpop.xlane.xlu1 %1012  ;;  %v1066_v26 = vsel %vm1046_vm11, 1.0, %v8875_v47  ;;  %6443 = vperm.xlu1 %7976, %v8849_v30  }
  0xf9   :  { %10708 = vst [vmem:[#allocation29_spill] sm:$0xff] %v8916_v19  ;;  %vm1049_vm12 = vcmp.eq.f32.partialorder %v8916_v19, 0.0  ;;  %7995 = vrcp.f32 %v1066_v26  ;;  %6468 = vperm.xlu0 %7975, %v8894_v60  }
  0xfa   :  { %v8927_v34 = vpop.xlane.xlu0 %1009  ;;  %v1069_v41 = vsel %vm1049_vm12, 1.0, %v8916_v19 }
  0xfb   :  { %10710 = vst [vmem:[#allocation31_spill] sm:$0xff] %v8927_v34  ;;  %vm1048_vm13 = vcmp.eq.f32.partialorder %v8927_v34, 0.0  ;;  %7997 = vrcp.f32 %v1069_v41 }
  0xfc   :  { %v8940_v50 = vpop.xlane.xlu1 %1018  ;;  %v1068_v48 = vsel %vm1048_vm13, 1.0, %v8927_v34  ;;  %6453 = vperm.xlu1 %7976, %v8885_v54  }
  0xfd   :  { %10712 = vst [vmem:[#allocation33_spill] sm:$0xff] %v8940_v50  ;;  %vm1051_vm14 = vcmp.eq.f32.partialorder %v8940_v50, 0.0  ;;  %7999 = vrcp.f32 %v1068_v48  ;;  %6478 = vperm.xlu0 %7975, %v8914_v13  }
  0xfe   :  { %v8946_v0 = vpop.xlane.xlu0 %1015  ;;  %v1071_v52 = vsel %vm1051_vm14, 1.0, %v8940_v50  ;;  %v7982_v50 = vpop.eup %7981 }
  0xff   :  { %10713 = vst [vmem:[#allocation34_spill] sm:$0xff] %v8946_v0  ;;  %vm1050_vm15 = vcmp.eq.f32.partialorder %v8946_v0, 0.0  ;;  %8001 = vrcp.f32 %v1071_v52 }
 0x100   :  { %v8966_v55 = vpop.xlane.xlu1 %1024  ;;  %v1070_v4 = vsel %vm1050_vm15, 1.0, %v8946_v0  ;;  %v7984_v0 = vpop.eup %7983  ;;  %6463 = vperm.xlu1 %7976, %v8899_v61  }
 0x101   :  { %10714 = vst [vmem:[#allocation35_spill] sm:$0xff] %v8966_v55  ;;  %vm1053_vm2 = vcmp.eq.f32.partialorder %v8966_v55, 0.0  ;;  %8003 = vrcp.f32 %v1070_v4  ;;  %v7986_v48 = vpop.eup %7985 }
 0x102   :  { %v8970_v2 = vpop.xlane.xlu0 %1021  ;;  %v1073_v7 = vsel %vm1053_vm2, 1.0, %v8966_v55 }
 0x103   :  { %10715 = vst [vmem:[#allocation36_spill] sm:$0xff] %v8970_v2  ;;  %vm1052_vm3 = vcmp.eq.f32.partialorder %v8970_v2, 0.0  ;;  %8005 = vrcp.f32 %v1073_v7 }
 0x104   :  { %v8983_v37 = vpop.xlane.xlu1 %1030  ;;  %v1072_v59 = vsel %vm1052_vm3, 1.0, %v8970_v2  ;;  %6473 = vperm.xlu1 %7976, %v8925_v27  }
 0x105   :  { %10716 = vst [vmem:[#allocation37_spill] sm:$0xff] %v8983_v37  ;;  %vm1055_vm4 = vcmp.eq.f32.partialorder %v8983_v37, 0.0  ;;  %8007 = vrcp.f32 %v1072_v59 }
 0x106   :  { %v8988_v63 = vpop.xlane.xlu0 %1027  ;;  %v1075_v58 = vsel %vm1055_vm4, 1.0, %v8983_v37 }
 0x107   :  { %10717 = vst [vmem:[#allocation38_spill] sm:$0xff] %v8988_v63  ;;  %vm1054_vm5 = vcmp.eq.f32.partialorder %v8988_v63, 0.0  ;;  %8009 = vrcp.f32 %v1075_v58 }
 0x108   :  { %v8997_v6 = vpop.xlane.xlu1 %1036  ;;  %v1074_v52 = vsel %vm1054_vm5, 1.0, %v8988_v63 }
 0x109   :  { %10718 = vst [vmem:[#allocation39_spill] sm:$0xff] %v8997_v6  ;;  %vm1057_vm6 = vcmp.eq.f32.partialorder %v8997_v6, 0.0  ;;  %8011 = vrcp.f32 %v1074_v52 }
 0x10a   :  { %v9002_v26 = vpop.xlane.xlu0 %1033  ;;  %v1077_v7 = vsel %vm1057_vm6, 1.0, %v8997_v6 }
 0x10b   :  { %10719 = vst [vmem:[#allocation40_spill] sm:$0xff] %v9002_v26  ;;  %vm1056_vm7 = vcmp.eq.f32.partialorder %v9002_v26, 0.0  ;;  %8013 = vrcp.f32 %v1077_v7 }
 0x123   :  { %v7252_v41 = vpop.f32.mrb[0].mxu0 }
 0x124   :  { %v9005_v34 = vmul.f32 %v7978_v53, %v7252_v41  ;;  %v240_v19 = vpop.f32.mrb[1].mxu0  ;;  %v7988_v53 = vpop.eup %7987 }
 0x125   :  { %v9012_v55 = vmul.f32 %v7980_v17, %v240_v19  ;;  %v7259_v4 = vpop.f32.mrb[0].mxu1  ;;  %v7990_v2 = vpop.eup %7989 }
 0x126   :  { %v9019_v41 = vmul.f32 %v7982_v50, %v7259_v4  ;;  %v321_v37 = vpop.f32.mrb[1].mxu1  ;;  %v7992_v63 = vpop.eup %7991  ;;  %v1076_v50 = vsel %vm1056_vm7, 1.0, %v9002_v26 }
 0x127   :  { %v7766_v1 = vpack.c.bf16 %v9005_v34, %v9012_v55  ;;  %v7266_v19 = vpop.f32.mrb[2].mxu0  ;;  %v9023_v17 = vmul.f32 %v7984_v0, %v321_v37  ;;  %v7994_v4 = vpop.eup %7993  ;;  %8015 = vrcp.f32 %v1076_v50 }
 0x128   :  { %v9028_v62 = vmul.f32 %v7986_v48, %v7266_v19  ;;  %v402_v59 = vpop.f32.mrb[3].mxu0  ;;  %v7996_v58 = vpop.eup %7995 }
 0x129   :  { %v7770_v0 = vpack.c.bf16 %v9019_v41, %v9023_v17  ;;  %v9036_v37 = vmul.f32 %v7988_v53, %v402_v59  ;;  %7767 = vmatprep.subr.bf16.mxu0 %v7766_v1  ;;  %v7998_v52 = vpop.eup %7997 }
 0x12a   :  { %7769 = vmatpush3.bf16.msra.mxu0 %v7766_v1  ;;  %v7273_v48 = vpop.f32.mrb[2].mxu1  ;;  %v8000_v47 = vpop.eup %7999 }
 0x12b   :  { %v7774_v19 = vpack.c.bf16 %v9028_v62, %v9036_v37  ;;  %v7280_v6 = vpop.f32.mrb[4].mxu0  ;;  %7771 = vmatprep.subr.bf16.mxu1 %v7770_v0  ;;  %v9041_v9 = vmul.f32 %v7990_v2, %v7273_v48  ;;  %v483_v26 = vpop.f32.mrb[3].mxu1 }
 0x12c   :  { %v9043_v53 = vmul.f32 %v7994_v4, %v7280_v6  ;;  %v564_v59 = vpop.f32.mrb[5].mxu0  ;;  %7773 = vmatpush3.bf16.msra.mxu1 %v7770_v0  ;;  %v9045_v5 = vmul.f32 %v7992_v63, %v483_v26  ;;  %v8002_v1 = vpop.eup %8001 }
 0x12d   :  { %v9048_v7 = vmul.f32 %v7996_v58, %v564_v59  ;;  %7321 = vmatmul.mubr.msk.f32.vlgmr.msra.gmra.mrb[10].mxu0 %vm167_vm0, %v8665_v8  ;;  %7775 = vmatprep.subr.bf16.mxu0 %v7774_v19  ;;  %v8004_v2 = vpop.eup %8003 }
 0x12e   :  { %7777 = vmatpush3.bf16.msra.mxu0 %v7774_v19  ;;  %v7778_v50 = vpack.c.bf16 %v9041_v9, %v9045_v5  ;;  %7334 = vmatprep.mubr.msk.f32.mxu0 %vm167_vm0, %v8695_v24  ;;  %v7287_v6 = vpop.f32.mrb[4].mxu1  ;;  %v8006_v63 = vpop.eup %8005 }
 0x12f   :  { %v7782_v30 = vpack.c.bf16 %v9043_v53, %v9048_v7  ;;  %v7294_v26 = vpop.f32.mrb[6].mxu0  ;;  %7328 = vmatmul.mubr.msk.f32.vlgmr.msra.gmra.mrb[10].mxu1 %vm167_vm0, %v8669_v10  ;;  %v9060_v4 = vmul.f32 %v7998_v52, %v7287_v6  ;;  %v645_v8 = vpop.f32.mrb[5].mxu1 }
 0x130   :  { %v8008_v0 = vpop.eup %8007  ;;  %v9063_v58 = vmul.f32 %v8002_v1, %v7294_v26  ;;  %v726_v48 = vpop.f32.mrb[7].mxu0  ;;  %7779 = vmatprep.subr.bf16.mxu1 %v7778_v50  ;;  %v9065_v24 = vmul.f32 %v8000_v47, %v645_v8  ;;  %7341 = vmatprep.mubr.msk.f32.mxu1 %vm167_vm0, %v8703_v28  ;;  %v161_v26 = vld [vmem:[%s10608_s7 + $0x8] sm:$0xff] }
 0x131   :  { %v8010_v19 = vpop.eup %8009  ;;  %v9069_v59 = vmul.f32 %v8004_v2, %v726_v48  ;;  %7335 = vmatmul.mubr.msk.f32.vlgmr.msra.gmra.mrb[12].mxu0 %vm167_vm0, %v8673_v12  ;;  %7783 = vmatprep.subr.bf16.mxu0 %v7782_v30 }
 0x132   :  { %v8012_v10 = vpop.eup %8011  ;;  %7785 = vmatpush3.bf16.msra.mxu0 %v7782_v30  ;;  %7348 = vmatprep.mubr.msk.f32.mxu0 %vm167_vm0, %v8711_v32  ;;  %v7786_v23 = vpack.c.bf16 %v9060_v4, %v9065_v24  ;;  %v7301_v47 = vpop.f32.mrb[6].mxu1  ;;  %v160_v32 = vld [vmem:[%s10608_s7] sm:$0xff] }
 0x133   :  { %v7790_v52 = vpack.c.bf16 %v9063_v58, %v9069_v59  ;;  %v7308_v28 = vpop.f32.mrb[8].mxu0  ;;  %7781 = vmatpush3.bf16.msra.mxu1 %v7778_v50  ;;  %v9079_v1 = vmul.f32 %v8006_v63, %v7301_v47  ;;  %v807_v2 = vpop.f32.mrb[7].mxu1 }
 0x134   :  { %v8014_v12 = vpop.eup %8013  ;;  %v9082_v6 = vmul.f32 %v8010_v19, %v7308_v28  ;;  %v888_v30 = vpop.f32.mrb[9].mxu0  ;;  %7787 = vmatprep.subr.bf16.mxu1 %v7786_v23  ;;  %v1112_v8 = vmul.f32 %v8008_v0, %v807_v2  ;;  %v7806_v0 = vpack.c.bf16 %v161_v26, %v160_v32 }
 0x135   :  { %v8016_v50 = vpop.eup %8015  ;;  %v1114_v63 = vmul.f32 %v8012_v10, %v888_v30  ;;  %7349 = vmatmul.mubr.msk.f32.vlgmr.msra.gmra.mrb[14].mxu0 %vm167_vm0, %v8681_v16  ;;  %7791 = vmatprep.subr.bf16.mxu0 %v7790_v52  ;;  %v162_v16 = vld [vmem:[%s10608_s7 + $0x10] sm:$0xff] }
 0x136   :  { %7793 = vmatpush3.bf16.msra.mxu0 %v7790_v52  ;;  %7362 = vmatprep.mubr.msk.f32.mxu0 %vm167_vm0, %v8723_v38  ;;  %v7794_v45 = vpack.c.bf16 %v9079_v1, %v1112_v8  ;;  %v7315_v48 = vpop.f32.mrb[8].mxu1  ;;  %v163_v38 = vld [vmem:[%s10608_s7 + $0x18] sm:$0xff] }
 0x137   :  { %v7798_v19 = vpack.c.bf16 %v9082_v6, %v1114_v63  ;;  %7342 = vmatmul.mubr.msk.f32.vlgmr.msra.gmra.mrb[12].mxu1 %vm167_vm0, %v8677_v14  ;;  %v1117_v54 = vmul.f32 %v8014_v12, %v7315_v48  ;;  %v969_v47 = vpop.f32.mrb[9].mxu1 }
 0x138   :  { %7789 = vmatpush3.bf16.msra.mxu1 %v7786_v23  ;;  %7355 = vmatprep.mubr.msk.f32.mxu1 %vm167_vm0, %v8719_v36  ;;  %v1116_v10 = vmul.f32 %v8016_v50, %v969_v47  ;;  %v7810_v36 = vpack.c.bf16 %v163_v38, %v162_v16 }
 0x139   :  { %7363 = vmatmul.mubr.msk.f32.vlgmr.msra.gmra.mrb[16].mxu0 %vm167_vm0, %v8690_v21  ;;  %7799 = vmatprep.subr.bf16.mxu0 %v7798_v19  ;;  %v1930_v21 = vpop.xlane.xlu0 %1929 }
 0x13a   :  { %7801 = vmatpush3.bf16.msra.mxu0 %v7798_v19  ;;  %7376 = vmatprep.mubr.msk.f32.mxu0 %vm167_vm0, %v8731_v42  ;;  %v7802_v14 = vpack.c.bf16 %v1117_v54, %v1116_v10  ;;  %vm1988_vm9 = vcmp.eq.f32.partialorder %v1930_v21, 0.0 }
 0x13b   :  { %7807 = vmatprep.subr.bf16.mxu0 %v7806_v0  ;;  %7356 = vmatmul.mubr.msk.f32.vlgmr.msra.gmra.mrb[14].mxu1 %vm167_vm0, %v8685_v18  ;;  %v6276_v18 = vld [vmem:[%s10607_s6 + $0x80] sm:$0xff]  ;;  %v2008_v13 = vsel %vm1988_vm9, 1.0, %v1930_v21 }
 0x13c   :  { %7795 = vmatprep.subr.bf16.mxu1 %v7794_v45  ;;  %7369 = vmatprep.mubr.msk.f32.mxu1 %vm167_vm0, %v8727_v40  ;;  %8017 = vrcp.f32 %v2008_v13 }
 0x13d   :  { %7377 = vmatmul.mubr.msk.f32.vlgmr.msra.gmra.mrb[18].mxu0 %vm167_vm0, %v8705_v29  ;;  %7797 = vmatpush3.bf16.msra.mxu1 %v7794_v45  ;;  %v1936_v29 = vpop.xlane.xlu0 %1935 }
 0x13e   :  { %7809 = vmatpush3.bf16.msra.mxu0 %v7806_v0  ;;  %7394 = vmatprep.mubr.msk.f32.mxu0 %vm2074_vm8, %v9012_v55  ;;  %vm1990_vm11 = vcmp.eq.f32.partialorder %v1936_v29, 0.0 }
 0x13f   :  { %7811 = vmatprep.subr.bf16.mxu0 %v7810_v36  ;;  %7803 = vmatprep.subr.bf16.mxu1 %v7802_v14  ;;  %v2010_v55 = vsel %vm1990_vm11, 1.0, %v1936_v29 }
 0x140   :  { %7370 = vmatmul.mubr.msk.f32.vlgmr.msra.gmra.mrb[16].mxu1 %vm167_vm0, %v8697_v25  ;;  %6483 = vperm.xlu1 %7976, %v6276_v18   ;;  %v1933_v25 = vpop.xlane.xlu1 %1932 }
 0x141   :  { %7805 = vmatpush3.bf16.msra.mxu1 %v7802_v14  ;;  %7383 = vmatprep.mubr.msk.f32.mxu1 %vm167_vm0, %v8738_v46  ;;  %v1942_v40 = vpop.xlane.xlu0 %1941  ;;  %vm1989_vm10 = vcmp.eq.f32.partialorder %v1933_v25, 0.0 }
 0x142   :  { %7813 = vmatpush3.bf16.msra.mxu0 %v7810_v36  ;;  %v2009_v27 = vsel %vm1989_vm10, 1.0, %v1933_v25  ;;  %vm1992_vm13 = vcmp.eq.f32.partialorder %v1942_v40, 0.0 }
 0x143   :  { %8019 = vrcp.f32 %v2009_v27 }
 0x144   :  { %7384 = vmatmul.mubr.msk.f32.vlgmr.msra.gmra.mrb[18].mxu1 %vm167_vm0, %v8713_v33  ;;  %v1939_v33 = vpop.xlane.xlu1 %1938  ;;  %8021 = vrcp.f32 %v2010_v55 }
 0x145   :  { %7395 = vmatmul.mubr.msk.f32.vlgmr.msra.gmra.mrb[20].mxu0 %vm2074_vm8, %v9005_v34  ;;  %v1948_v46 = vpop.xlane.xlu0 %1947  ;;  %vm1991_vm12 = vcmp.eq.f32.partialorder %v1939_v33, 0.0 }
 0x146   :  { %7397 = vmatprep.mubr.msk.f32.mxu0 %vm2074_vm8, %v9023_v17  ;;  %v2012_v17 = vsel %vm1992_vm13, 1.0, %v1942_v40  ;;  %vm1994_vm15 = vcmp.eq.f32.partialorder %v1948_v46, 0.0 }
 0x148   :  { %v1945_v42 = vpop.xlane.xlu1 %1944 }
 0x149   :  { %7398 = vmatmul.mubr.msk.f32.gmra.mrb[22].mxu0 %vm2074_vm8, %v9019_v41  ;;  %v1954_v61 = vpop.xlane.xlu0 %1953  ;;  %v2011_v41 = vsel %vm1991_vm12, 1.0, %v1939_v33  ;;  %vm1993_vm14 = vcmp.eq.f32.partialorder %v1945_v42, 0.0 }
 0x14a   :  { %7400 = vmatprep.mubr.msk.f32.mxu0 %vm2074_vm8, %v9036_v37  ;;  %8023 = vrcp.f32 %v2011_v41  ;;  %v2013_v37 = vsel %vm1993_vm14, 1.0, %v1945_v42  ;;  %vm1996_vm3 = vcmp.eq.f32.partialorder %v1954_v61, 0.0 }
 0x14b   :  { %8025 = vrcp.f32 %v2012_v17 }
 0x14c   :  { %v1951_v60 = vpop.xlane.xlu1 %1950  ;;  %8027 = vrcp.f32 %v2013_v37 }
 0x14d   :  { %7401 = vmatmul.mubr.msk.f32.gmra.mrb[24].mxu0 %vm2074_vm8, %v9028_v62  ;;  %v1960_v62 = vpop.xlane.xlu0 %1959  ;;  %vm1995_vm2 = vcmp.eq.f32.partialorder %v1951_v60, 0.0 }
 0x14e   :  { %7403 = vmatprep.mubr.msk.f32.mxu0 %vm2074_vm8, %v9045_v5  ;;  %vm1998_vm5 = vcmp.eq.f32.partialorder %v1960_v62, 0.0 }
 0x14f   :  { %v2018_v12 = vsel %vm1998_vm5, 1.0, %v1960_v62 }
 0x150   :  { %v1957_v34 = vpop.xlane.xlu1 %1956 }
 0x151   :  { %7404 = vmatmul.mubr.msk.f32.gmra.mrb[26].mxu0 %vm2074_vm8, %v9041_v9  ;;  %v1966_v5 = vpop.xlane.xlu0 %1965  ;;  %vm1997_vm4 = vcmp.eq.f32.partialorder %v1957_v34, 0.0 }
 0x152   :  { %7406 = vmatprep.mubr.msk.f32.mxu0 %vm2074_vm8, %v9048_v7  ;;  %v2015_v7 = vsel %vm1995_vm2, 1.0, %v1951_v60  ;;  %v2017_v28 = vsel %vm1997_vm4, 1.0, %v1957_v34  ;;  %vm2000_vm7 = vcmp.eq.f32.partialorder %v1966_v5, 0.0 }
 0x153   :  { %v2020_v16 = vsel %vm2000_vm7, 1.0, %v1966_v5 }
 0x154   :  { %v1963_v9 = vpop.xlane.xlu1 %1962 }
 0x155   :  { %7407 = vmatmul.mubr.msk.f32.gmra.mrb[28].mxu0 %vm2074_vm8, %v9043_v53  ;;  %v2014_v53 = vsel %vm1994_vm15, 1.0, %v1948_v46  ;;  %vm1999_vm6 = vcmp.eq.f32.partialorder %v1963_v9, 0.0 }
 0x156   :  { %7409 = vmatprep.mubr.msk.f32.mxu0 %vm2074_vm8, %v9065_v24  ;;  %8029 = vrcp.f32 %v2014_v53  ;;  %v2019_v48 = vsel %vm1999_vm6, 1.0, %v1963_v9 }
 0x157   :  { %8031 = vrcp.f32 %v2015_v7 }
 0x158   :  { %v1969_v24 = vpop.xlane.xlu1 %1968 }
 0x159   :  { %7410 = vmatmul.mubr.msk.f32.gmra.mrb[30].mxu0 %vm2074_vm8, %v9060_v4  ;;  %v2016_v4 = vsel %vm1996_vm3, 1.0, %v1954_v61  ;;  %vm2001_vm9 = vcmp.eq.f32.partialorder %v1969_v24, 0.0 }
 0x15a   :  { %7412 = vmatprep.mubr.msk.f32.mxu0 %vm2074_vm8, %v9069_v59  ;;  %8033 = vrcp.f32 %v2016_v4  ;;  %v2021_v18 = vsel %vm2001_vm9, 1.0, %v1969_v24 }
 0x15b   :  { %8035 = vrcp.f32 %v2017_v28 }
 0x15c   :  { %v1975_v19 = vpop.xlane.xlu1 %1974  ;;  %8037 = vrcp.f32 %v2018_v12 }
 0x15d   :  { %7413 = vmatmul.mubr.msk.f32.gmra.mrb[32].mxu0 %vm2074_vm8, %v9063_v58  ;;  %v8018_v58 = vpop.eup %8017  ;;  %8039 = vrcp.f32 %v2019_v48  ;;  %vm2003_vm11 = vcmp.eq.f32.partialorder %v1975_v19, 0.0 }
 0x15e   :  { %7415 = vmatprep.mubr.msk.f32.mxu0 %vm2074_vm8, %v1112_v8  ;;  %v8020_v59 = vpop.eup %8019  ;;  %8041 = vrcp.f32 %v2020_v16  ;;  %v2023_v27 = vsel %vm2003_vm11, 1.0, %v1975_v19 }
 0x15f   :  { %v8022_v52 = vpop.eup %8021  ;;  %8043 = vrcp.f32 %v2021_v18 }
 0x160   :  { %v8024_v2 = vpop.eup %8023  ;;  %v1981_v46 = vpop.xlane.xlu1 %1980 }
 0x161   :  { %7416 = vmatmul.mubr.msk.f32.gmra.mrb[34].mxu0 %vm2074_vm8, %v9079_v1  ;;  %v8026_v26 = vpop.eup %8025  ;;  %vm2005_vm13 = vcmp.eq.f32.partialorder %v1981_v46, 0.0 }
 0x162   :  { %7418 = vmatprep.mubr.msk.f32.mxu0 %vm2074_vm8, %v1114_v63  ;;  %v8028_v47 = vpop.eup %8027  ;;  %v2025_v4 = vsel %vm2005_vm13, 1.0, %v1981_v46  ;;  %v9198_v46 = vld [vmem:[%s10609_s8] ss:$0 sm:$0xff] }
 0x163   :  { %v8030_v36 = vpop.eup %8029 }
 0x164   :  { %v8032_v29 = vpop.eup %8031 }
 0x165   :  { %7419 = vmatmul.mubr.msk.f32.gmra.mrb[36].mxu0 %vm2074_vm8, %v9082_v6  ;;  %v1972_v6 = vpop.xlane.xlu0 %1971  ;;  %v8034_v42 = vpop.eup %8033 }
 0x166   :  { %7421 = vmatprep.mubr.msk.f32.mxu0 %vm2074_vm8, %v1116_v10  ;;  %vm2002_vm10 = vcmp.eq.f32.partialorder %v1972_v6, 0.0  ;;  %v8036_v41 = vpop.eup %8035 }
 0x167   :  { %v2022_v33 = vsel %vm2002_vm10, 1.0, %v1972_v6  ;;  %v8038_v53 = vpop.eup %8037 }
 0x168   :  { %8045 = vrcp.f32 %v2022_v33 }
 0x169   :  { %7422 = vmatmul.mubr.msk.f32.gmra.mrb[38].mxu0 %vm2074_vm8, %v1117_v54  ;;  %v1978_v10 = vpop.xlane.xlu0 %1977  ;;  %8047 = vrcp.f32 %v2023_v27 }
 0x16a   :  { %vm2004_vm12 = vcmp.eq.f32.partialorder %v1978_v10, 0.0 }
 0x16b   :  { %v2024_v17 = vsel %vm2004_vm12, 1.0, %v1978_v10 }
 0x16c   :  { %8049 = vrcp.f32 %v2024_v17 }
 0x16d   :  { %v1984_v62 = vpop.xlane.xlu0 %1983  ;;  %8051 = vrcp.f32 %v2025_v4 }
 0x16e   :  { %vm2006_vm14 = vcmp.eq.f32.partialorder %v1984_v62, 0.0 }
 0x200   :  { %v7322_v23 = vpop.f32.mrb[10].mxu0 }
 0x201   :  { %v1190_v1 = vpop.f32.mrb[11].mxu0  ;;  %v2049_v8 = vmul.f32 %v8020_v59, %v7322_v23  ;;  %v8040_v23 = vpop.eup %8039 }
 0x202   :  { %v2048_v30 = vmul.f32 %v8018_v58, %v1190_v1  ;;  %v7329_v32 = vpop.f32.mrb[10].mxu1  ;;  %v1987_v58 = vpop.xlane.xlu1 %1986 }
 0x203   :  { %v1271_v50 = vpop.f32.mrb[11].mxu1  ;;  %v2051_v0 = vmul.f32 %v8024_v2, %v7329_v32  ;;  %vm2007_vm15 = vcmp.eq.f32.partialorder %v1987_v58, 0.0  ;;  %v8042_v1 = vpop.eup %8041 }
 0x204   :  { %7424 = vmatprep.mubr.msk.f32.mxu0 %vm2074_vm8, %v2048_v30  ;;  %v2050_v63 = vmul.f32 %v8022_v52, %v1271_v50  ;;  %v7336_v45 = vpop.f32.mrb[12].mxu0  ;;  %v2026_v52 = vsel %vm2006_vm14, 1.0, %v1984_v62  ;;  %v2027_v6 = vsel %vm2007_vm15, 1.0, %v1987_v58  ;;  %v8044_v32 = vpop.eup %8043  ;;  %v2560_v58 = vld [vmem:[#allocation7] sm:$0xff] }
 0x205   :  { %7425 = vmatmul.mubr.msk.f32.gmra.mrb[40].mxu0 %vm2074_vm8, %v2049_v8  ;;  %v1352_v54 = vpop.f32.mrb[13].mxu0  ;;  %v2053_v21 = vmul.f32 %v8028_v47, %v7336_v45  ;;  %8053 = vrcp.f32 %v2026_v52  ;;  %v8046_v8 = vpop.eup %8045  ;;  %7458 = vmatprep.mubr.msk.f32.mxu1 %vm167_vm0, %v2560_v58 }
 0x206   :  { %7427 = vmatprep.mubr.msk.f32.mxu0 %vm2074_vm8, %v2050_v63  ;;  %v2052_v38 = vmul.f32 %v8026_v26, %v1352_v54  ;;  %8055 = vrcp.f32 %v2027_v6 }
 0x208   :  { %v7350_v14 = vpop.f32.mrb[14].mxu0 }
 0x209   :  { %7428 = vmatmul.mubr.msk.f32.gmra.mrb[42].mxu0 %vm2074_vm8, %v2051_v0  ;;  %v1514_v25 = vpop.f32.mrb[15].mxu0  ;;  %v2057_v24 = vmul.f32 %v8036_v41, %v7350_v14  ;;  %v8048_v0 = vpop.eup %8047 }
 0x20a   :  { %v7343_v40 = vpop.f32.mrb[12].mxu1  ;;  %7430 = vmatprep.mubr.msk.f32.mxu0 %vm2074_vm8, %v2052_v38  ;;  %v2056_v37 = vmul.f32 %v8034_v42, %v1514_v25  ;;  %v8050_v47 = vpop.eup %8049 }
 0x20b   :  { %v1433_v60 = vpop.f32.mrb[13].mxu1  ;;  %v2055_v34 = vmul.f32 %v8032_v29, %v7343_v40  ;;  %v8052_v14 = vpop.eup %8051 }
 0x20c   :  { %v2054_v61 = vmul.f32 %v8030_v36, %v1433_v60  ;;  %v7364_v13 = vpop.f32.mrb[16].mxu0 }
 0x20d   :  { %7431 = vmatmul.mubr.msk.f32.gmra.mrb[44].mxu0 %vm2074_vm8, %v2053_v21  ;;  %v1676_v55 = vpop.f32.mrb[17].mxu0  ;;  %v2061_v48 = vmul.f32 %v8044_v32, %v7364_v13 }
 0x20e   :  { %7433 = vmatprep.mubr.msk.f32.mxu0 %vm2074_vm8, %v2054_v61  ;;  %v7357_v9 = vpop.f32.mrb[14].mxu1  ;;  %v2060_v26 = vmul.f32 %v8042_v1, %v1676_v55 }
 0x20f   :  { %v1595_v5 = vpop.f32.mrb[15].mxu1  ;;  %v2059_v30 = vmul.f32 %v8040_v23, %v7357_v9  ;;  %v8054_v18 = vpop.eup %8053 }
 0x210   :  { %v7378_v7 = vpop.f32.mrb[18].mxu0  ;;  %v2058_v28 = vmul.f32 %v8038_v53, %v1595_v5  ;;  %v8056_v33 = vpop.eup %8055 }
 0x211   :  { %7434 = vmatmul.mubr.msk.f32.gmra.mrb[46].mxu0 %vm2074_vm8, %v2055_v34  ;;  %v1838_v59 = vpop.f32.mrb[19].mxu0  ;;  %v2065_v25 = vmul.f32 %v8052_v14, %v7378_v7 }
 0x212   :  { %7436 = vmatprep.mubr.msk.f32.mxu0 %vm2074_vm8, %v2056_v37  ;;  %v2064_v36 = vmul.f32 %v8050_v47, %v1838_v59 }
 0x213   :  { %v7371_v2 = vpop.f32.mrb[16].mxu1 }
 0x214   :  { %v1757_v12 = vpop.f32.mrb[17].mxu1  ;;  %v2063_v38 = vmul.f32 %v8048_v0, %v7371_v2 }
 0x215   :  { %7437 = vmatmul.mubr.msk.f32.gmra.mrb[48].mxu0 %vm2074_vm8, %v2057_v24  ;;  %v2062_v54 = vmul.f32 %v8046_v8, %v1757_v12  ;;  %v9234_v24 = vpop.permute.xlu1 %2587 }
 0x216   :  { %7439 = vmatprep.mubr.msk.f32.mxu0 %vm2074_vm8, %v2058_v28 }
 0x217   :  { %v7385_v50 = vpop.f32.mrb[18].mxu1 }
 0x218   :  { %v9177_v63 = vpop.f32.mrb[20].mxu0  ;;  %v1919_v45 = vpop.f32.mrb[19].mxu1  ;;  %v2067_v60 = vmul.f32 %v8056_v33, %v7385_v50 }
 0x219   :  { %v2261_v19 = vpop.f32.mrb[21].mxu0  ;;  %7440 = vmatmul.mubr.msk.f32.gmra.mrb[50].mxu0 %vm2074_vm8, %v2059_v30  ;;  %v2066_v40 = vmul.f32 %v8054_v18, %v1919_v45  ;;  %v9236_v59 = vpop.permute.xlu1 %2592 }
 0x21a   :  { %7442 = vmatprep.mubr.msk.f32.mxu0 %vm2074_vm8, %v2060_v26  ;;  %v9205_v13 = vadd.f32 %v9198_v46, %v2261_v19  ;;  %v9247_v30 = vpop.permute.xlu0 %2582 }
 0x21c   :  { %v9181_v16 = vpop.f32.mrb[22].mxu0 }
 0x21d   :  { %v9183_v10 = vpop.f32.mrb[23].mxu0  ;;  %7443 = vmatmul.mubr.msk.f32.gmra.mrb[52].mxu0 %vm2074_vm8, %v2061_v48  ;;  %v9238_v23 = vpop.permute.xlu1 %2597 }
 0x21e   :  { %7445 = vmatprep.mubr.msk.f32.mxu0 %vm2074_vm8, %v2062_v54 }
 0x220   :  { %v9187_v21 = vpop.f32.mrb[24].mxu0 }
 0x221   :  { %v9189_v29 = vpop.f32.mrb[25].mxu0  ;;  %7446 = vmatmul.mubr.msk.f32.gmra.mrb[54].mxu0 %vm2074_vm8, %v2063_v38  ;;  %v9240_v52 = vpop.permute.xlu1 %2602 }
 0x222   :  { %7448 = vmatprep.mubr.msk.f32.mxu0 %vm2074_vm8, %v2064_v36  ;;  %v9257_v38 = vpop.permute.xlu0 %2627 }
 0x224   :  { %v9193_v42 = vpop.f32.mrb[26].mxu0 }
 0x225   :  { %v9200_v61 = vpop.f32.mrb[27].mxu0  ;;  %7449 = vmatmul.mubr.msk.f32.gmra.mrb[56].mxu0 %vm2074_vm8, %v2065_v25  ;;  %v9242_v28 = vpop.permute.xlu1 %2607 }
 0x226   :  { %7451 = vmatprep.mubr.msk.f32.mxu0 %vm2074_vm8, %v2066_v40  ;;  %v2561_v40 = vld [vmem:[#allocation7 + $0x8] sm:$0xff] }
 0x228   :  { %v9207_v27 = vpop.f32.mrb[28].mxu0 }
 0x229   :  { %v9209_v34 = vpop.f32.mrb[29].mxu0  ;;  %7452 = vmatmul.mubr.msk.f32.gmra.mrb[58].mxu0 %vm2074_vm8, %v2067_v60  ;;  %v9244_v1 = vpop.permute.xlu1 %2612 }
 0x22a   :  { %7590 = vmatprep.mubr.f32.mxu0 %v9205_v13 }
 0x22c   :  { %v9213_v55 = vpop.f32.mrb[30].mxu0 }
 0x22d   :  { %v9215_v41 = vpop.f32.mrb[31].mxu0  ;;  %v9250_v26 = vpop.permute.xlu1 %2617 }
 0x230   :  { %v9217_v17 = vpop.f32.mrb[32].mxu0 }
 0x231   :  { %v9219_v62 = vpop.f32.mrb[33].mxu0  ;;  %v9260_v18 = vpop.permute.xlu1 %2622 }
 0x234   :  { %v9221_v37 = vpop.f32.mrb[34].mxu0 }
 0x235   :  { %v9223_v9 = vpop.f32.mrb[35].mxu0 }
 0x238   :  { %v9225_v53 = vpop.f32.mrb[36].mxu0 }
 0x239   :  { %v9227_v5 = vpop.f32.mrb[37].mxu0 }
 0x23c   :  { %v9229_v7 = vpop.f32.mrb[38].mxu0 }
 0x23d   :  { %v9231_v4 = vpop.f32.mrb[39].mxu0 }
 0x2d8   :  { %v7426_v2 = vpop.f32.mrb[40].mxu0 }
 0x2d9   :  { %v2367_v12 = vadd.f32 %v7426_v2, %v9198_v46  ;;  %v2361_v6 = vpop.f32.mrb[41].mxu0  ;;  %v2562_v2 = vld [vmem:[#allocation7 + $0x10] sm:$0xff] }
 0x2da   :  { %v2362_v32 = vadd.f32 %v9198_v46, %v2361_v6 }
 0x2db   :  { %v2681_v8 = vmul.f32 %v9234_v24, %v2367_v12 }
 0x2dc   :  { %v2680_v50 = vmul.f32 %v9247_v30, %v2362_v32  ;;  %v7429_v45 = vpop.f32.mrb[42].mxu0 }
 0x2dd   :  { %v2377_v48 = vadd.f32 %v7429_v45, %v9198_v46  ;;  %v2371_v19 = vpop.f32.mrb[43].mxu0  ;;  %v2563_v45 = vld [vmem:[#allocation7 + $0x18] sm:$0xff] }
 0x2de   :  { %v2372_v0 = vadd.f32 %v9198_v46, %v2371_v19  ;;  %v7814_v54 = vpack.c.bf16 %v2681_v8, %v2680_v50 }
 0x2df   :  { %v2683_v47 = vmul.f32 %v9238_v23, %v2377_v48  ;;  %v9269_v48 = vpop.permute.xlu0 %2637 }
 0x2e0   :  { %v2682_v14 = vmul.f32 %v9236_v59, %v2372_v0  ;;  %v7432_v36 = vpop.f32.mrb[44].mxu0  ;;  %7815 = vmatprep.subr.bf16.mxu1 %v7814_v54 }
 0x2e1   :  { %v2387_v25 = vadd.f32 %v7432_v36, %v9198_v46  ;;  %v2381_v33 = vpop.f32.mrb[45].mxu0  ;;  %7817 = vmatpush3.bf16.msra.mxu1 %v7814_v54  ;;  %v2564_v54 = vld [vmem:[#allocation7 + $0x20] sm:$0xff] }
 0x2e2   :  { %v2382_v60 = vadd.f32 %v9198_v46, %v2381_v33  ;;  %v7818_v58 = vpack.c.bf16 %v2683_v47, %v2682_v14  ;;  %v9272_v47 = vpop.permute.xlu1 %2632 }
 0x2e3   :  { %v2685_v12 = vmul.f32 %v9242_v28, %v2387_v25 }
 0x2e4   :  { %v2684_v6 = vmul.f32 %v9240_v52, %v2382_v60  ;;  %v7435_v32 = vpop.f32.mrb[46].mxu0  ;;  %7459 = vmatmul.mubr.msk.f32.vlgmr.msra.gmra.mrb[20].mxu1 %vm167_vm0, %v2561_v40  ;;  %7819 = vmatprep.subr.bf16.mxu1 %v7818_v58  ;;  %v2565_v60 = vld [vmem:[#allocation7 + $0x28] sm:$0xff] }
 0x2e5   :  { %v2397_v8 = vadd.f32 %v7435_v32, %v9198_v46  ;;  %v2391_v50 = vpop.f32.mrb[47].mxu0  ;;  %7821 = vmatpush3.bf16.msra.mxu1 %v7818_v58  ;;  %7465 = vmatprep.mubr.msk.f32.mxu1 %vm167_vm0, %v2562_v2  ;;  %v9281_v32 = vpop.permute.xlu0 %2647 }
 0x2e6   :  { %v2392_v19 = vadd.f32 %v9198_v46, %v2391_v50  ;;  %v7822_v0 = vpack.c.bf16 %v2685_v12, %v2684_v6  ;;  %v2566_v12 = vld [vmem:[#allocation7 + $0x30] sm:$0xff] }
 0x2e7   :  { %v2687_v14 = vmul.f32 %v9250_v26, %v2397_v8 }
 0x2e8   :  { %v2686_v36 = vmul.f32 %v9244_v1, %v2392_v19  ;;  %v7438_v25 = vpop.f32.mrb[48].mxu0  ;;  %7466 = vmatmul.mubr.msk.f32.vlgmr.msra.gmra.mrb[22].mxu1 %vm167_vm0, %v2563_v45  ;;  %7823 = vmatprep.subr.bf16.mxu1 %v7822_v0  ;;  %v9285_v45 = vpop.permute.xlu1 %2642 }
 0x2e9   :  { %v2407_v33 = vadd.f32 %v7438_v25, %v9198_v46  ;;  %v2401_v40 = vpop.f32.mrb[49].mxu0  ;;  %7825 = vmatpush3.bf16.msra.mxu1 %v7822_v0  ;;  %7472 = vmatprep.mubr.msk.f32.mxu1 %vm167_vm0, %v2564_v54  ;;  %v2567_v54 = vld [vmem:[#allocation7 + $0x38] sm:$0xff]  ;;  %v2568_v25 = vld [vmem:[#allocation7 + $0x40] sm:$0xff] }
 0x2ea   :  { %v2402_v58 = vadd.f32 %v9198_v46, %v2401_v40  ;;  %v7826_v2 = vpack.c.bf16 %v2687_v14, %v2686_v36 }
 0x2eb   :  { %v2689_v6 = vmul.f32 %v9257_v38, %v2407_v33 }
 0x2ec   :  { %v2688_v8 = vmul.f32 %v9260_v18, %v2402_v58  ;;  %v7441_v50 = vpop.f32.mrb[50].mxu0  ;;  %7473 = vmatmul.mubr.msk.f32.vlgmr.msra.gmra.mrb[24].mxu1 %vm167_vm0, %v2565_v60  ;;  %7827 = vmatprep.subr.bf16.mxu1 %v7826_v2 }
 0x2ed   :  { %v2417_v19 = vadd.f32 %v7441_v50, %v9198_v46  ;;  %v2411_v0 = vpop.f32.mrb[51].mxu0  ;;  %7829 = vmatpush3.bf16.msra.mxu1 %v7826_v2  ;;  %7479 = vmatprep.mubr.msk.f32.mxu1 %vm167_vm0, %v2566_v12  ;;  %v2569_v2 = vld [vmem:[#allocation7 + $0x48] sm:$0xff]  ;;  %v9295_v12 = vpop.permute.xlu0 %2657 }
 0x2ee   :  { %v2412_v14 = vadd.f32 %v9198_v46, %v2411_v0  ;;  %v7830_v36 = vpack.c.bf16 %v2689_v6, %v2688_v8  ;;  %v2570_v0 = vld [vmem:[#allocation7 + $0x50] sm:$0xff] }
 0x2ef   :  { %v2691_v33 = vmul.f32 %v9269_v48, %v2417_v19  ;;  %v9298_v19 = vpop.permute.xlu1 %2652 }
 0x2f0   :  { %v2690_v40 = vmul.f32 %v9272_v47, %v2412_v14  ;;  %v7444_v58 = vpop.f32.mrb[52].mxu0  ;;  %7480 = vmatmul.mubr.msk.f32.vlgmr.msra.gmra.mrb[26].mxu1 %vm167_vm0, %v2567_v54  ;;  %7831 = vmatprep.subr.bf16.mxu1 %v7830_v36 }
 0x2f1   :  { %v2427_v60 = vadd.f32 %v7444_v58, %v9198_v46  ;;  %v2421_v50 = vpop.f32.mrb[53].mxu0  ;;  %7833 = vmatpush3.bf16.msra.mxu1 %v7830_v36  ;;  %7486 = vmatprep.mubr.msk.f32.mxu1 %vm167_vm0, %v2568_v25  ;;  %v2571_v58 = vld [vmem:[#allocation7 + $0x58] sm:$0xff] }
 0x2f2   :  { %v2422_v6 = vadd.f32 %v9198_v46, %v2421_v50  ;;  %v7834_v8 = vpack.c.bf16 %v2691_v33, %v2690_v40  ;;  %v2572_v50 = vld [vmem:[#allocation7 + $0x60] sm:$0xff] }
 0x2f3   :  { %v2693_v14 = vmul.f32 %v9281_v32, %v2427_v60  ;;  %v9307_v60 = vpop.permute.xlu0 %2667 }
 0x2f4   :  { %v2692_v54 = vmul.f32 %v9285_v45, %v2422_v6  ;;  %v7447_v43 = vpop.f32.mrb[54].mxu0  ;;  %7487 = vmatmul.mubr.msk.f32.vlgmr.msra.gmra.mrb[28].mxu1 %vm167_vm0, %v2569_v2  ;;  %7835 = vmatprep.subr.bf16.mxu1 %v7834_v8 }
 0x2f5   :  { %v2437_v36 = vadd.f32 %v7447_v43, %v9198_v46  ;;  %v2431_v25 = vpop.f32.mrb[55].mxu0  ;;  %7837 = vmatpush3.bf16.msra.mxu1 %v7834_v8  ;;  %7493 = vmatprep.mubr.msk.f32.mxu1 %vm167_vm0, %v2570_v0  ;;  %v9311_v43 = vpop.permute.xlu1 %2662  ;;  %v2573_v0 = vld [vmem:[#allocation7 + $0x68] sm:$0xff] }
 0x2f6   :  { %v2432_v33 = vadd.f32 %v9198_v46, %v2431_v25  ;;  %v7838_v40 = vpack.c.bf16 %v2693_v14, %v2692_v54 }
 0x2f7   :  { %v2695_v35 = vmul.f32 %v9295_v12, %v2437_v36  ;;  %v2574_v36 = vld [vmem:[#allocation7 + $0x70] sm:$0xff] }
 0x2f8   :  { %v2694_v6 = vmul.f32 %v9298_v19, %v2432_v33  ;;  %v7450_v31 = vpop.f32.mrb[56].mxu0  ;;  %7494 = vmatmul.mubr.msk.f32.vlgmr.msra.gmra.mrb[30].mxu1 %vm167_vm0, %v2571_v58  ;;  %7839 = vmatprep.subr.bf16.mxu1 %v7838_v40 }
 0x2f9   :  { %v2447_v2 = vadd.f32 %v7450_v31, %v9198_v46  ;;  %v2441_v8 = vpop.f32.mrb[57].mxu0  ;;  %7841 = vmatpush3.bf16.msra.mxu1 %v7838_v40  ;;  %7500 = vmatprep.mubr.msk.f32.mxu1 %vm167_vm0, %v2572_v50  ;;  %v2575_v40 = vld [vmem:[#allocation7 + $0x78] sm:$0xff]  ;;  %v9321_v50 = vpop.permute.xlu0 %2677 }
 0x2fa   :  { %v2442_v14 = vadd.f32 %v9198_v46, %v2441_v8  ;;  %v7842_v54 = vpack.c.bf16 %v2695_v35, %v2694_v6  ;;  %v2576_v8 = vld [vmem:[#allocation7 + $0x80] sm:$0xff] }
 0x2fb   :  { %v2697_v25 = vmul.f32 %v9307_v60, %v2447_v2  ;;  %v9324_v2 = vpop.permute.xlu1 %2672 }
 0x2fc   :  { %v2696_v33 = vmul.f32 %v9311_v43, %v2442_v14  ;;  %v7453_v20 = vpop.f32.mrb[58].mxu0  ;;  %7501 = vmatmul.mubr.msk.f32.vlgmr.msra.gmra.mrb[32].mxu1 %vm167_vm0, %v2573_v0  ;;  %7843 = vmatprep.subr.bf16.mxu1 %v7842_v54  ;;  %v3531_v0 = vld [vmem:[#allocation8 + $0x8] sm:$0xff] }
 0x2fd   :  { %v2457_v58 = vadd.f32 %v7453_v20, %v9198_v46  ;;  %v2451_v31 = vpop.f32.mrb[59].mxu0  ;;  %7845 = vmatpush3.bf16.msra.mxu1 %v7842_v54  ;;  %7507 = vmatprep.mubr.msk.f32.mxu1 %vm167_vm0, %v2574_v36  ;;  %v2577_v20 = vld [vmem:[#allocation7 + $0x88] sm:$0xff]  ;;  %v2578_v36 = vld [vmem:[#allocation7 + $0x90] sm:$0xff] }
 0x2fe   :  { %v2452_v35 = vadd.f32 %v9198_v46, %v2451_v31  ;;  %v7846_v6 = vpack.c.bf16 %v2697_v25, %v2696_v33  ;;  %v7854_v31 = vpack.c.bf16 %v3531_v0, %v3530_v49  ;;  %v3532_v25 = vld [vmem:[#allocation8 + $0x10] sm:$0xff]  ;;  %v3533_v33 = vld [vmem:[#allocation8 + $0x18] sm:$0xff]  ;;  %v3539_v0 = vld [vmem:[#allocation8 + $0x48] sm:$0xff] }
 0x2ff   :  { %v2699_v14 = vmul.f32 %v9321_v50, %v2457_v58  ;;  %v2579_v58 = vld [vmem:[#allocation7 + $0x98] sm:$0xff] }
 0x300   :  { %v2698_v51 = vmul.f32 %v9324_v2, %v2452_v35  ;;  %7508 = vmatmul.mubr.msk.f32.vlgmr.msra.gmra.mrb[34].mxu1 %vm167_vm0, %v2575_v40  ;;  %7847 = vmatprep.subr.bf16.mxu1 %v7846_v6  ;;  %v7858_v35 = vpack.c.bf16 %v3533_v33, %v3532_v25  ;;  %v3534_v40 = vld [vmem:[#allocation8 + $0x20] sm:$0xff]  ;;  %v3537_v49 = vld [vmem:[#allocation8 + $0x38] sm:$0xff] }
 0x301   :  { %7849 = vmatpush3.bf16.msra.mxu1 %v7846_v6  ;;  %7514 = vmatprep.mubr.msk.f32.mxu1 %vm167_vm0, %v2576_v8  ;;  %v3536_v6 = vld [vmem:[#allocation8 + $0x30] sm:$0xff]  ;;  %v3542_v33 = vld [vmem:[#allocation8 + $0x60] sm:$0xff] }
 0x302   :  { %v7850_v54 = vpack.c.bf16 %v2699_v14, %v2698_v51  ;;  %v7862_v51 = vpack.c.bf16 %v3535_v44, %v3534_v40  ;;  %v7866_v8 = vpack.c.bf16 %v3537_v49, %v3536_v6  ;;  %v3538_v14 = vld [vmem:[#allocation8 + $0x40] sm:$0xff] }
 0x304   :  { %7515 = vmatmul.mubr.msk.f32.vlgmr.msra.gmra.mrb[36].mxu1 %vm167_vm0, %v2577_v20  ;;  %7851 = vmatprep.subr.bf16.mxu1 %v7850_v54  ;;  %v7870_v20 = vpack.c.bf16 %v3539_v0, %v3538_v14 }
 0x305   :  { %7853 = vmatpush3.bf16.msra.mxu1 %v7850_v54  ;;  %7521 = vmatprep.mubr.msk.f32.mxu1 %vm167_vm0, %v2578_v36  ;;  %v3540_v54 = vld [vmem:[#allocation8 + $0x50] sm:$0xff]  ;;  %v3541_v36 = vld [vmem:[#allocation8 + $0x58] sm:$0xff] }
 0x306   :  { %7855 = vmatprep.subr.bf16.mxu1 %v7854_v31  ;;  %v7874_v25 = vpack.c.bf16 %v3541_v36, %v3540_v54 }
 0x308   :  { %7522 = vmatmul.mubr.msk.f32.vlgmr.msra.gmra.mrb[38].mxu1 %vm167_vm0, %v2579_v58  ;;  %v3543_v58 = vld [vmem:[#allocation8 + $0x68] sm:$0xff] }
 0x309   :  { %7857 = vmatpush3.bf16.msra.mxu1 %v7854_v31  ;;  %v7878_v44 = vpack.c.bf16 %v3543_v58, %v3542_v33  ;;  %v3544_v31 = vld [vmem:[#allocation8 + $0x70] sm:$0xff] }
 0x30a   :  { %7859 = vmatprep.subr.bf16.mxu1 %v7858_v35 }
 0x30d   :  { %7861 = vmatpush3.bf16.msra.mxu1 %v7858_v35  ;;  %v3545_v35 = vld [vmem:[#allocation8 + $0x78] sm:$0xff] }
 0x30e   :  { %7863 = vmatprep.subr.bf16.mxu1 %v7862_v51  ;;  %v7882_v40 = vpack.c.bf16 %v3545_v35, %v3544_v31 }
 0x311   :  { %7865 = vmatpush3.bf16.msra.mxu1 %v7862_v51 }
 0x312   :  { %7867 = vmatprep.subr.bf16.mxu1 %v7866_v8 }
 0x315   :  { %7869 = vmatpush3.bf16.msra.mxu1 %v7866_v8 }
 0x316   :  { %7871 = vmatprep.subr.bf16.mxu1 %v7870_v20 }
 0x319   :  { %7873 = vmatpush3.bf16.msra.mxu1 %v7870_v20 }
 0x31a   :  { %7875 = vmatprep.subr.bf16.mxu1 %v7874_v25 }
 0x31d   :  { %7877 = vmatpush3.bf16.msra.mxu1 %v7874_v25 }
 0x31e   :  { %7879 = vmatprep.subr.bf16.mxu1 %v7878_v44 }
 0x321   :  { %7881 = vmatpush3.bf16.msra.mxu1 %v7878_v44 }
 0x322   :  { %7883 = vmatprep.subr.bf16.mxu1 %v7882_v40 }
 0x325   :  { %7885 = vmatpush3.bf16.msra.mxu1 %v7882_v40 }
 0x3b7   :  { %v7460_v51 = vpop.f32.mrb[20].mxu1 }
 0x3b8   :  { %v2772_v6 = vpop.f32.mrb[21].mxu1  ;;  %v3511_v8 = vmul.f32 %v7460_v51, %v9234_v24 }
 0x3b9   :  { %v3510_v49 = vmul.f32 %v2772_v6, %v9247_v30 }
 0x3bb   :  { %v7467_v14 = vpop.f32.mrb[22].mxu1  ;;  %7556 = vmatprep.mubr.f32.mxu1 %v3510_v49 }
 0x3bc   :  { %v2853_v0 = vpop.f32.mrb[23].mxu1  ;;  %7557 = vmatmul.mubr.f32.vlgmr.msra.gmra.mrb[40].mxu1 %v3511_v8  ;;  %v3513_v54 = vmul.f32 %v7467_v14, %v9238_v23 }
 0x3bd   :  { %v3512_v20 = vmul.f32 %v2853_v0, %v9236_v59 }
 0x3bf   :  { %v7474_v36 = vpop.f32.mrb[24].mxu1  ;;  %7559 = vmatprep.mubr.f32.mxu1 %v3512_v20 }
 0x3c0   :  { %v2934_v25 = vpop.f32.mrb[25].mxu1  ;;  %7560 = vmatmul.mubr.f32.gmra.mrb[42].mxu1 %v3513_v54  ;;  %v3515_v58 = vmul.f32 %v7474_v36, %v9242_v28 }
 0x3c1   :  { %v3514_v33 = vmul.f32 %v2934_v25, %v9240_v52 }
 0x3c3   :  { %v7481_v44 = vpop.f32.mrb[26].mxu1  ;;  %7562 = vmatprep.mubr.f32.mxu1 %v3514_v33  ;;  %v10644_v33 = vmov 0.0  }
 0x3c4   :  { %v3015_v30 = vpop.f32.mrb[27].mxu1  ;;  %7563 = vmatmul.mubr.f32.gmra.mrb[44].mxu1 %v3515_v58  ;;  %v3517_v31 = vmul.f32 %v7481_v44, %v9250_v26 }
 0x3c5   :  { %v3516_v24 = vmul.f32 %v3015_v30, %v9244_v1 }
 0x3c7   :  { %v7488_v35 = vpop.f32.mrb[28].mxu1  ;;  %7565 = vmatprep.mubr.f32.mxu1 %v3516_v24 }
 0x3c8   :  { %v3096_v59 = vpop.f32.mrb[29].mxu1  ;;  %7566 = vmatmul.mubr.f32.gmra.mrb[46].mxu1 %v3517_v31  ;;  %v3519_v40 = vmul.f32 %v7488_v35, %v9257_v38 }
 0x3c9   :  { %v3518_v23 = vmul.f32 %v3096_v59, %v9260_v18 }
 0x3cb   :  { %v7495_v51 = vpop.f32.mrb[30].mxu1  ;;  %7568 = vmatprep.mubr.f32.mxu1 %v3518_v23 }
 0x3cc   :  { %v3177_v52 = vpop.f32.mrb[31].mxu1  ;;  %7569 = vmatmul.mubr.f32.gmra.mrb[48].mxu1 %v3519_v40  ;;  %v3521_v6 = vmul.f32 %v7495_v51, %v9269_v48 }
 0x3cd   :  { %v3520_v28 = vmul.f32 %v3177_v52, %v9272_v47 }
 0x3cf   :  { %v7502_v49 = vpop.f32.mrb[32].mxu1  ;;  %7571 = vmatprep.mubr.f32.mxu1 %v3520_v28 }
 0x3d0   :  { %v3258_v1 = vpop.f32.mrb[33].mxu1  ;;  %7572 = vmatmul.mubr.f32.gmra.mrb[50].mxu1 %v3521_v6  ;;  %v3523_v8 = vmul.f32 %v7502_v49, %v9281_v32 }
 0x3d1   :  { %v3522_v26 = vmul.f32 %v3258_v1, %v9285_v45 }
 0x3d3   :  { %v7509_v14 = vpop.f32.mrb[34].mxu1  ;;  %7574 = vmatprep.mubr.f32.mxu1 %v3522_v26 }
 0x3d4   :  { %v3339_v18 = vpop.f32.mrb[35].mxu1  ;;  %7575 = vmatmul.mubr.f32.gmra.mrb[52].mxu1 %v3523_v8  ;;  %v3525_v0 = vmul.f32 %v7509_v14, %v9295_v12  ;;  %v10643_v12 = vlaneseq  ;;  %v9388_v14 = vadd.f32 %v9177_v63, %v9198_v46 }
 0x3d5   :  { %v3524_v38 = vmul.f32 %v3339_v18, %v9298_v19  ;;  %v9355_v19 = vadd.f32 %v9198_v46, %v9209_v34 }
 0x3d7   :  { %v7516_v20 = vpop.f32.mrb[36].mxu1  ;;  %7577 = vmatprep.mubr.f32.mxu1 %v3524_v38 }
 0x3d8   :  { %v3420_v47 = vpop.f32.mrb[37].mxu1  ;;  %7578 = vmatmul.mubr.f32.gmra.mrb[54].mxu1 %v3525_v0  ;;  %v3527_v54 = vmul.f32 %v7516_v20, %v9307_v60  ;;  %v9395_v20 = vadd.f32 %v9198_v46, %v9183_v10 }
 0x3d9   :  { %v3526_v48 = vmul.f32 %v3420_v47, %v9311_v43  ;;  %v3739_v43 = vshrl.u32 %v10643_v12, 7 }
 0x3db   :  { %v7523_v36 = vpop.f32.mrb[38].mxu1  ;;  %7580 = vmatprep.mubr.f32.mxu1 %v3526_v48  ;;  %v9359_v60 = vadd.s32 8, %v3739_v43  ;;  %v9410_v43 = vadd.f32 %v9181_v16, %v9198_v46 }
 0x3dc   :  { %v3501_v45 = vpop.f32.mrb[39].mxu1  ;;  %7581 = vmatmul.mubr.f32.gmra.mrb[56].mxu1 %v3527_v54  ;;  %v3529_v25 = vmul.f32 %v7523_v36, %v9321_v50 }
 0x3dd   :  { %v3528_v32 = vmul.f32 %v3501_v45, %v9324_v2  ;;  %vm3742_vm8 = vcmp.lt.s32.totalorder %v9359_v60, 10  ;;  %v9365_v2 = vld [vmem:[%s10611_s10] ss:$0 sm:$0xff]  ;;  %vm4708_vm2 = vcmp.lt.s32.totalorder %v9359_v60, 12 }
 0x3de   :  { %v9368_v34 = vsel %vm3742_vm8, 1.0, %v10644_v33 }
 0x3df   :  { %7583 = vmatprep.mubr.f32.mxu1 %v3528_v32 }
 0x3e0   :  { %7584 = vmatmul.mubr.f32.gmra.mrb[58].mxu1 %v3529_v25 }
 0x3e1   :  { %7618 = vmatprep.mubr.f32.mxu1 %v9355_v19 }
 0x48f   :  { %v7558_v50 = vpop.f32.mrb[40].mxu1 }
 0x490   :  { %v3719_v58 = vadd.f32 %v7558_v50, %v9365_v2  ;;  %v3612_v44 = vpop.f32.mrb[41].mxu1 }
 0x491   :  { %v3718_v30 = vadd.f32 %v9365_v2, %v3612_v44 }
 0x492   :  { %v3748_v24 = vmul.f32 %v9368_v34, %v3719_v58 }
 0x493   :  { %v7561_v31 = vpop.f32.mrb[42].mxu1 }
 0x494   :  { %v9373_v35 = vpack.c.bf16 %v3748_v24, %v3718_v30  ;;  %v3721_v59 = vadd.f32 %v7561_v31, %v9365_v2  ;;  %v3622_v23 = vpop.f32.mrb[43].mxu1  ;;  %v9417_v30 = vadd.f32 %v9198_v46, %v9189_v29 }
 0x495   :  { %v3720_v40 = vadd.f32 %v9365_v2, %v3622_v23 }
 0x496   :  { %v3750_v51 = vmul.f32 %v9368_v34, %v3721_v59  ;;  %7887 = vmatprep.subr.bf16.mxu0 %v9373_v35 }
 0x497   :  { %v7564_v52 = vpop.f32.mrb[44].mxu1  ;;  %7889 = vmatpush3.bf16.xpose.msra.mxu0 %v9373_v35 }
 0x498   :  { %v9380_v28 = vpack.c.bf16 %v3750_v51, %v3720_v40  ;;  %v3723_v6 = vadd.f32 %v7564_v52, %v9365_v2  ;;  %v3632_v49 = vpop.f32.mrb[45].mxu1 }
 0x499   :  { %v3722_v1 = vadd.f32 %v9365_v2, %v3632_v49 }
 0x49a   :  { %v3752_v26 = vmul.f32 %v9368_v34, %v3723_v6  ;;  %7891 = vmatprep.subr.bf16.mxu0 %v9380_v28  ;;  %v9434_v6 = vadd.f32 %v9187_v21, %v9198_v46  ;;  %v9453_v21 = vadd.f32 %v9198_v46, %v9219_v62 }
 0x49b   :  { %v7567_v8 = vpop.f32.mrb[46].mxu1 }
 0x49c   :  { %v9390_v18 = vpack.c.bf16 %v3752_v26, %v3722_v1  ;;  %v3725_v38 = vadd.f32 %v7567_v8, %v9365_v2  ;;  %v3642_v0 = vpop.f32.mrb[47].mxu1  ;;  %v9441_v8 = vadd.f32 %v9207_v27, %v9198_v46  ;;  %10720 = vst [vmem:[#allocation41_spill] sm:$0xff] %v9453_v21 }
 0x49d   :  { %v3724_v47 = vadd.f32 %v9365_v2, %v3642_v0  ;;  %v9446_v0 = vadd.f32 %v9198_v46, %v9200_v61 }
 0x49e   :  { %v3754_v48 = vmul.f32 %v9368_v34, %v3725_v38  ;;  %7591 = vmatmul.mubr.f32.vlgmr.msra.gmra.mrb[60].mxu0 %v9388_v14 }
 0x49f   :  { %v7570_v54 = vpop.f32.mrb[48].mxu1  ;;  %7893 = vmatpush3.bf16.xpose.msra.mxu0 %v9380_v28  ;;  %7597 = vmatprep.mubr.f32.mxu0 %v9395_v20 }
 0x4a0   :  { %v9402_v63 = vpack.c.bf16 %v3754_v48, %v3724_v47  ;;  %v3727_v36 = vadd.f32 %v7570_v54, %v9365_v2  ;;  %v3652_v45 = vpop.f32.mrb[49].mxu1  ;;  %7895 = vmatprep.subr.bf16.mxu0 %v9390_v18 }
 0x4a1   :  { %v3726_v10 = vadd.f32 %v9365_v2, %v3652_v45 }
 0x4a2   :  { %v3756_v32 = vmul.f32 %v9368_v34, %v3727_v36 }
 0x4a3   :  { %v7573_v25 = vpop.f32.mrb[50].mxu1 }
 0x4a4   :  { %v9412_v50 = vpack.c.bf16 %v3756_v32, %v3726_v10  ;;  %v3729_v58 = vadd.f32 %v7573_v25, %v9365_v2  ;;  %v3662_v44 = vpop.f32.mrb[51].mxu1  ;;  %v9468_v10 = vadd.f32 %v9193_v42, %v9198_v46  ;;  %v9487_v42 = vadd.f32 %v9198_v46, %v9227_v5 }
 0x4a5   :  { %v3728_v24 = vadd.f32 %v9365_v2, %v3662_v44  ;;  %v9475_v44 = vadd.f32 %v9217_v17, %v9198_v46  ;;  %v9504_v5 = vadd.f32 %v9225_v53, %v9198_v46  ;;  %v9531_v53 = vadd.f32 %v9229_v7, %v9198_v46  ;;  %v4519_v7 = vld [vmem:[#allocation5 + $0x10] sm:$0xff] }
 0x4a6   :  { %v3758_v31 = vmul.f32 %v9368_v34, %v3729_v58  ;;  %7598 = vmatmul.mubr.f32.vlgmr.msra.gmra.mrb[62].mxu0 %v9410_v43  ;;  %7903 = vmatprep.subr.bf16.mxu1 %v9412_v50  ;;  %10723 = vst [vmem:[#allocation44_spill] sm:$0xff] %v9487_v42 }
 0x4a7   :  { %v7576_v59 = vpop.f32.mrb[52].mxu1  ;;  %7897 = vmatpush3.bf16.xpose.msra.mxu0 %v9390_v18  ;;  %7604 = vmatprep.mubr.f32.mxu0 %v9417_v30  ;;  %10721 = vst [vmem:[#allocation42_spill] sm:$0xff] %v9475_v44  ;;  %10725 = vst [vmem:[#allocation46_spill] sm:$0xff] %v9504_v5 }
 0x4a8   :  { %v9425_v16 = vpack.c.bf16 %v3758_v31, %v3728_v24  ;;  %v3731_v23 = vadd.f32 %v7576_v59, %v9365_v2  ;;  %7905 = vmatpush3.bf16.xpose.msra.mxu1 %v9412_v50  ;;  %v3672_v29 = vpop.f32.mrb[53].mxu1  ;;  %7899 = vmatprep.subr.bf16.mxu0 %v9402_v63  ;;  %v9480_v31 = vadd.f32 %v9198_v46, %v9215_v41 }
 0x4a9   :  { %v3730_v40 = vadd.f32 %v9365_v2, %v3672_v29  ;;  %v9500_v41 = vadd.f32 %v9213_v55, %v9198_v46  ;;  %v9519_v55 = vadd.f32 %v9221_v37, %v9198_v46  ;;  %10729 = vst [vmem:[#allocation50_spill] sm:$0xff] %v9531_v53  ;;  %v4518_v37 = vld [vmem:[#allocation5 + $0x8] sm:$0xff] }
 0x4aa   :  { %v3760_v51 = vmul.f32 %v9368_v34, %v3731_v23  ;;  %10722 = vst [vmem:[#allocation43_spill] sm:$0xff] %v9480_v31 }
 0x4ab   :  { %v7579_v52 = vpop.f32.mrb[54].mxu1  ;;  %10724 = vst [vmem:[#allocation45_spill] sm:$0xff] %v9500_v41  ;;  %10727 = vst [vmem:[#allocation48_spill] sm:$0xff] %v9519_v55 }
 0x4ac   :  { %v9436_v49 = vpack.c.bf16 %v3760_v51, %v3730_v40  ;;  %v3733_v1 = vadd.f32 %v7579_v52, %v9365_v2  ;;  %v3682_v26 = vpop.f32.mrb[55].mxu1 }
 0x4ad   :  { %v3732_v38 = vadd.f32 %v9365_v2, %v3682_v26 }
 0x4ae   :  { %v3762_v47 = vmul.f32 %v9368_v34, %v3733_v1  ;;  %7605 = vmatmul.mubr.f32.vlgmr.msra.gmra.mrb[64].mxu0 %v9434_v6  ;;  %7911 = vmatprep.subr.bf16.mxu1 %v9436_v49  ;;  %v4520_v1 = vld [vmem:[#allocation5 + $0x18] sm:$0xff] }
 0x4af   :  { %7619 = vmatmul.mubr.f32.vlgmr.msra.gmra.mrb[60].mxu1 %v9441_v8  ;;  %v7582_v27 = vpop.f32.mrb[56].mxu1  ;;  %7901 = vmatpush3.bf16.xpose.msra.mxu0 %v9402_v63 }
 0x4b0   :  { %v9457_v48 = vpack.c.bf16 %v3762_v47, %v3732_v38  ;;  %v3735_v61 = vadd.f32 %v7582_v27, %v9365_v2  ;;  %7611 = vmatprep.mubr.f32.mxu0 %v9446_v0  ;;  %7913 = vmatpush3.bf16.xpose.msra.mxu1 %v9436_v49  ;;  %v3692_v54 = vpop.f32.mrb[57].mxu1 }
 0x4b1   :  { %7632 = vmatprep.mubr.f32.mxu1 %v9453_v21  ;;  %v3734_v36 = vadd.f32 %v9365_v2, %v3692_v54  ;;  %7907 = vmatprep.subr.bf16.mxu0 %v9425_v16 }
 0x4b2   :  { %v3764_v62 = vmul.f32 %v9368_v34, %v3735_v61 }
 0x4b3   :  { %v7585_v45 = vpop.f32.mrb[58].mxu1 }
 0x4b4   :  { %v9470_v32 = vpack.c.bf16 %v3764_v62, %v3734_v36  ;;  %v3737_v25 = vadd.f32 %v7585_v45, %v9365_v2  ;;  %v3702_v58 = vpop.f32.mrb[59].mxu1 }
 0x4b5   :  { %v3736_v24 = vadd.f32 %v9365_v2, %v3702_v58  ;;  %v9508_v2 = vadd.f32 %v9198_v46, %v9223_v9  ;;  %v9523_v9 = vadd.f32 %v9198_v46, %v9231_v4  ;;  %v4517_v4 = vld [vmem:[#allocation5] sm:$0xff] }
 0x4b6   :  { %v3766_v59 = vmul.f32 %v9368_v34, %v3737_v25  ;;  %7612 = vmatmul.mubr.f32.vlgmr.msra.gmra.mrb[66].mxu0 %v9468_v10  ;;  %7919 = vmatprep.subr.bf16.mxu1 %v9470_v32  ;;  %v4522_v25 = vld [vmem:[#allocation5 + $0x28] sm:$0xff] }
 0x4b7   :  { %7633 = vmatmul.mubr.f32.vlgmr.msra.gmra.mrb[62].mxu1 %v9475_v44  ;;  %7909 = vmatpush3.bf16.xpose.msra.mxu0 %v9425_v16  ;;  %10726 = vst [vmem:[#allocation47_spill] sm:$0xff] %v9508_v2  ;;  %10728 = vst [vmem:[#allocation49_spill] sm:$0xff] %v9523_v9 }
 0x4b8   :  { %v9491_v17 = vpack.c.bf16 %v3766_v59, %v3736_v24  ;;  %7625 = vmatprep.mubr.f32.mxu0 %v9480_v31  ;;  %7921 = vmatpush3.bf16.xpose.msra.mxu1 %v9470_v32  ;;  %v4526_v59 = vld [vmem:[#allocation5 + $0x48] sm:$0xff] }
 0x4b9   :  { %7646 = vmatprep.mubr.f32.mxu1 %v9487_v42  ;;  %7915 = vmatprep.subr.bf16.mxu0 %v9457_v48 }
 0x4ba   :  { %7927 = vmatprep.subr.bf16.mxu1 %v9373_v35 }
 0x4be   :  { %7626 = vmatmul.mubr.f32.vlgmr.msra.gmra.mrb[68].mxu0 %v9500_v41 }
 0x4bf   :  { %7647 = vmatmul.mubr.f32.vlgmr.msra.gmra.mrb[64].mxu1 %v9504_v5  ;;  %7917 = vmatpush3.bf16.xpose.msra.mxu0 %v9457_v48 }
 0x4c0   :  { %7639 = vmatprep.mubr.f32.mxu0 %v9508_v2  ;;  %7929 = vmatpush3.bf16.msra.mxu1 %v9373_v35 }
 0x4c1   :  { %7923 = vmatprep.subr.bf16.mxu0 %v9491_v17  ;;  %7931 = vmatprep.subr.bf16.mxu1 %v9380_v28 }
 0x4c6   :  { %7640 = vmatmul.mubr.f32.vlgmr.msra.gmra.mrb[70].mxu0 %v9519_v55 }
 0x4c7   :  { %7925 = vmatpush3.bf16.xpose.msra.mxu0 %v9491_v17  ;;  %7653 = vmatprep.mubr.f32.mxu0 %v9523_v9 }
 0x4c8   :  { %7935 = vmatprep.subr.bf16.mxu0 %v9390_v18 }
 0x4ce   :  { %7654 = vmatmul.mubr.f32.vlgmr.msra.gmra.mrb[72].mxu0 %v9531_v53 }
 0x4cf   :  { %7937 = vmatpush3.bf16.msra.mxu0 %v9390_v18 }
 0x4d0   :  { %7943 = vmatprep.subr.bf16.mxu0 %v9412_v50 }
 0x571   :  { %v7592_v34 = vpop.f32.mrb[60].mxu0 }
 0x572   :  { %v4538_v35 = vmul.f32 %v7592_v34, %v4518_v37  ;;  %v3833_v23 = vpop.f32.mrb[61].mxu0  ;;  %v4521_v37 = vld [vmem:[#allocation5 + $0x20] sm:$0xff] }
 0x573   :  { %v4537_v29 = vmul.f32 %v4517_v4, %v3833_v23 }
 0x574   :  { %v4558_v40 = vsel %vm167_vm0, %v4538_v35, -inf }
 0x575   :  { %v4557_v51 = vsel %vm167_vm0, %v4537_v29, -inf }
 0x576   :  { %v4559_v52 = vmax.f32 %v4557_v51, %v4558_v40 }
 0x578   :  { %v4560_v46 = vrot.slane %v4559_v52, 4 }
 0x579   :  { %v7599_v26 = vpop.f32.mrb[62].mxu0 }
 0x57a   :  { %v4561_v38 = vmax.f32 %v4559_v52, %v4560_v46  ;;  %v9538_v47 = vmul.f32 %v7599_v26, %v4520_v1  ;;  %v3908_v18 = vpop.f32.mrb[63].mxu0  ;;  %v4525_v1 = vld [vmem:[#allocation5 + $0x40] sm:$0xff] }
 0x57b   :  { %v4539_v27 = vmul.f32 %v4519_v7, %v3908_v18 }
 0x57c   :  { %v4562_v61 = vrot.slane %v4561_v38, 2  ;;  %v4567_v54 = vsel %vm167_vm0, %v9538_v47, -inf }
 0x57d   :  { %v4566_v36 = vsel %vm167_vm0, %v4539_v27, -inf }
 0x57e   :  { %v4563_v62 = vmax.f32 %v4561_v38, %v4562_v61  ;;  %v4568_v45 = vmax.f32 %v4566_v36, %v4567_v54 }
 0x580   :  { %v4564_v58 = vrot.slane %v4563_v62, 1  ;;  %v4569_v24 = vrot.slane %v4568_v45, 4 }
 0x581   :  { %v7606_v4 = vpop.f32.mrb[64].mxu0 }
 0x582   :  { %v4565_v34 = vmax.f32 %v4563_v62, %v4564_v58  ;;  %v4570_v23 = vmax.f32 %v4568_v45, %v4569_v24  ;;  %v9543_v40 = vmul.f32 %v7606_v4, %v4522_v25  ;;  %v7620_v51 = vpop.f32.mrb[60].mxu1  ;;  %v3983_v52 = vpop.f32.mrb[65].mxu0 }
 0x583   :  { %v9545_v46 = vmul.f32 %v7620_v51, %v4526_v59  ;;  %v9547_v7 = vmul.f32 %v4521_v37, %v3983_v52  ;;  %v4133_v26 = vpop.f32.mrb[61].mxu1  ;;  %v4530_v51 = vld [vmem:[#allocation5 + $0x68] sm:$0xff]  ;;  %v4523_v52 = vld [vmem:[#allocation5 + $0x30] sm:$0xff] }
 0x584   :  { %v4647_v38 = vsub.f32 %v4537_v29, %v4565_v34  ;;  %v4648_v18 = vsub.f32 %v4538_v35, %v4565_v34  ;;  %v4571_v61 = vrot.slane %v4570_v23, 2  ;;  %v4576_v54 = vsel %vm167_vm0, %v9543_v40, -inf  ;;  %v4524_v35 = vld [vmem:[#allocation5 + $0x38] sm:$0xff] }
 0x585   :  { %v4594_v36 = vsel %vm167_vm0, %v9545_v46, -inf  ;;  %v4575_v62 = vsel %vm167_vm0, %v9547_v7, -inf  ;;  %v9555_v45 = vmul.f32 %v4525_v1, %v4133_v26 }
 0x586   :  { %v4667_v25 = vmul.f32 1.442695, %v4647_v38  ;;  %v4669_v58 = vmul.f32 1.442695, %v4648_v18  ;;  %v4572_v24 = vmax.f32 %v4570_v23, %v4571_v61  ;;  %v4577_v59 = vmax.f32 %v4575_v62, %v4576_v54  ;;  %v4529_v18 = vld [vmem:[#allocation5 + $0x60] sm:$0xff] }
 0x587   :  { %v4593_v29 = vsel %vm167_vm0, %v9555_v45, -inf }
 0x588   :  { %8057 = vpow2.f32 %v4667_v25  ;;  %v4573_v37 = vrot.slane %v4572_v24, 1  ;;  %v4578_v4 = vrot.slane %v4577_v59, 4  ;;  %v4595_v34 = vmax.f32 %v4593_v29, %v4594_v36 }
 0x589   :  { %8059 = vpow2.f32 %v4669_v58  ;;  %v7613_v12 = vpop.f32.mrb[66].mxu0 }
 0x58a   :  { %v4574_v33 = vmax.f32 %v4572_v24, %v4573_v37  ;;  %v4579_v56 = vmax.f32 %v4577_v59, %v4578_v4  ;;  %v4596_v1 = vrot.slane %v4595_v34, 4  ;;  %v9559_v26 = vmul.f32 %v7613_v12, %v4524_v35  ;;  %v7634_v38 = vpop.f32.mrb[62].mxu1  ;;  %v4058_v23 = vpop.f32.mrb[67].mxu0 }
 0x58b   :  { %v9562_v61 = vmul.f32 %v7634_v38, %v4530_v51  ;;  %v9564_v54 = vmul.f32 %v4523_v52, %v4058_v23  ;;  %v4283_v62 = vpop.f32.mrb[63].mxu1  ;;  %v4534_v23 = vld [vmem:[#allocation5 + $0x88] sm:$0xff] }
 0x58c   :  { %v4649_v36 = vsub.f32 %v4539_v27, %v4574_v33  ;;  %v4650_v25 = vsub.f32 %v9538_v47, %v4574_v33  ;;  %v4580_v58 = vrot.slane %v4579_v56, 2  ;;  %v4597_v29 = vmax.f32 %v4595_v34, %v4596_v1  ;;  %v4528_v47 = vld [vmem:[#allocation5 + $0x58] sm:$0xff] }
 0x58d   :  { %v4585_v24 = vsel %vm167_vm0, %v9559_v26, -inf  ;;  %v4612_v12 = vsel %vm167_vm0, %v9562_v61, -inf  ;;  %v4584_v59 = vsel %vm167_vm0, %v9564_v54, -inf  ;;  %v9573_v35 = vmul.f32 %v4529_v18, %v4283_v62 }
 0x58e   :  { %v4671_v37 = vmul.f32 1.442695, %v4649_v36  ;;  %v4673_v4 = vmul.f32 1.442695, %v4650_v25  ;;  %v4581_v51 = vmax.f32 %v4579_v56, %v4580_v58  ;;  %v4598_v52 = vrot.slane %v4597_v29, 2 }
 0x58f   :  { %v4586_v27 = vmax.f32 %v4584_v59, %v4585_v24  ;;  %v4611_v33 = vsel %vm167_vm0, %v9573_v35, -inf  ;;  %v9580_v18 = vsel %vm4708_vm2, 1.0, %v10730_v22 }
 0x590   :  { %8061 = vpow2.f32 %v4671_v37  ;;  %v4582_v34 = vrot.slane %v4581_v51, 1  ;;  %v4599_v1 = vmax.f32 %v4597_v29, %v4598_v52  ;;  %v4613_v38 = vmax.f32 %v4611_v33, %v4612_v12 }
 0x591   :  { %8063 = vpow2.f32 %v4673_v4  ;;  %v4587_v62 = vrot.slane %v4586_v27, 4  ;;  %v7627_v56 = vpop.f32.mrb[68].mxu0 }
 0x592   :  { %v9582_v36 = vpop.eup %8057  ;;  %v4583_v25 = vmax.f32 %v4581_v51, %v4582_v34  ;;  %v4600_v58 = vrot.slane %v4599_v1, 1  ;;  %v4614_v24 = vrot.slane %v4613_v38, 4  ;;  %v9584_v59 = vmul.f32 %v7627_v56, %v4528_v47  ;;  %v7648_v37 = vpop.f32.mrb[64].mxu1 }
 0x593   :  { %v4208_v29 = vpop.f32.mrb[69].mxu0  ;;  %v8060_v12 = vpop.eup %8059  ;;  %v4733_v52 = vsel %vm167_vm0, %v9582_v36, 0.0  ;;  %v4588_v33 = vmax.f32 %v4586_v27, %v4587_v62  ;;  %v9588_v60 = vmul.f32 %v7648_v37, %v4534_v23  ;;  %v4533_v23 = vld [vmem:[#allocation5 + $0x80] sm:$0xff] }
 0x594   :  { %v9590_v39 = vmul.f32 %v4527_v15, %v4208_v29  ;;  %v4433_v4 = vpop.f32.mrb[65].mxu1  ;;  %v9593_v9 = vmul.f32 %v8060_v12, %v9580_v18  ;;  %v4651_v51 = vsub.f32 %v9547_v7, %v4583_v25  ;;  %v4652_v47 = vsub.f32 %v9543_v40, %v4583_v25 }
 0x595   :  { %v4601_v34 = vmax.f32 %v4599_v1, %v4600_v58  ;;  %v4589_v56 = vrot.slane %v4588_v33, 2  ;;  %v4615_v53 = vmax.f32 %v4613_v38, %v4614_v24  ;;  %v4603_v2 = vsel %vm167_vm0, %v9584_v59, -inf }
 0x596   :  { %v4630_v27 = vsel %vm167_vm0, %v9588_v60, -inf  ;;  %v4734_v15 = vsel %vm167_vm0, %v9593_v9, 0.0  ;;  %v4675_v62 = vmul.f32 1.442695, %v4651_v51  ;;  %v4677_v37 = vmul.f32 1.442695, %v4652_v47 }
 0x597   :  { %v4655_v29 = vsub.f32 %v9555_v45, %v4601_v34  ;;  %v4735_v7 = vadd.f32 %v4734_v15, %v4733_v52  ;;  %v4656_v40 = vsub.f32 %v9545_v46, %v4601_v34  ;;  %v4590_v1 = vmax.f32 %v4588_v33, %v4589_v56  ;;  %v4532_v33 = vld [vmem:[#allocation5 + $0x78] sm:$0xff] }
 0x598   :  { %v4616_v25 = vrot.slane %v4615_v53, 2  ;;  %8065 = vpow2.f32 %v4675_v62  ;;  %v4602_v58 = vsel %vm167_vm0, %v9590_v39, -inf  ;;  %v9607_v24 = vmul.f32 %v4533_v23, %v4433_v4 }
 0x599   :  { %v4683_v38 = vmul.f32 1.442695, %v4655_v29  ;;  %v4736_v12 = vrot.slane %v4735_v7, 4  ;;  %8067 = vpow2.f32 %v4677_v37  ;;  %v4685_v55 = vmul.f32 1.442695, %v4656_v40  ;;  %v7641_v51 = vpop.f32.mrb[70].mxu0 }
 0x59a   :  { %v4591_v42 = vrot.slane %v4590_v1, 1  ;;  %v9609_v47 = vpop.eup %8061  ;;  %v4617_v45 = vmax.f32 %v4615_v53, %v4616_v25  ;;  %v4604_v52 = vmax.f32 %v4602_v58, %v4603_v2  ;;  %v4629_v46 = vsel %vm167_vm0, %v9607_v24, -inf  ;;  %v4358_v34 = vpop.f32.mrb[71].mxu0 }
 0x59b   :  { %8069 = vpow2.f32 %v4683_v38  ;;  %v8064_v56 = vpop.eup %8063  ;;  %v4737_v15 = vadd.f32 %v4736_v12, %v4735_v7  ;;  %v4742_v4 = vsel %vm167_vm0, %v9609_v47, 0.0  ;;  %v4631_v40 = vmax.f32 %v4629_v46, %v4630_v27 }
 0x59c   :  { %8071 = vpow2.f32 %v4685_v55  ;;  %v4592_v23 = vmax.f32 %v4590_v1, %v4591_v42  ;;  %v9616_v62 = vmul.f32 %v8064_v56, %v9580_v18  ;;  %v4618_v37 = vrot.slane %v4617_v45, 1  ;;  %v4531_v42 = vld [vmem:[#allocation5 + $0x70] sm:$0xff] }
 0x59d   :  { %v4605_v29 = vrot.slane %v4604_v52, 4  ;;  %v4738_v53 = vrot.slane %v4737_v15, 2  ;;  %v9620_v38 = vmul.f32 %v7641_v51, %v4532_v33  ;;  %v4632_v55 = vrot.slane %v4631_v40, 4 }
 0x59e   :  { %v4653_v2 = vsub.f32 %v9564_v54, %v4592_v23  ;;  %v4654_v25 = vsub.f32 %v9559_v26, %v4592_v23  ;;  %v4743_v7 = vsel %vm167_vm0, %v9616_v62, 0.0  ;;  %v4619_v58 = vmax.f32 %v4617_v45, %v4618_v37 }
 0x59f   :  { %v4606_v12 = vmax.f32 %v4604_v52, %v4605_v29  ;;  %v9624_v1 = vadd.f32 %v4738_v53, %v4737_v15  ;;  %v4744_v56 = vadd.f32 %v4743_v7, %v4742_v4  ;;  %v4633_v26 = vmax.f32 %v4631_v40, %v4632_v55  ;;  %v4536_v7 = vld [vmem:[#allocation5 + $0x98] sm:$0xff] }
 0x5a0   :  { %v4679_v5 = vmul.f32 1.442695, %v4653_v2  ;;  %v4681_v31 = vmul.f32 1.442695, %v4654_v25  ;;  %v4659_v27 = vsub.f32 %v9573_v35, %v4619_v58  ;;  %v4660_v54 = vsub.f32 %v9562_v61, %v4619_v58 }
 0x5a1   :  { %v4607_v46 = vrot.slane %v4606_v12, 2  ;;  %v4745_v51 = vrot.slane %v4744_v56, 4  ;;  %v4621_v33 = vsel %vm167_vm0, %v9620_v38, -inf  ;;  %v9630_v45 = vmul.f32 %v4531_v42, %v4358_v34  ;;  %v7655_v52 = vpop.f32.mrb[72].mxu0 }
 0x5a2   :  { %8073 = vpow2.f32 %v4679_v5  ;;  %v9632_v23 = vpop.eup %8065  ;;  %v4691_v15 = vmul.f32 1.442695, %v4659_v27  ;;  %v4693_v4 = vmul.f32 1.442695, %v4660_v54  ;;  %v4508_v29 = vpop.f32.mrb[73].mxu0  ;;  %v4634_v40 = vrot.slane %v4633_v26, 2 }
 0x5a3   :  { %8075 = vpow2.f32 %v4681_v31  ;;  %v4608_v37 = vmax.f32 %v4606_v12, %v4607_v46  ;;  %v8068_v35 = vpop.eup %8067  ;;  %v4746_v53 = vadd.f32 %v4745_v51, %v4744_v56  ;;  %v4751_v61 = vsel %vm167_vm0, %v9632_v23, 0.0 }
 0x5a4   :  { %v4620_v5 = vsel %vm167_vm0, %v9630_v45, -inf  ;;  %v9641_v34 = vmul.f32 %v8068_v35, %v9580_v18  ;;  %8077 = vpow2.f32 %v4691_v15  ;;  %v4635_v42 = vmax.f32 %v4633_v26, %v4634_v40 }
 0x5a5   :  { %v9638_v2 = vpop.eup %8069  ;;  %v4609_v31 = vrot.slane %v4608_v37, 1  ;;  %v4622_v25 = vmax.f32 %v4620_v5, %v4621_v33  ;;  %v4747_v12 = vrot.slane %v4746_v53, 2  ;;  %8079 = vpow2.f32 %v4693_v4  ;;  %v4535_v5 = vld [vmem:[#allocation5 + $0x90] sm:$0xff] }
 0x5a6   :  { %v8072_v58 = vpop.eup %8071  ;;  %v4769_v55 = vsel %vm167_vm0, %v9638_v2, 0.0  ;;  %v4752_v56 = vsel %vm167_vm0, %v9641_v34, 0.0  ;;  %v4636_v33 = vrot.slane %v4635_v42, 1  ;;  %v9652_v35 = vmul.f32 %v7655_v52, %v4536_v7 }
 0x5a7   :  { %v9648_v27 = vmul.f32 %v8072_v58, %v9580_v18  ;;  %v4610_v54 = vmax.f32 %v4608_v37, %v4609_v31  ;;  %v4623_v46 = vrot.slane %v4622_v25, 4  ;;  %v9650_v51 = vadd.f32 %v4747_v12, %v4746_v53 }
 0x5a8   :  { %v4753_v15 = vadd.f32 %v4752_v56, %v4751_v61  ;;  %v4637_v21 = vmax.f32 %v4635_v42, %v4636_v33  ;;  %v4639_v37 = vsel %vm167_vm0, %v9652_v35, -inf  ;;  %v9660_v52 = vmul.f32 %v4535_v5, %v4508_v29 }
 0x5a9   :  { %v4770_v41 = vsel %vm167_vm0, %v9648_v27, 0.0  ;;  %v4657_v26 = vsub.f32 %v9590_v39, %v4610_v54  ;;  %v4658_v4 = vsub.f32 %v9584_v59, %v4610_v54  ;;  %v4624_v40 = vmax.f32 %v4622_v25, %v4623_v46 }
 0x5aa   :  { %v4754_v3 = vrot.slane %v4753_v15, 4  ;;  %v4771_v58 = vadd.f32 %v4770_v41, %v4769_v55  ;;  %v4663_v39 = vsub.f32 %v9607_v24, %v4637_v21  ;;  %v4664_v59 = vsub.f32 %v9588_v60, %v4637_v21 }
 0x5ab   :  { %v4687_v53 = vmul.f32 1.442695, %v4657_v26  ;;  %v4689_v61 = vmul.f32 1.442695, %v4658_v4  ;;  %v4625_v31 = vrot.slane %v4624_v40, 2  ;;  %v4638_v42 = vsel %vm167_vm0, %v9660_v52, -inf }
 0x5ac   :  { %v9662_v7 = vpop.eup %8073  ;;  %v4755_v12 = vadd.f32 %v4754_v3, %v4753_v15  ;;  %v4772_v56 = vrot.slane %v4771_v58, 4  ;;  %v4699_v24 = vmul.f32 1.442695, %v4663_v39  ;;  %v4701_v15 = vmul.f32 1.442695, %v4664_v59 }
 0x5ad   :  { %v8076_v25 = vpop.eup %8075  ;;  %v4760_v41 = vsel %vm167_vm0, %v9662_v7, 0.0  ;;  %8081 = vpow2.f32 %v4687_v53  ;;  %v4626_v55 = vmax.f32 %v4624_v40, %v4625_v31  ;;  %v4640_v60 = vmax.f32 %v4638_v42, %v4639_v37 }
 0x5ae   :  { %v4756_v54 = vrot.slane %v4755_v12, 2  ;;  %v4773_v29 = vadd.f32 %v4772_v56, %v4771_v58  ;;  %v9671_v46 = vmul.f32 %v8076_v25, %v9580_v18  ;;  %8083 = vpow2.f32 %v4689_v61  ;;  %v9673_v3 = vpop.eup %8077 }
 0x5af   :  { %v4627_v21 = vrot.slane %v4626_v55, 1  ;;  %v8080_v33 = vpop.eup %8079  ;;  %v4787_v40 = vsel %vm167_vm0, %v9673_v3, 0.0  ;;  %8085 = vpow2.f32 %v4699_v24  ;;  %v4641_v56 = vrot.slane %v4640_v60, 4 }
 0x5b0   :  { %v4757_v5 = vadd.f32 %v4756_v54, %v4755_v12  ;;  %v4774_v26 = vrot.slane %v4773_v29, 2  ;;  %v4761_v4 = vsel %vm167_vm0, %v9671_v46, 0.0  ;;  %v9680_v53 = vmul.f32 %v8080_v33, %v9580_v18 }
 0x5b1   :  { %v4762_v58 = vadd.f32 %v4761_v4, %v4760_v41  ;;  %v4628_v61 = vmax.f32 %v4626_v55, %v4627_v21  ;;  %8087 = vpow2.f32 %v4701_v15  ;;  %v4740_v37 = vrot.slane %v9624_v1, 1 }
 0x5b2   :  { %v4775_v31 = vadd.f32 %v4774_v26, %v4773_v29  ;;  %v4788_v12 = vsel %vm167_vm0, %v9680_v53, 0.0  ;;  %v4642_v41 = vmax.f32 %v4640_v60, %v4641_v56  ;;  %v4749_v24 = vrot.slane %v9650_v51, 1 }
 0x5b3   :  { %v4763_v39 = vrot.slane %v4762_v58, 4  ;;  %v4661_v59 = vsub.f32 %v9630_v45, %v4628_v61  ;;  %v4662_v25 = vsub.f32 %v9620_v38, %v4628_v61  ;;  %v4789_v42 = vadd.f32 %v4788_v12, %v4787_v40 }
 0x5b4   :  { %v4741_v54 = vadd.f32 %v4740_v37, %v9624_v1  ;;  %v4758_v21 = vrot.slane %v4757_v5, 1  ;;  %v4643_v26 = vrot.slane %v4642_v41, 2  ;;  %v4750_v4 = vadd.f32 %v4749_v24, %v9650_v51 }
 0x5b5   :  { %v4764_v55 = vadd.f32 %v4763_v39, %v4762_v58  ;;  %v4695_v29 = vmul.f32 1.442695, %v4661_v59  ;;  %v4697_v15 = vmul.f32 1.442695, %v4662_v25  ;;  %v4790_v33 = vrot.slane %v4789_v42, 4 }
 0x5b6   :  { %8089 = vrcp.f32 %v4741_v54  ;;  %v4759_v38 = vadd.f32 %v4758_v21, %v4757_v5  ;;  %v4776_v40 = vrot.slane %v4775_v31, 1  ;;  %v4644_v1 = vmax.f32 %v4642_v41, %v4643_v26 }
 0x5b7   :  { %v9690_v44 = vpop.eup %8081  ;;  %v4765_v45 = vrot.slane %v4764_v55, 2  ;;  %8091 = vpow2.f32 %v4695_v29  ;;  %v4791_v61 = vadd.f32 %v4790_v33, %v4789_v42 }
 0x5b8   :  { %v8084_v60 = vpop.eup %8083  ;;  %8093 = vpow2.f32 %v4697_v15  ;;  %v4777_v37 = vadd.f32 %v4776_v40, %v4775_v31  ;;  %v4645_v12 = vrot.slane %v4644_v1, 1  ;;  %v4778_v59 = vsel %vm167_vm0, %v9690_v44, 0.0 }
 0x5b9   :  { %v4766_v56 = vadd.f32 %v4765_v45, %v4764_v55  ;;  %v9693_v58 = vmul.f32 %v8084_v60, %v9580_v18  ;;  %8095 = vrcp.f32 %v4750_v4  ;;  %v4792_v39 = vrot.slane %v4791_v61, 2  ;;  %v9695_v51 = vpop.eup %8085 }
 0x5ba   :  { %8097 = vrcp.f32 %v4759_v38  ;;  %v4646_v24 = vmax.f32 %v4644_v1, %v4645_v12  ;;  %v4805_v26 = vsel %vm167_vm0, %v9695_v51, 0.0 }
 0x5bb   :  { %v4779_v5 = vsel %vm167_vm0, %v9693_v58, 0.0  ;;  %8099 = vrcp.f32 %v4777_v37  ;;  %v4767_v25 = vrot.slane %v4766_v56, 1  ;;  %v8088_v42 = vpop.eup %8087  ;;  %v4793_v41 = vadd.f32 %v4792_v39, %v4791_v61 }
 0x5bc   :  { %v4780_v54 = vadd.f32 %v4779_v5, %v4778_v59  ;;  %v9702_v55 = vmul.f32 %v8088_v42, %v9580_v18  ;;  %v4665_v15 = vsub.f32 %v9660_v52, %v4646_v24  ;;  %v4666_v21 = vsub.f32 %v9652_v35, %v4646_v24 }
 0x5bd   :  { %v4768_v31 = vadd.f32 %v4767_v25, %v4766_v56  ;;  %v4794_v33 = vrot.slane %v4793_v41, 1 }
 0x5be   :  { %v4781_v29 = vrot.slane %v4780_v54, 4  ;;  %v4806_v4 = vsel %vm167_vm0, %v9702_v55, 0.0  ;;  %v4703_v60 = vmul.f32 1.442695, %v4665_v15  ;;  %v4705_v61 = vmul.f32 1.442695, %v4666_v21 }
 0x5bf   :  { %8101 = vrcp.f32 %v4768_v31  ;;  %v4807_v40 = vadd.f32 %v4806_v4, %v4805_v26  ;;  %v4795_v35 = vadd.f32 %v4794_v33, %v4793_v41 }
 0x5c0   :  { %v8090_v45 = vpop.eup %8089  ;;  %v4782_v38 = vadd.f32 %v4781_v29, %v4780_v54  ;;  %8103 = vpow2.f32 %v4703_v60 }
 0x5c1   :  { %v9710_v1 = vpop.eup %8091  ;;  %v4833_v56 = vmul.f32 %v8090_v45, %v9582_v36  ;;  %v4834_v52 = vmul.f32 %v8090_v45, %v9593_v9  ;;  %v4808_v12 = vrot.slane %v4807_v40, 4  ;;  %8105 = vpow2.f32 %v4705_v61 }
 0x5c2   :  { %v8094_v37 = vpop.eup %8093  ;;  %v4783_v39 = vrot.slane %v4782_v38, 2  ;;  %v4796_v25 = vsel %vm167_vm0, %v9710_v1, 0.0  ;;  %8107 = vrcp.f32 %v4795_v35 }
 0x5c3   :  { %v8096_v59 = vpop.eup %8095  ;;  %v9715_v5 = vmul.f32 %v8094_v37, %v9580_v18  ;;  %7660 = vmatprep.mubr.msk.f32.mxu1 %vm167_vm0, %v4833_v56  ;;  %v4809_v36 = vadd.f32 %v4808_v12, %v4807_v40 }
 0x5c4   :  { %v8098_v42 = vpop.eup %8097  ;;  %v4784_v54 = vadd.f32 %v4783_v39, %v4782_v38  ;;  %7661 = vmatmul.mubr.msk.f32.vlgmr.msra.gmra.mrb[66].mxu1 %vm167_vm0, %v4834_v52  ;;  %v4835_v9 = vmul.f32 %v8096_v59, %v9609_v47  ;;  %v4836_v41 = vmul.f32 %v8096_v59, %v9616_v62 }
 0x5c5   :  { %v8100_v24 = vpop.eup %8099  ;;  %v4797_v31 = vsel %vm167_vm0, %v9715_v5, 0.0  ;;  %7933 = vmatpush3.bf16.msra.mxu1 %v9380_v28  ;;  %v4837_v29 = vmul.f32 %v8098_v42, %v9632_v23  ;;  %v4838_v15 = vmul.f32 %v8098_v42, %v9641_v34  ;;  %v4810_v21 = vrot.slane %v4809_v36, 2 }
 0x5c6   :  { %v4798_v33 = vadd.f32 %v4797_v31, %v4796_v25  ;;  %7939 = vmatprep.subr.bf16.mxu1 %v9402_v63  ;;  %7667 = vmatprep.mubr.msk.f32.mxu1 %vm167_vm0, %v4835_v9  ;;  %v4841_v47 = vmul.f32 %v8100_v24, %v9638_v2  ;;  %v4842_v62 = vmul.f32 %v8100_v24, %v9648_v27  ;;  %v4785_v26 = vrot.slane %v4784_v54, 1 }
 0x5c7   :  { %7674 = vmatprep.mubr.msk.f32.mxu0 %vm167_vm0, %v4837_v29  ;;  %v4811_v4 = vadd.f32 %v4810_v21, %v4809_v36 }
 0x5c8   :  { %v4799_v28 = vrot.slane %v4798_v33, 4  ;;  %7668 = vmatmul.mubr.msk.f32.vlgmr.msra.gmra.mrb[68].mxu1 %vm167_vm0, %v4836_v41  ;;  %7675 = vmatmul.mubr.msk.f32.vlgmr.msra.gmra.mrb[74].mxu0 %vm167_vm0, %v4838_v15  ;;  %v4786_v34 = vadd.f32 %v4785_v26, %v4784_v54 }
 0x5c9   :  { %v8102_v23 = vpop.eup %8101  ;;  %7941 = vmatpush3.bf16.msra.mxu1 %v9402_v63  ;;  %7945 = vmatpush3.bf16.msra.mxu0 %v9412_v50  ;;  %v4812_v38 = vrot.slane %v4811_v4, 1 }
 0x5ca   :  { %v4800_v45 = vadd.f32 %v4799_v28, %v4798_v33  ;;  %7947 = vmatprep.subr.bf16.mxu1 %v9425_v16  ;;  %7688 = vmatprep.mubr.msk.f32.mxu0 %vm167_vm0, %v4841_v47  ;;  %v4839_v2 = vmul.f32 %v8102_v23, %v9662_v7  ;;  %v4840_v27 = vmul.f32 %v8102_v23, %v9671_v46  ;;  %8109 = vrcp.f32 %v4786_v34  ;;  %v8104_v40 = vpop.eup %8103 }
 0x5cb   :  { %7951 = vmatprep.subr.bf16.mxu0 %v9436_v49  ;;  %v4813_v63 = vadd.f32 %v4812_v38, %v4811_v4  ;;  %v8106_v50 = vpop.eup %8105  ;;  %v4814_v56 = vsel %vm167_vm0, %v8104_v40, 0.0 }
 0x5cc   :  { %v4801_v60 = vrot.slane %v4800_v45, 2  ;;  %7689 = vmatmul.mubr.msk.f32.vlgmr.msra.gmra.mrb[76].mxu0 %vm167_vm0, %v4842_v62  ;;  %7681 = vmatprep.mubr.msk.f32.mxu1 %vm167_vm0, %v4839_v2  ;;  %v4732_v7 = vmul.f32 %v8106_v50, %v9580_v18  ;;  %v8108_v46 = vpop.eup %8107  ;;  %v9846_v50 = vpop.permute.xlu1 %6408 }
 0x5cd   :  { %7953 = vmatpush3.bf16.msra.mxu0 %v9436_v49  ;;  %7682 = vmatmul.mubr.msk.f32.vlgmr.msra.gmra.mrb[70].mxu1 %vm167_vm0, %v4840_v27  ;;  %8111 = vrcp.f32 %v4813_v63  ;;  %v4845_v35 = vmul.f32 %v8108_v46, %v9673_v3  ;;  %v4846_v49 = vmul.f32 %v8108_v46, %v9680_v53  ;;  %v9843_v63 = vld [vmem:[%s10607_s6 + $0x88] sm:$0xff] }
 0x5ce   :  { %v4802_v61 = vadd.f32 %v4801_v60, %v4800_v45  ;;  %7959 = vmatprep.subr.bf16.mxu0 %v9470_v32  ;;  %7949 = vmatpush3.bf16.msra.mxu1 %v9425_v16  ;;  %v4815_v52 = vsel %vm167_vm0, %v4732_v7, 0.0  ;;  %v9837_v60 = vld [vmem:[%s10607_s6 + $0x90] sm:$0xff] }
 0x5cf   :  { %7955 = vmatprep.subr.bf16.mxu1 %v9457_v48  ;;  %v4816_v39 = vadd.f32 %v4815_v52, %v4814_v56  ;;  %7702 = vmatprep.mubr.msk.f32.mxu0 %vm167_vm0, %v4845_v35 }
 0x5d0   :  { %v4803_v37 = vrot.slane %v4802_v61, 1  ;;  %7703 = vmatmul.mubr.msk.f32.vlgmr.msra.gmra.mrb[78].mxu0 %vm167_vm0, %v4846_v49 }
 0x5d1   :  { %v4817_v12 = vrot.slane %v4816_v39, 4  ;;  %7961 = vmatpush3.bf16.msra.mxu0 %v9470_v32 }
 0x5d2   :  { %v4804_v18 = vadd.f32 %v4803_v37, %v4802_v61  ;;  %v9848_v61 = vpop.permute.xlu0 %6403 }
 0x5d3   :  { %v4818_v59 = vadd.f32 %v4817_v12, %v4816_v39 }
 0x5d4   :  { %8113 = vrcp.f32 %v4804_v18  ;;  %v8110_v16 = vpop.eup %8109 }
 0x5d5   :  { %v4843_v25 = vmul.f32 %v8110_v16, %v9690_v44  ;;  %v4844_v42 = vmul.f32 %v8110_v16, %v9693_v58  ;;  %v4819_v3 = vrot.slane %v4818_v59, 2 }
 0x5d6   :  { %v9852_v46 = vpop.permute.xlu0 %6418 }
 0x5d7   :  { %v8112_v54 = vpop.eup %8111  ;;  %7695 = vmatprep.mubr.msk.f32.mxu1 %vm167_vm0, %v4843_v25  ;;  %v4820_v53 = vadd.f32 %v4819_v3, %v4818_v59 }
 0x5d8   :  { %v4849_v36 = vmul.f32 %v8112_v54, %v9695_v51  ;;  %7696 = vmatmul.mubr.msk.f32.vlgmr.msra.gmra.mrb[72].mxu1 %vm167_vm0, %v4844_v42  ;;  %v4850_v9 = vmul.f32 %v8112_v54, %v9702_v55  ;;  %v10738_v42 = vlaneseq }
 0x5d9   :  { %7957 = vmatpush3.bf16.msra.mxu1 %v9457_v48  ;;  %v4821_v32 = vrot.slane %v4820_v53, 1 }
 0x5da   :  { %7716 = vmatprep.mubr.msk.f32.mxu0 %vm167_vm0, %v4849_v36  ;;  %7963 = vmatprep.subr.bf16.mxu1 %v9491_v17  ;;  %v9856_v52 = vpop.permute.xlu0 %6428  ;;  %v5744_v3 = vand.u32 127, %v10738_v42 }
 0x5db   :  { %7717 = vmatmul.mubr.msk.f32.vlgmr.msra.gmra.mrb[80].mxu0 %vm167_vm0, %v4850_v9  ;;  %v4822_v44 = vadd.f32 %v4821_v32, %v4820_v53 }
 0x5dd   :  { %8115 = vrcp.f32 %v4822_v44 }
 0x5de   :  { %v8114_v58 = vpop.eup %8113  ;;  %v9860_v49 = vpop.permute.xlu0 %6438 }
 0x5df   :  { %v4847_v41 = vmul.f32 %v8114_v58, %v9710_v1  ;;  %v4848_v24 = vmul.f32 %v8114_v58, %v9715_v5 }
 0x5e1   :  { %7709 = vmatprep.mubr.msk.f32.mxu1 %vm167_vm0, %v4847_v41 }
 0x5e2   :  { %7710 = vmatmul.mubr.msk.f32.vlgmr.msra.gmra.mrb[74].mxu1 %vm167_vm0, %v4848_v24  ;;  %v9864_v39 = vpop.permute.xlu0 %6448 }
 0x5e3   :  { %7965 = vmatpush3.bf16.msra.mxu1 %v9491_v17  ;;  %10732 = vst [vmem:[#allocation52_spill] sm:$0xff] %v9864_v39 }
 0x5e6   :  { %v9868_v12 = vpop.permute.xlu0 %6458 }
 0x5e7   :  { %v8116_v48 = vpop.eup %8115  ;;  %10734 = vst [vmem:[#allocation54_spill] sm:$0xff] %v9868_v12 }
 0x5e8   :  { %v4851_v51 = vmul.f32 %v8116_v48, %v8104_v40  ;;  %v4852_v55 = vmul.f32 %v8116_v48, %v4732_v7  ;;  %v9850_v7 = vpop.permute.xlu1 %6413 }
 0x5ea   :  { %7723 = vmatprep.mubr.msk.f32.mxu1 %vm167_vm0, %v4851_v51  ;;  %v9872_v59 = vpop.permute.xlu0 %6468 }
 0x5eb   :  { %7724 = vmatmul.mubr.msk.f32.vlgmr.msra.gmra.mrb[76].mxu1 %vm167_vm0, %v4852_v55  ;;  %10736 = vst [vmem:[#allocation56_spill] sm:$0xff] %v9872_v59  ;;  %vm5745_vm0 = vcmp.lt.s32.totalorder %v5744_v3, 16 }
 0x5ec   :  { %v9854_v56 = vpop.permute.xlu1 %6423  ;;  %v9882_v44 = vsel %vm5745_vm0, 1.0, %v10730_v22 }
 0x5ee   :  { %v9877_v54 = vpop.permute.xlu0 %6478 }
 0x5ef   :  { %10739 = vst [vmem:[#allocation58_spill] sm:$0xff] %v9877_v54 }
 0x5f0   :  { %v9858_v35 = vpop.permute.xlu1 %6433 }
 0x5f4   :  { %v9862_v37 = vpop.permute.xlu1 %6443 }
 0x5f5   :  { %10731 = vst [vmem:[#allocation51_spill] sm:$0xff] %v9862_v37 }
 0x5f8   :  { %v9866_v18 = vpop.permute.xlu1 %6453 }
 0x5f9   :  { %10733 = vst [vmem:[#allocation53_spill] sm:$0xff] %v9866_v18 }
 0x5fc   :  { %v9870_v16 = vpop.permute.xlu1 %6463 }
 0x5fd   :  { %10735 = vst [vmem:[#allocation55_spill] sm:$0xff] %v9870_v16 }
 0x600   :  { %v9874_v25 = vpop.permute.xlu1 %6473 }
 0x601   :  { %10737 = vst [vmem:[#allocation57_spill] sm:$0xff] %v9874_v25 }
 0x604   :  { %v9879_v53 = vpop.permute.xlu1 %6483 }
 0x605   :  { %10740 = vst [vmem:[#allocation59_spill] sm:$0xff] %v9879_v53 }
 0x697   :  { %v9774_v31 = vpop.f32.mrb[66].mxu1 }
 0x698   :  { %5665 = vadd.xlane.f32.xlu0 %v9774_v31  ;;  %v9777_v1 = vpop.f32.mrb[67].mxu1 }
 0x699   :  { %5663 = vadd.xlane.f32.xlu1 %v9777_v1 }
 0x69b   :  { %v9780_v5 = vpop.f32.mrb[68].mxu1  ;;  %v9782_v29 = vpop.f32.mrb[74].mxu0 }
 0x69c   :  { %v9784_v17 = vpop.f32.mrb[69].mxu1  ;;  %v9786_v15 = vpop.f32.mrb[75].mxu0 }
 0x69d   :  { %5669 = vadd.xlane.f32.xlu1 %v9780_v5  ;;  %5667 = vadd.xlane.f32.xlu0 %v9784_v17 }
 0x69f   :  { %v9790_v21 = vpop.f32.mrb[76].mxu0 }
 0x6a0   :  { %v9792_v33 = vpop.f32.mrb[77].mxu0  ;;  %v9794_v47 = vpop.f32.mrb[70].mxu1 }
 0x6a1   :  { %5673 = vadd.xlane.f32.xlu1 %v9782_v29  ;;  %5671 = vadd.xlane.f32.xlu0 %v9786_v15  ;;  %v9798_v62 = vpop.f32.mrb[71].mxu1 }
 0x6a3   :  { %v9802_v26 = vpop.f32.mrb[78].mxu0 }
 0x6a4   :  { %v9804_v4 = vpop.f32.mrb[79].mxu0 }
 0x6a5   :  { %5681 = vadd.xlane.f32.xlu1 %v9790_v21  ;;  %5679 = vadd.xlane.f32.xlu0 %v9792_v33 }
 0x6a9   :  { %5677 = vadd.xlane.f32.xlu1 %v9794_v47  ;;  %5675 = vadd.xlane.f32.xlu0 %v9798_v62 }
 0x6ab   :  { %v9808_v28 = vpop.f32.mrb[72].mxu1 }
 0x6ac   :  { %v9812_v23 = vpop.f32.mrb[73].mxu1 }
 0x6ad   :  { %5689 = vadd.xlane.f32.xlu1 %v9802_v26  ;;  %5687 = vadd.xlane.f32.xlu0 %v9804_v4 }
 0x6ae   :  { %v9814_v34 = vpop.f32.mrb[80].mxu0 }
 0x6af   :  { %v9816_v45 = vpop.f32.mrb[81].mxu0 }
 0x6b1   :  { %5685 = vadd.xlane.f32.xlu1 %v9808_v28  ;;  %5683 = vadd.xlane.f32.xlu0 %v9812_v23 }
 0x6b5   :  { %5697 = vadd.xlane.f32.xlu1 %v9814_v34  ;;  %5695 = vadd.xlane.f32.xlu0 %v9816_v45  ;;  %v9822_v2 = vpop.f32.mrb[74].mxu1 }
 0x6b6   :  { %v9824_v27 = vpop.f32.mrb[75].mxu1 }
 0x6b9   :  { %5693 = vadd.xlane.f32.xlu1 %v9822_v2  ;;  %5691 = vadd.xlane.f32.xlu0 %v9824_v27 }
 0x6be   :  { %v9828_v38 = vpop.f32.mrb[76].mxu1 }
 0x6bf   :  { %5701 = vadd.xlane.f32.xlu1 %v9828_v38  ;;  %v9831_v40 = vpop.f32.mrb[77].mxu1 }
 0x6c0   :  { %5699 = vadd.xlane.f32.xlu0 %v9831_v40 }
 0x6d0   :  { %6493 = vperm.xlu1 %7976, %v9837_v60  }
 0x6d6   :  { %6488 = vperm.xlu0 %7975, %v9843_v63  }
 0x725   :  { %v5666_v36 = vpop.xlane.xlu0 %5665 }
 0x726   :  { %v5704_v9 = vmul.f32 0.0625, %v5666_v36  ;;  %v5664_v32 = vpop.xlane.xlu1 %5663 }
 0x727   :  { %v5703_v58 = vmul.f32 0.0625, %v5664_v32 }
 0x728   :  { %v5724_v41 = vsub.f32 %v9774_v31, %v5704_v9 }
 0x729   :  { %v5723_v24 = vsub.f32 %v9777_v1, %v5703_v58 }
 0x72a   :  { %v9887_v48 = vmul.f32 %v9882_v44, %v5724_v41  ;;  %v5670_v51 = vpop.xlane.xlu1 %5669  ;;  %v5668_v55 = vpop.xlane.xlu0 %5667 }
 0x72b   :  { %v5706_v42 = vmul.f32 0.0625, %v5670_v51  ;;  %v5705_v25 = vmul.f32 0.0625, %v5668_v55  ;;  %v9890_v3 = vmul.f32 %v9882_v44, %v5723_v24 }
 0x72c   :  { %v5769_v36 = vmul.f32 %v9887_v48, %v9887_v48 }
 0x72d   :  { %v5726_v53 = vsub.f32 %v9780_v5, %v5706_v42  ;;  %v5725_v32 = vsub.f32 %v9784_v17, %v5705_v25  ;;  %v5768_v31 = vmul.f32 %v9890_v3, %v9890_v3 }
 0x72e   :  { %5790 = vadd.xlane.f32.xlu1 %v5769_v36  ;;  %v5674_v1 = vpop.xlane.xlu1 %5673  ;;  %v5672_v9 = vpop.xlane.xlu0 %5671 }
 0x72f   :  { %v9899_v58 = vmul.f32 %v9882_v44, %v5726_v53  ;;  %5788 = vadd.xlane.f32.xlu0 %v5768_v31  ;;  %v5708_v41 = vmul.f32 0.0625, %v5674_v1  ;;  %v5707_v24 = vmul.f32 0.0625, %v5672_v9  ;;  %v9902_v51 = vmul.f32 %v9882_v44, %v5725_v32 }
 0x731   :  { %v5728_v55 = vsub.f32 %v9782_v29, %v5708_v41  ;;  %v5727_v5 = vsub.f32 %v9786_v15, %v5707_v24  ;;  %v5771_v17 = vmul.f32 %v9899_v58, %v9899_v58  ;;  %v5770_v25 = vmul.f32 %v9902_v51, %v9902_v51 }
 0x732   :  { %v5682_v42 = vpop.xlane.xlu1 %5681  ;;  %v5680_v36 = vpop.xlane.xlu0 %5679 }
 0x733   :  { %v9911_v53 = vmul.f32 %v9882_v44, %v5728_v55  ;;  %5794 = vadd.xlane.f32.xlu1 %v5771_v17  ;;  %5792 = vadd.xlane.f32.xlu0 %v5770_v25  ;;  %v5712_v31 = vmul.f32 0.0625, %v5682_v42  ;;  %v5711_v32 = vmul.f32 0.0625, %v5680_v36  ;;  %v9914_v1 = vmul.f32 %v9882_v44, %v5727_v5 }
 0x735   :  { %v5732_v29 = vsub.f32 %v9790_v21, %v5712_v31  ;;  %v5731_v15 = vsub.f32 %v9792_v33, %v5711_v32  ;;  %v5773_v9 = vmul.f32 %v9911_v53, %v9911_v53  ;;  %v5772_v41 = vmul.f32 %v9914_v1, %v9914_v1 }
 0x736   :  { %v5678_v24 = vpop.xlane.xlu1 %5677  ;;  %v5676_v55 = vpop.xlane.xlu0 %5675 }
 0x737   :  { %v9923_v17 = vmul.f32 %v9882_v44, %v5732_v29  ;;  %v9926_v25 = vmul.f32 %v9882_v44, %v5731_v15  ;;  %v5710_v5 = vmul.f32 0.0625, %v5678_v24  ;;  %v5709_v42 = vmul.f32 0.0625, %v5676_v55  ;;  %5798 = vadd.xlane.f32.xlu1 %v5773_v9  ;;  %5796 = vadd.xlane.f32.xlu0 %v5772_v41 }
 0x739   :  { %v5730_v21 = vsub.f32 %v9794_v47, %v5710_v5  ;;  %v5729_v33 = vsub.f32 %v9798_v62, %v5709_v42  ;;  %v5777_v36 = vmul.f32 %v9923_v17, %v9923_v17  ;;  %v5776_v31 = vmul.f32 %v9926_v25, %v9926_v25 }
 0x73a   :  { %v5690_v32 = vpop.xlane.xlu1 %5689  ;;  %v5688_v29 = vpop.xlane.xlu0 %5687  ;;  %v6284_v47 = vrot.slane %v8769_v57, 4 }
 0x73b   :  { %v9935_v54 = vmul.f32 %v9882_v44, %v5730_v21  ;;  %v9938_v15 = vmul.f32 %v9882_v44, %v5729_v33  ;;  %v5716_v9 = vmul.f32 0.0625, %v5690_v32  ;;  %v5715_v41 = vmul.f32 0.0625, %v5688_v29  ;;  %5806 = vadd.xlane.f32.xlu1 %v5777_v36  ;;  %5804 = vadd.xlane.f32.xlu0 %v5776_v31 }
 0x73d   :  { %v5736_v62 = vsub.f32 %v9802_v26, %v5716_v9  ;;  %v5735_v24 = vsub.f32 %v9804_v4, %v5715_v41  ;;  %v5775_v55 = vmul.f32 %v9935_v54, %v9935_v54  ;;  %v5774_v5 = vmul.f32 %v9938_v15, %v9938_v15 }
 0x73e   :  { %v5686_v42 = vpop.xlane.xlu1 %5685  ;;  %v5684_v21 = vpop.xlane.xlu0 %5683  ;;  %v6285_v26 = vadd.f32 %v6284_v47, %v8769_v57 }
 0x73f   :  { %v9948_v33 = vmul.f32 %v9882_v44, %v5736_v62  ;;  %v9951_v36 = vmul.f32 %v9882_v44, %v5735_v24  ;;  %v5714_v31 = vmul.f32 0.0625, %v5686_v42  ;;  %v5713_v32 = vmul.f32 0.0625, %v5684_v21  ;;  %5802 = vadd.xlane.f32.xlu1 %v5775_v55  ;;  %5800 = vadd.xlane.f32.xlu0 %v5774_v5 }
 0x741   :  { %v5734_v4 = vsub.f32 %v9808_v28, %v5714_v31  ;;  %v5733_v29 = vsub.f32 %v9812_v23, %v5713_v32  ;;  %v5781_v9 = vmul.f32 %v9948_v33, %v9948_v33  ;;  %v5780_v41 = vmul.f32 %v9951_v36, %v9951_v36 }
 0x742   :  { %v5698_v62 = vpop.xlane.xlu1 %5697  ;;  %v5696_v16 = vpop.xlane.xlu0 %5695  ;;  %v6286_v28 = vrot.slane %v6285_v26, 2 }
 0x743   :  { %v9961_v24 = vmul.f32 %v9882_v44, %v5734_v4  ;;  %v9964_v55 = vmul.f32 %v9882_v44, %v5733_v29  ;;  %v5720_v5 = vmul.f32 0.0625, %v5698_v62  ;;  %v5719_v57 = vmul.f32 0.0625, %v5696_v16  ;;  %5814 = vadd.xlane.f32.xlu1 %v5781_v9  ;;  %5812 = vadd.xlane.f32.xlu0 %v5780_v41 }
 0x745   :  { %v5740_v23 = vsub.f32 %v9814_v34, %v5720_v5  ;;  %v5739_v47 = vsub.f32 %v9816_v45, %v5719_v57  ;;  %v5779_v42 = vmul.f32 %v9961_v24, %v9961_v24  ;;  %v5778_v21 = vmul.f32 %v9964_v55, %v9964_v55 }
 0x746   :  { %v5694_v31 = vpop.xlane.xlu1 %5693  ;;  %v5692_v32 = vpop.xlane.xlu0 %5691  ;;  %v6287_v34 = vadd.f32 %v6286_v28, %v6285_v26 }
 0x747   :  { %v9973_v4 = vmul.f32 %v9882_v44, %v5740_v23  ;;  %v9976_v16 = vmul.f32 %v9882_v44, %v5739_v47  ;;  %v5718_v29 = vmul.f32 0.0625, %v5694_v31  ;;  %v5717_v9 = vmul.f32 0.0625, %v5692_v32  ;;  %5810 = vadd.xlane.f32.xlu1 %v5779_v42  ;;  %5808 = vadd.xlane.f32.xlu0 %v5778_v21 }
 0x748   :  { %v6288_v47 = vrot.slane %v6287_v34, 1 }
 0x749   :  { %v5738_v45 = vsub.f32 %v9822_v2, %v5718_v29  ;;  %v5737_v41 = vsub.f32 %v9824_v27, %v5717_v9  ;;  %v5785_v62 = vmul.f32 %v9973_v4, %v9973_v4  ;;  %v5784_v5 = vmul.f32 %v9976_v16, %v9976_v16 }
 0x74a   :  { %v6289_v31 = vadd.f32 %v6288_v47, %v6287_v34 }
 0x74b   :  { %v9985_v57 = vmul.f32 %v9882_v44, %v5738_v45  ;;  %v9988_v23 = vmul.f32 %v9882_v44, %v5737_v41  ;;  %5822 = vadd.xlane.f32.xlu1 %v5785_v62  ;;  %5820 = vadd.xlane.f32.xlu0 %v5784_v5 }
 0x74c   :  { %v5702_v26 = vpop.xlane.xlu1 %5701  ;;  %vm6371_vm3 = vcmp.eq.f32.partialorder %v6289_v31, 0.0 }
 0x74d   :  { %v5783_v2 = vmul.f32 %v9985_v57, %v9985_v57  ;;  %v5782_v27 = vmul.f32 %v9988_v23, %v9988_v23  ;;  %v5722_v28 = vmul.f32 0.0625, %v5702_v26  ;;  %v5700_v42 = vpop.xlane.xlu0 %5699  ;;  %v6381_v5 = vsel %vm6371_vm3, 1.0, %v6289_v31 }
 0x74e   :  { %v5721_v21 = vmul.f32 0.0625, %v5700_v42  ;;  %8117 = vrcp.f32 %v6381_v5 }
 0x74f   :  { %5818 = vadd.xlane.f32.xlu1 %v5783_v2  ;;  %5816 = vadd.xlane.f32.xlu0 %v5782_v27  ;;  %v5742_v32 = vsub.f32 %v9828_v38, %v5722_v28 }
 0x750   :  { %v5741_v29 = vsub.f32 %v9831_v40, %v5721_v21  ;;  %v10009_v40 = vld [vmem:[%s10607_s6 + $0x98] sm:$0xff]  ;;  %v10012_v34 = vpop.permute.xlu1 %6493 }
 0x751   :  { %v9997_v9 = vmul.f32 %v9882_v44, %v5742_v32  ;;  %10741 = vst [vmem:[#allocation60_spill] sm:$0xff] %v10012_v34 }
 0x752   :  { %v10000_v45 = vmul.f32 %v9882_v44, %v5741_v29 }
 0x753   :  { %v5787_v41 = vmul.f32 %v9997_v9, %v9997_v9 }
 0x754   :  { %v5786_v62 = vmul.f32 %v10000_v45, %v10000_v45 }
 0x755   :  { %5826 = vadd.xlane.f32.xlu1 %v5787_v41  ;;  %v10014_v47 = vpop.permute.xlu0 %6488 }
 0x756   :  { %5824 = vadd.xlane.f32.xlu0 %v5786_v62  ;;  %10742 = vst [vmem:[#allocation61_spill] sm:$0xff] %v10014_v47 }
 0x758   :  { %v8118_v38 = vpop.eup %8117 }
 0x766   :  { %6593 = vperm.xlu1 %7976, %v8118_v38  }
 0x76c   :  { %6498 = vperm.xlu0 %7975, %v10009_v40  }
 0x7bb   :  { %v5791_v2 = vpop.xlane.xlu1 %5790 }
 0x7bc   :  { %v5829_v27 = vmul.f32 0.0625, %v5791_v2  ;;  %v5789_v26 = vpop.xlane.xlu0 %5788 }
 0x7bd   :  { %v5828_v28 = vmul.f32 0.0625, %v5789_v26 }
 0x7be   :  { %v5849_v42 = vadd.f32 1e-05, %v5829_v27 }
 0x7bf   :  { %v5848_v21 = vadd.f32 1e-05, %v5828_v28 }
 0x7c0   :  { %8119 = vrsqrt.f32 %v5849_v42  ;;  %v5795_v31 = vpop.xlane.xlu1 %5794  ;;  %v5793_v32 = vpop.xlane.xlu0 %5792 }
 0x7c1   :  { %8121 = vrsqrt.f32 %v5848_v21  ;;  %v5831_v29 = vmul.f32 0.0625, %v5795_v31  ;;  %v5830_v41 = vmul.f32 0.0625, %v5793_v32  ;;  %v10019_v21 = vld [vmem:[%s10612_s11] ss:$0 sm:$0xff] }
 0x7c3   :  { %v5851_v62 = vadd.f32 1e-05, %v5831_v29  ;;  %v5850_v5 = vadd.f32 1e-05, %v5830_v41 }
 0x7c4   :  { %v5799_v38 = vpop.xlane.xlu1 %5798  ;;  %v5797_v59 = vpop.xlane.xlu0 %5796 }
 0x7c5   :  { %8123 = vrsqrt.f32 %v5851_v62  ;;  %v5833_v34 = vmul.f32 0.0625, %v5799_v38  ;;  %v5832_v18 = vmul.f32 0.0625, %v5797_v59 }
 0x7c6   :  { %8125 = vrsqrt.f32 %v5850_v5 }
 0x7c7   :  { %v5853_v47 = vadd.f32 1e-05, %v5833_v34  ;;  %v5852_v2 = vadd.f32 1e-05, %v5832_v18  ;;  %v10025_v18 = vld [vmem:[%s10613_s12] ss:$0 sm:$0xff] }
 0x7c8   :  { %v5807_v12 = vpop.xlane.xlu1 %5806  ;;  %v5805_v26 = vpop.xlane.xlu0 %5804 }
 0x7c9   :  { %8127 = vrsqrt.f32 %v5853_v47  ;;  %v5837_v27 = vmul.f32 0.0625, %v5807_v12  ;;  %v5836_v28 = vmul.f32 0.0625, %v5805_v26 }
 0x7ca   :  { %v8120_v42 = vpop.eup %8119  ;;  %8129 = vrsqrt.f32 %v5852_v2 }
 0x7cb   :  { %v8122_v31 = vpop.eup %8121  ;;  %v5857_v32 = vadd.f32 1e-05, %v5837_v27  ;;  %v5856_v29 = vadd.f32 1e-05, %v5836_v28  ;;  %v5889_v59 = vmul.f32 %v8120_v42, %v9887_v48 }
 0x7cc   :  { %v5803_v34 = vpop.xlane.xlu1 %5802  ;;  %v5888_v12 = vmul.f32 %v8122_v31, %v9890_v3  ;;  %v5801_v47 = vpop.xlane.xlu0 %5800 }
 0x7cd   :  { %8131 = vrsqrt.f32 %v5857_v32  ;;  %v5915_v41 = vmul.f32 %v10019_v21, %v5889_v59  ;;  %v5835_v62 = vmul.f32 0.0625, %v5803_v34  ;;  %v5834_v5 = vmul.f32 0.0625, %v5801_v47 }
 0x7ce   :  { %8133 = vrsqrt.f32 %v5856_v29  ;;  %v5914_v38 = vmul.f32 %v10019_v21, %v5888_v12 }
 0x7cf   :  { %v8124_v2 = vpop.eup %8123  ;;  %v5941_v48 = vadd.f32 %v10025_v18, %v5915_v41  ;;  %v5855_v26 = vadd.f32 1e-05, %v5835_v62  ;;  %v5854_v27 = vadd.f32 1e-05, %v5834_v5 }
 0x7d0   :  { %v8126_v28 = vpop.eup %8125  ;;  %v5940_v42 = vadd.f32 %v10025_v18, %v5914_v38  ;;  %v5815_v37 = vpop.xlane.xlu1 %5814  ;;  %v5891_v3 = vmul.f32 %v8124_v2, %v9899_v58 }
 0x7d1   :  { %v5813_v39 = vpop.xlane.xlu0 %5812  ;;  %v10034_v31 = vadd.f32 %v5941_v48, %v9388_v14  ;;  %8135 = vrsqrt.f32 %v5855_v26  ;;  %v5841_v32 = vmul.f32 0.0625, %v5815_v37  ;;  %v5890_v12 = vmul.f32 %v8126_v28, %v9902_v51 }
 0x7d2   :  { %v5840_v29 = vmul.f32 0.0625, %v5813_v39  ;;  %v10037_v59 = vadd.f32 %v5940_v42, %v9205_v13  ;;  %8137 = vrsqrt.f32 %v5854_v27  ;;  %v5917_v34 = vmul.f32 %v10019_v21, %v5891_v3 }
 0x7d3   :  { %v8128_v47 = vpop.eup %8127  ;;  %5982 = vadd.xlane.f32.xlu1 %v10034_v31  ;;  %v5861_v41 = vadd.f32 1e-05, %v5841_v32  ;;  %v5916_v39 = vmul.f32 %v10019_v21, %v5890_v12 }
 0x7d4   :  { %v5860_v62 = vadd.f32 1e-05, %v5840_v29  ;;  %v8130_v58 = vpop.eup %8129  ;;  %5980 = vadd.xlane.f32.xlu0 %v10037_v59  ;;  %v5943_v5 = vadd.f32 %v10025_v18, %v5917_v34  ;;  %v5811_v37 = vpop.xlane.xlu1 %5810  ;;  %v5893_v2 = vmul.f32 %v8128_v47, %v9911_v53 }
 0x7d5   :  { %v5809_v38 = vpop.xlane.xlu0 %5808  ;;  %8139 = vrsqrt.f32 %v5861_v41  ;;  %v5839_v48 = vmul.f32 0.0625, %v5811_v37  ;;  %v5892_v51 = vmul.f32 %v8130_v58, %v9914_v1  ;;  %v5942_v28 = vadd.f32 %v10025_v18, %v5916_v39 }
 0x7d6   :  { %v5838_v26 = vmul.f32 0.0625, %v5809_v38  ;;  %8141 = vrsqrt.f32 %v5860_v62  ;;  %v10048_v27 = vadd.f32 %v5943_v5, %v9410_v43  ;;  %v5919_v42 = vmul.f32 %v10019_v21, %v5893_v2 }
 0x7d7   :  { %v8132_v3 = vpop.eup %8131  ;;  %v5859_v32 = vadd.f32 1e-05, %v5839_v48  ;;  %v5918_v34 = vmul.f32 %v10019_v21, %v5892_v51  ;;  %v10055_v53 = vadd.f32 %v5942_v28, %v9395_v20 }
 0x7d8   :  { %v5858_v29 = vadd.f32 1e-05, %v5838_v26  ;;  %v8134_v12 = vpop.eup %8133  ;;  %5986 = vadd.xlane.f32.xlu1 %v10048_v27  ;;  %v5823_v1 = vpop.xlane.xlu1 %5822  ;;  %v5945_v41 = vadd.f32 %v10025_v18, %v5919_v42  ;;  %v5897_v62 = vmul.f32 %v8132_v3, %v9923_v17 }
 0x7d9   :  { %v5821_v47 = vpop.xlane.xlu0 %5820  ;;  %8143 = vrsqrt.f32 %v5859_v32  ;;  %v5845_v58 = vmul.f32 0.0625, %v5823_v1  ;;  %v5944_v37 = vadd.f32 %v10025_v18, %v5918_v34  ;;  %5984 = vadd.xlane.f32.xlu0 %v10055_v53  ;;  %v5896_v2 = vmul.f32 %v8134_v12, %v9926_v25 }
 0x7da   :  { %v5844_v5 = vmul.f32 0.0625, %v5821_v47  ;;  %8145 = vrsqrt.f32 %v5858_v29  ;;  %v10062_v39 = vadd.f32 %v5945_v41, %v9434_v6  ;;  %v5923_v38 = vmul.f32 %v10019_v21, %v5897_v62 }
 0x7db   :  { %v8136_v48 = vpop.eup %8135  ;;  %v5865_v26 = vadd.f32 1e-05, %v5845_v58  ;;  %v10067_v17 = vadd.f32 %v5944_v37, %v9417_v30  ;;  %v5922_v29 = vmul.f32 %v10019_v21, %v5896_v2 }
 0x7dc   :  { %v5864_v51 = vadd.f32 1e-05, %v5844_v5  ;;  %v8138_v28 = vpop.eup %8137  ;;  %5990 = vadd.xlane.f32.xlu1 %v10062_v39  ;;  %v5819_v42 = vpop.xlane.xlu1 %5818  ;;  %v5949_v32 = vadd.f32 %v10025_v18, %v5923_v38  ;;  %v5895_v34 = vmul.f32 %v8136_v48, %v9935_v54 }
 0x7dd   :  { %v5817_v3 = vpop.xlane.xlu0 %5816  ;;  %8147 = vrsqrt.f32 %v5865_v26  ;;  %v5843_v1 = vmul.f32 0.0625, %v5819_v42  ;;  %v5894_v12 = vmul.f32 %v8138_v28, %v9938_v15  ;;  %5988 = vadd.xlane.f32.xlu0 %v10067_v17  ;;  %v5948_v41 = vadd.f32 %v10025_v18, %v5922_v29 }
 0x7de   :  { %v5842_v25 = vmul.f32 0.0625, %v5817_v3  ;;  %8149 = vrsqrt.f32 %v5864_v51  ;;  %v10076_v47 = vadd.f32 %v5949_v32, %v9441_v8  ;;  %v5921_v62 = vmul.f32 %v10019_v21, %v5895_v34 }
 0x7df   :  { %v8140_v58 = vpop.eup %8139  ;;  %v5863_v5 = vadd.f32 1e-05, %v5843_v1  ;;  %v5920_v54 = vmul.f32 %v10019_v21, %v5894_v12  ;;  %v10083_v15 = vadd.f32 %v5948_v41, %v9355_v19  ;;  %v6302_v28 = vrot.slane %v8820_v11, 4 }
 0x7e0   :  { %v5862_v37 = vadd.f32 1e-05, %v5842_v25  ;;  %v8142_v38 = vpop.eup %8141  ;;  %5998 = vadd.xlane.f32.xlu1 %v10076_v47  ;;  %v5947_v2 = vadd.f32 %v10025_v18, %v5921_v62  ;;  %v5901_v48 = vmul.f32 %v8140_v58, %v9948_v33 }
 0x7e1   :  { %8151 = vrsqrt.f32 %v5863_v5  ;;  %v5946_v26 = vadd.f32 %v10025_v18, %v5920_v54  ;;  %v5900_v51 = vmul.f32 %v8142_v38, %v9951_v36  ;;  %5996 = vadd.xlane.f32.xlu0 %v10083_v15  ;;  %v6303_v5 = vadd.f32 %v6302_v28, %v8820_v11  ;;  %v10743_v54 = vld [vmem:[#allocation42_spill] sm:$0xff] }
 0x7e2   :  { %8153 = vrsqrt.f32 %v5862_v37  ;;  %v10092_v42 = vadd.f32 %v5947_v2, %v9468_v10  ;;  %v5927_v3 = vmul.f32 %v10019_v21, %v5901_v48  ;;  %v5827_v36 = vpop.xlane.xlu1 %5826 }
 0x7e3   :  { %v8144_v32 = vpop.eup %8143  ;;  %v10096_v29 = vadd.f32 %v5946_v26, %v9446_v0  ;;  %v5926_v33 = vmul.f32 %v10019_v21, %v5900_v51  ;;  %v5847_v12 = vmul.f32 0.0625, %v5827_v36  ;;  %v5825_v41 = vpop.xlane.xlu0 %5824  ;;  %v10744_v51 = vld [vmem:[#allocation41_spill] sm:$0xff] }
 0x7e4   :  { %v8146_v34 = vpop.eup %8145  ;;  %5994 = vadd.xlane.f32.xlu1 %v10092_v42  ;;  %v5953_v1 = vadd.f32 %v10025_v18, %v5927_v3  ;;  %v5899_v25 = vmul.f32 %v8144_v32, %v9961_v24  ;;  %v5846_v37 = vmul.f32 0.0625, %v5825_v41 }
 0x7e5   :  { %v5952_v62 = vadd.f32 %v10025_v18, %v5926_v33  ;;  %v5898_v58 = vmul.f32 %v8146_v34, %v9964_v55  ;;  %5992 = vadd.xlane.f32.xlu0 %v10096_v29  ;;  %v5867_v26 = vadd.f32 1e-05, %v5847_v12  ;;  %v10745_v33 = vld [vmem:[#allocation19_spill] sm:$0xff]  ;;  %v10746_v12 = vld [vmem:[#allocation45_spill] sm:$0xff] }
 0x7e6   :  { %v10107_v38 = vadd.f32 %v5953_v1, %v10743_v54  ;;  %v5925_v2 = vmul.f32 %v10019_v21, %v5899_v25  ;;  %v6293_v55 = vrot.slane %v10745_v33, 4  ;;  %v5866_v34 = vadd.f32 1e-05, %v5846_v37  ;;  %v10747_v37 = vld [vmem:[#allocation43_spill] sm:$0xff] }
 0x7e7   :  { %v8148_v48 = vpop.eup %8147  ;;  %v10111_v24 = vadd.f32 %v5952_v62, %v10744_v51  ;;  %v5924_v3 = vmul.f32 %v10019_v21, %v5898_v58  ;;  %8155 = vrsqrt.f32 %v5867_v26  ;;  %v6304_v25 = vrot.slane %v6303_v5, 2 }
 0x7e8   :  { %v8150_v32 = vpop.eup %8149  ;;  %6006 = vadd.xlane.f32.xlu1 %v10107_v38  ;;  %v5951_v11 = vadd.f32 %v10025_v18, %v5925_v2  ;;  %v5905_v28 = vmul.f32 %v8148_v48, %v9973_v4  ;;  %8157 = vrsqrt.f32 %v5866_v34  ;;  %v6294_v48 = vadd.f32 %v6293_v55, %v10745_v33 }
 0x7e9   :  { %v5950_v36 = vadd.f32 %v10025_v18, %v5924_v3  ;;  %v5904_v1 = vmul.f32 %v8150_v32, %v9976_v16  ;;  %6004 = vadd.xlane.f32.xlu0 %v10111_v24  ;;  %v6305_v34 = vadd.f32 %v6304_v25, %v6303_v5  ;;  %v10750_v25 = vld [vmem:[#allocation48_spill] sm:$0xff] }
 0x7ea   :  { %v10122_v41 = vadd.f32 %v5951_v11, %v10746_v12  ;;  %v5931_v62 = vmul.f32 %v10019_v21, %v5905_v28  ;;  %v10748_v11 = vld [vmem:[#allocation46_spill] sm:$0xff] }
 0x7eb   :  { %v8152_v58 = vpop.eup %8151  ;;  %v10126_v51 = vadd.f32 %v5950_v36, %v10747_v37  ;;  %v5930_v4 = vmul.f32 %v10019_v21, %v5904_v1  ;;  %v10749_v1 = vld [vmem:[#allocation44_spill] sm:$0xff]  ;;  %v6306_v5 = vrot.slane %v6305_v34, 1 }
 0x7ec   :  { %v8154_v2 = vpop.eup %8153  ;;  %6002 = vadd.xlane.f32.xlu1 %v10122_v41  ;;  %v5957_v16 = vadd.f32 %v10025_v18, %v5931_v62  ;;  %v5903_v26 = vmul.f32 %v8152_v58, %v9985_v57  ;;  %v6295_v62 = vrot.slane %v6294_v48, 2 }
 0x7ed   :  { %v5956_v3 = vadd.f32 %v10025_v18, %v5930_v4  ;;  %v5902_v32 = vmul.f32 %v8154_v2, %v9988_v23  ;;  %6000 = vadd.xlane.f32.xlu0 %v10126_v51  ;;  %v10751_v2 = vld [vmem:[#allocation47_spill] sm:$0xff] }
 0x7ee   :  { %v10137_v28 = vadd.f32 %v5957_v16, %v10748_v11  ;;  %v5929_v36 = vmul.f32 %v10019_v21, %v5903_v26  ;;  %v6307_v11 = vadd.f32 %v6306_v5, %v6305_v34 }
 0x7ef   :  { %v10141_v33 = vadd.f32 %v5956_v3, %v10749_v1  ;;  %v5928_v55 = vmul.f32 %v10019_v21, %v5902_v32  ;;  %v6296_v3 = vadd.f32 %v6295_v62, %v6294_v48  ;;  %v10752_v48 = vld [vmem:[#allocation50_spill] sm:$0xff] }
 0x7f0   :  { %6014 = vadd.xlane.f32.xlu1 %v10137_v28  ;;  %v5955_v57 = vadd.f32 %v10025_v18, %v5929_v36  ;;  %vm6373_vm4 = vcmp.eq.f32.partialorder %v6307_v11, 0.0 }
 0x7f1   :  { %v5954_v23 = vadd.f32 %v10025_v18, %v5928_v55  ;;  %6012 = vadd.xlane.f32.xlu0 %v10141_v33  ;;  %v8156_v4 = vpop.eup %8155  ;;  %v6297_v1 = vrot.slane %v6296_v3, 1  ;;  %v6383_v34 = vsel %vm6373_vm4, 1.0, %v6307_v11 }
 0x7f2   :  { %v10149_v58 = vadd.f32 %v5955_v57, %v10750_v25  ;;  %v8158_v26 = vpop.eup %8157  ;;  %v5907_v32 = vmul.f32 %v8156_v4, %v9997_v9  ;;  %8159 = vrcp.f32 %v6383_v34  ;;  %v10170_v4 = vpop.permute.xlu1 %6593 }
 0x7f3   :  { %v10152_v16 = vadd.f32 %v5954_v23, %v10751_v2  ;;  %v5906_v36 = vmul.f32 %v8158_v26, %v10000_v45  ;;  %v10753_v2 = vld [vmem:[#allocation49_spill] sm:$0xff]  ;;  %v6298_v45 = vadd.f32 %v6297_v1, %v6296_v3 }
 0x7f4   :  { %6010 = vadd.xlane.f32.xlu1 %v10149_v58  ;;  %v5933_v55 = vmul.f32 %v10019_v21, %v5907_v32 }
 0x7f5   :  { %6008 = vadd.xlane.f32.xlu0 %v10152_v16  ;;  %v5932_v57 = vmul.f32 %v10019_v21, %v5906_v36  ;;  %vm6372_vm5 = vcmp.eq.f32.partialorder %v6298_v45, 0.0 }
 0x7f6   :  { %v5959_v25 = vadd.f32 %v10025_v18, %v5933_v55  ;;  %v6382_v21 = vsel %vm6372_vm5, 1.0, %v6298_v45 }
 0x7f7   :  { %v5958_v23 = vadd.f32 %v10025_v18, %v5932_v57  ;;  %8161 = vrcp.f32 %v6382_v21 }
 0x7f8   :  { %v10163_v62 = vadd.f32 %v5959_v25, %v10752_v48  ;;  %v10172_v25 = vpop.permute.xlu0 %6498 }
 0x7f9   :  { %v10166_v9 = vadd.f32 %v5958_v23, %v10753_v2 }
 0x7fa   :  { %6018 = vadd.xlane.f32.xlu1 %v10163_v62 }
 0x7fb   :  { %6016 = vadd.xlane.f32.xlu0 %v10166_v9 }
 0x7fc   :  { %v8160_v5 = vpop.eup %8159 }
 0x801   :  { %v8162_v18 = vpop.eup %8161 }
 0x80b   :  { %6603 = vperm.xlu1 %7976, %v8160_v5  }
 0x811   :  { %6598 = vperm.xlu0 %7975, %v8162_v18  }
 0x860   :  { %v5983_v26 = vpop.xlane.xlu1 %5982 }
 0x861   :  { %v6021_v32 = vmul.f32 0.0625, %v5983_v26  ;;  %v5981_v1 = vpop.xlane.xlu0 %5980 }
 0x862   :  { %v6020_v3 = vmul.f32 0.0625, %v5981_v1 }
 0x863   :  { %v6041_v11 = vsub.f32 %v10034_v31, %v6021_v32 }
 0x864   :  { %v6040_v36 = vsub.f32 %v10037_v59, %v6020_v3 }
 0x865   :  { %v10177_v55 = vmul.f32 %v9882_v44, %v6041_v11  ;;  %v5987_v57 = vpop.xlane.xlu1 %5986 }
 0x866   :  { %v10180_v23 = vmul.f32 %v9882_v44, %v6040_v36  ;;  %v6023_v45 = vmul.f32 0.0625, %v5987_v57  ;;  %v5985_v21 = vpop.xlane.xlu0 %5984 }
 0x867   :  { %v6081_v34 = vmul.f32 %v10177_v55, %v10177_v55  ;;  %v6022_v18 = vmul.f32 0.0625, %v5985_v21 }
 0x868   :  { %v6043_v5 = vsub.f32 %v10048_v27, %v6023_v45  ;;  %v6080_v31 = vmul.f32 %v10180_v23, %v10180_v23 }
 0x869   :  { %6102 = vadd.xlane.f32.xlu1 %v6081_v34  ;;  %v5991_v59 = vpop.xlane.xlu1 %5990  ;;  %v6042_v32 = vsub.f32 %v10055_v53, %v6022_v18 }
 0x86a   :  { %v10188_v26 = vmul.f32 %v9882_v44, %v6043_v5  ;;  %6100 = vadd.xlane.f32.xlu0 %v6080_v31  ;;  %v6025_v1 = vmul.f32 0.0625, %v5991_v59  ;;  %v5989_v3 = vpop.xlane.xlu0 %5988 }
 0x86b   :  { %v10192_v11 = vmul.f32 %v9882_v44, %v6042_v32  ;;  %v6024_v57 = vmul.f32 0.0625, %v5989_v3 }
 0x86c   :  { %v6045_v36 = vsub.f32 %v10062_v39, %v6025_v1  ;;  %v6083_v27 = vmul.f32 %v10188_v26, %v10188_v26 }
 0x86d   :  { %10754 = vst [vmem:[#allocation42_spill] sm:$0xff] %v10192_v11  ;;  %v5999_v45 = vpop.xlane.xlu1 %5998  ;;  %v6044_v21 = vsub.f32 %v10067_v17, %v6024_v57  ;;  %v6082_v53 = vmul.f32 %v10192_v11, %v10192_v11  ;;  %v10760_v11 = vld [vmem:[#allocation30_spill] sm:$0xff] }
 0x86e   :  { %v10198_v34 = vmul.f32 %v9882_v44, %v6045_v36  ;;  %6106 = vadd.xlane.f32.xlu1 %v6083_v27  ;;  %v6029_v5 = vmul.f32 0.0625, %v5999_v45  ;;  %v5997_v18 = vpop.xlane.xlu0 %5996 }
 0x86f   :  { %v10204_v31 = vmul.f32 %v9882_v44, %v6044_v21  ;;  %6104 = vadd.xlane.f32.xlu0 %v6082_v53  ;;  %v6028_v59 = vmul.f32 0.0625, %v5997_v18 }
 0x870   :  { %v6049_v39 = vsub.f32 %v10076_v47, %v6029_v5  ;;  %v6085_v32 = vmul.f32 %v10198_v34, %v10198_v34  ;;  %v10756_v5 = vld [vmem:[#allocation25_spill] sm:$0xff] }
 0x871   :  { %v5995_v1 = vpop.xlane.xlu1 %5994  ;;  %v6048_v17 = vsub.f32 %v10083_v15, %v6028_v59  ;;  %v6084_v27 = vmul.f32 %v10204_v31, %v10204_v31  ;;  %v6320_v18 = vrot.slane %v10756_v5, 4 }
 0x872   :  { %v10210_v3 = vmul.f32 %v9882_v44, %v6049_v39  ;;  %v6027_v36 = vmul.f32 0.0625, %v5995_v1  ;;  %6110 = vadd.xlane.f32.xlu1 %v6085_v32  ;;  %v5993_v57 = vpop.xlane.xlu0 %5992 }
 0x873   :  { %v10216_v45 = vmul.f32 %v9882_v44, %v6048_v17  ;;  %v6026_v21 = vmul.f32 0.0625, %v5993_v57  ;;  %6108 = vadd.xlane.f32.xlu0 %v6084_v27 }
 0x874   :  { %v6047_v47 = vsub.f32 %v10092_v42, %v6027_v36  ;;  %v6089_v53 = vmul.f32 %v10210_v3, %v10210_v3  ;;  %v8217_v42 = vld [vmem:[%s10607_s6 + $0x80] sm:$0xff]  ;;  %v6354_v36 = vsel %vm6280_vm1, %v9843_v63, 0.0 }
 0x875   :  { %10755 = vst [vmem:[#allocation19_spill] sm:$0xff] %v10216_v45  ;;  %v6007_v39 = vpop.xlane.xlu1 %6006  ;;  %v6046_v59 = vsub.f32 %v10096_v29, %v6026_v21  ;;  %v6088_v1 = vmul.f32 %v10216_v45, %v10216_v45  ;;  %v6353_v17 = vsel %vm6280_vm1, %v8217_v42, 0.0 }
 0x876   :  { %v10223_v15 = vmul.f32 %v9882_v44, %v6047_v47  ;;  %v6033_v32 = vmul.f32 0.0625, %v6007_v39  ;;  %6118 = vadd.xlane.f32.xlu1 %v6089_v53  ;;  %v6005_v27 = vpop.xlane.xlu0 %6004  ;;  %v6321_v53 = vadd.f32 %v6320_v18, %v10756_v5 }
 0x877   :  { %v10235_v57 = vmul.f32 %v9882_v44, %v6046_v59  ;;  %v6032_v47 = vmul.f32 0.0625, %v6005_v27  ;;  %6116 = vadd.xlane.f32.xlu0 %v6088_v1 }
 0x878   :  { %10757 = vst [vmem:[#allocation45_spill] sm:$0xff] %v10223_v15  ;;  %v6053_v29 = vsub.f32 %v10107_v38, %v6033_v32  ;;  %v6087_v21 = vmul.f32 %v10223_v15, %v10223_v15  ;;  %v6338_v38 = vrot.slane %v10760_v11, 4  ;;  %v6355_v32 = vadd.f32 %v6354_v36, %v6353_v17 }
 0x879   :  { %10758 = vst [vmem:[#allocation43_spill] sm:$0xff] %v10235_v57  ;;  %v6003_v39 = vpop.xlane.xlu1 %6002  ;;  %v6052_v42 = vsub.f32 %v10111_v24, %v6032_v47  ;;  %v6086_v59 = vmul.f32 %v10235_v57, %v10235_v57  ;;  %v10762_v24 = vld [vmem:[#allocation20_spill] sm:$0xff] }
 0x87a   :  { %v10242_v45 = vmul.f32 %v9882_v44, %v6053_v29  ;;  %v6031_v63 = vmul.f32 0.0625, %v6003_v39  ;;  %6114 = vadd.xlane.f32.xlu1 %v6087_v21  ;;  %v6001_v1 = vpop.xlane.xlu0 %6000  ;;  %v6311_v47 = vrot.slane %v10762_v24, 4  ;;  %v6322_v21 = vrot.slane %v6321_v53, 2 }
 0x87b   :  { %v10249_v27 = vmul.f32 %v9882_v44, %v6052_v42  ;;  %v6030_v18 = vmul.f32 0.0625, %v6001_v1  ;;  %6112 = vadd.xlane.f32.xlu0 %v6086_v59 }
 0x87c   :  { %10759 = vst [vmem:[#allocation50_spill] sm:$0xff] %v10242_v45  ;;  %v6051_v5 = vsub.f32 %v10122_v41, %v6031_v63  ;;  %v6093_v29 = vmul.f32 %v10242_v45, %v10242_v45  ;;  %v6339_v41 = vadd.f32 %v6338_v38, %v10760_v11  ;;  %v6356_v63 = vrot.slane %v6355_v32, 4 }
 0x87d   :  { %10761 = vst [vmem:[#allocation49_spill] sm:$0xff] %v10249_v27  ;;  %v6015_v39 = vpop.xlane.xlu1 %6014  ;;  %v6050_v17 = vsub.f32 %v10126_v51, %v6030_v18  ;;  %v6092_v42 = vmul.f32 %v10249_v27, %v10249_v27  ;;  %v6312_v51 = vadd.f32 %v6311_v47, %v10762_v24  ;;  %v6323_v18 = vadd.f32 %v6322_v21, %v6321_v53 }
 0x87e   :  { %v10256_v57 = vmul.f32 %v9882_v44, %v6051_v5  ;;  %v6037_v36 = vmul.f32 0.0625, %v6015_v39  ;;  %6126 = vadd.xlane.f32.xlu1 %v6093_v29  ;;  %v6013_v59 = vpop.xlane.xlu0 %6012  ;;  %v10764_v29 = vld [vmem:[#allocation28_spill] sm:$0xff]  ;;  %v6363_v53 = vsel %vm6280_vm1, %v10009_v40, 0.0 }
 0x87f   :  { %v10263_v1 = vmul.f32 %v9882_v44, %v6050_v17  ;;  %v6036_v15 = vmul.f32 0.0625, %v6013_v59  ;;  %6124 = vadd.xlane.f32.xlu0 %v6092_v42  ;;  %v6329_v39 = vrot.slane %v10764_v29, 4  ;;  %v6362_v42 = vsel %vm6280_vm1, %v9837_v60, 0.0 }
 0x880   :  { %v6057_v45 = vsub.f32 %v10137_v28, %v6037_v36  ;;  %v6091_v5 = vmul.f32 %v10256_v57, %v10256_v57  ;;  %v6340_v36 = vrot.slane %v6339_v41, 2  ;;  %v6357_v59 = vadd.f32 %v6356_v63, %v6355_v32 }
 0x881   :  { %10763 = vst [vmem:[#allocation25_spill] sm:$0xff] %v10263_v1  ;;  %v6011_v27 = vpop.xlane.xlu1 %6010  ;;  %v6056_v38 = vsub.f32 %v10141_v33, %v6036_v15  ;;  %v6090_v28 = vmul.f32 %v10263_v1, %v10263_v1  ;;  %v6330_v21 = vadd.f32 %v6329_v39, %v10764_v29  ;;  %v6364_v32 = vadd.f32 %v6363_v53, %v6362_v42 }
 0x882   :  { %v10271_v11 = vmul.f32 %v9882_v44, %v6057_v45  ;;  %v6035_v17 = vmul.f32 0.0625, %v6011_v27  ;;  %6122 = vadd.xlane.f32.xlu1 %v6091_v5  ;;  %v6009_v24 = vpop.xlane.xlu0 %6008  ;;  %v6313_v27 = vrot.slane %v6312_v51, 2  ;;  %v10767_v5 = vld [vmem:[#allocation32_spill] sm:$0xff] }
 0x883   :  { %v10281_v47 = vmul.f32 %v9882_v44, %v6056_v38  ;;  %v6034_v33 = vmul.f32 0.0625, %v6009_v24  ;;  %6120 = vadd.xlane.f32.xlu0 %v6090_v28  ;;  %v6347_v60 = vrot.slane %v10767_v5, 4  ;;  %v6324_v38 = vrot.slane %v6323_v18, 1 }
 0x884   :  { %10765 = vst [vmem:[#allocation30_spill] sm:$0xff] %v10271_v11  ;;  %v6055_v45 = vsub.f32 %v10149_v58, %v6035_v17  ;;  %v6097_v15 = vmul.f32 %v10271_v11, %v10271_v11  ;;  %v6341_v17 = vadd.f32 %v6340_v36, %v6339_v41  ;;  %v6358_v28 = vrot.slane %v6357_v59, 2 }
 0x885   :  { %10766 = vst [vmem:[#allocation20_spill] sm:$0xff] %v10281_v47  ;;  %v6054_v40 = vsub.f32 %v10152_v16, %v6034_v33  ;;  %v6096_v58 = vmul.f32 %v10281_v47, %v10281_v47  ;;  %v6314_v39 = vadd.f32 %v6313_v27, %v6312_v51  ;;  %v6331_v42 = vrot.slane %v6330_v21, 2 }
 0x886   :  { %v10289_v63 = vmul.f32 %v9882_v44, %v6055_v45  ;;  %6134 = vadd.xlane.f32.xlu1 %v6097_v15  ;;  %v6348_v45 = vadd.f32 %v6347_v60, %v10767_v5  ;;  %v6365_v16 = vrot.slane %v6364_v32, 4  ;;  %v6325_v47 = vadd.f32 %v6324_v38, %v6323_v18 }
 0x887   :  { %v10295_v24 = vmul.f32 %v9882_v44, %v6054_v40  ;;  %6132 = vadd.xlane.f32.xlu0 %v6096_v58  ;;  %v6019_v53 = vpop.xlane.xlu1 %6018  ;;  %v6342_v40 = vrot.slane %v6341_v17, 1  ;;  %v6359_v11 = vadd.f32 %v6358_v28, %v6357_v59  ;;  %v6332_v27 = vadd.f32 %v6331_v42, %v6330_v21 }
 0x888   :  { %10768 = vst [vmem:[#allocation28_spill] sm:$0xff] %v10289_v63  ;;  %v6095_v29 = vmul.f32 %v10289_v63, %v10289_v63  ;;  %v6039_v33 = vmul.f32 0.0625, %v6019_v53  ;;  %v6017_v15 = vpop.xlane.xlu0 %6016  ;;  %v6315_v63 = vrot.slane %v6314_v39, 1  ;;  %v6349_v1 = vrot.slane %v6348_v45, 2 }
 0x889   :  { %v6094_v41 = vmul.f32 %v10295_v24, %v10295_v24  ;;  %v6038_v36 = vmul.f32 0.0625, %v6017_v15  ;;  %v6366_v5 = vadd.f32 %v6365_v16, %v6364_v32  ;;  %vm6375_vm1 = vcmp.eq.f32.partialorder %v6325_v47, 0.0 }
 0x88a   :  { %6130 = vadd.xlane.f32.xlu1 %v6095_v29  ;;  %v6059_v58 = vsub.f32 %v10163_v62, %v6039_v33  ;;  %v6343_v53 = vadd.f32 %v6342_v40, %v6341_v17  ;;  %v6360_v18 = vrot.slane %v6359_v11, 1  ;;  %v6316_v62 = vadd.f32 %v6315_v63, %v6314_v39 }
 0x88b   :  { %6128 = vadd.xlane.f32.xlu0 %v6094_v41  ;;  %v6058_v51 = vsub.f32 %v10166_v9, %v6038_v36  ;;  %v6333_v9 = vrot.slane %v6332_v27, 1  ;;  %v6350_v21 = vadd.f32 %v6349_v1, %v6348_v45  ;;  %v6367_v28 = vrot.slane %v6366_v5, 2 }
 0x88c   :  { %v10305_v60 = vmul.f32 %v9882_v44, %v6059_v58  ;;  %v6385_v32 = vsel %vm6375_vm1, 1.0, %v6325_v47  ;;  %vm6377_vm6 = vcmp.eq.f32.partialorder %v6343_v53, 0.0  ;;  %v6361_v42 = vadd.f32 %v6360_v18, %v6359_v11  ;;  %v10771_v18 = vld [vmem:[#allocation16_spill] sm:$0xff] }
 0x88d   :  { %v10308_v29 = vmul.f32 %v9882_v44, %v6058_v51  ;;  %vm6374_vm7 = vcmp.eq.f32.partialorder %v6316_v62, 0.0  ;;  %8163 = vrcp.f32 %v6385_v32  ;;  %v6334_v44 = vadd.f32 %v6333_v9, %v6332_v27  ;;  %v10773_v9 = vld [vmem:[#allocation15_spill] sm:$0xff] }
 0x88e   :  { %10769 = vst [vmem:[#allocation32_spill] sm:$0xff] %v10305_v60  ;;  %v6099_v59 = vmul.f32 %v10305_v60, %v10305_v60  ;;  %v6351_v17 = vrot.slane %v6350_v21, 1  ;;  %v6368_v16 = vadd.f32 %v6367_v28, %v6366_v5  ;;  %v6387_v33 = vsel %vm6377_vm6, 1.0, %v6343_v53 }
 0x88f   :  { %10770 = vst [vmem:[#allocation62_spill] sm:$0xff] %v10308_v29  ;;  %v6098_v38 = vmul.f32 %v10308_v29, %v10308_v29  ;;  %vm6379_vm9 = vcmp.eq.f32.partialorder %v6361_v42, 0.0  ;;  %v6384_v15 = vsel %vm6374_vm7, 1.0, %v6316_v62  ;;  %vm6376_vm10 = vcmp.eq.f32.partialorder %v6334_v44, 0.0 }
 0x890   :  { %6138 = vadd.xlane.f32.xlu1 %v6099_v59  ;;  %8165 = vrcp.f32 %v6387_v33  ;;  %v6352_v63 = vadd.f32 %v6351_v17, %v6350_v21  ;;  %v6369_v39 = vrot.slane %v6368_v16, 1  ;;  %v6389_v41 = vsel %vm6379_vm9, 1.0, %v6361_v42  ;;  %v10772_v59 = vld [vmem:[#allocation18_spill] sm:$0xff]  ;;  %v10774_v21 = vld [vmem:[#allocation17_spill] sm:$0xff] }
 0x891   :  { %6136 = vadd.xlane.f32.xlu0 %v6098_v38  ;;  %8167 = vrcp.f32 %v6384_v15  ;;  %v6386_v1 = vsel %vm6376_vm10, 1.0, %v6334_v44  ;;  %vm2460_vm13 = vcmp.gt.f32.partialorder %v10771_v18, 0.0  ;;  %vm2461_vm14 = vcmp.gt.f32.partialorder %v10772_v59, 0.0 }
 0x892   :  { %vm6378_vm11 = vcmp.eq.f32.partialorder %v6352_v63, 0.0  ;;  %8169 = vrcp.f32 %v6389_v41  ;;  %v6370_v47 = vadd.f32 %v6369_v39, %v6368_v16  ;;  %v6901_v62 = vsel %vm2461_vm14, 1.0, %v10730_v22  ;;  %v10776_v39 = vld [vmem:[#allocation22_spill] sm:$0xff]  ;;  %v10777_v41 = vld [vmem:[#allocation23_spill] sm:$0xff] }
 0x893   :  { %8171 = vrcp.f32 %v6386_v1  ;;  %v6388_v11 = vsel %vm6378_vm11, 1.0, %v6352_v63  ;;  %v6900_v38 = vsel %vm2460_vm13, 1.0, %v10730_v22  ;;  %vm2462_vm15 = vcmp.gt.f32.partialorder %v10773_v9, 0.0  ;;  %v10775_v63 = vld [vmem:[#allocation21_spill] sm:$0xff] }
 0x894   :  { %vm6380_vm12 = vcmp.eq.f32.partialorder %v6370_v47, 0.0  ;;  %8173 = vrcp.f32 %v6388_v11  ;;  %vm2463_vm8 = vcmp.gt.f32.partialorder %v10774_v21, 0.0  ;;  %v2521_v28 = vmul.f32 %v6901_v62, %v9388_v14  ;;  %v10778_v14 = vld [vmem:[#allocation24_spill] sm:$0xff]  ;;  %v10780_v11 = vld [vmem:[#allocation27_spill] sm:$0xff] }
 0x895   :  { %v6390_v40 = vsel %vm6380_vm12, 1.0, %v6370_v47  ;;  %v2520_v32 = vmul.f32 %v6900_v38, %v9205_v13  ;;  %v6903_v42 = vsel %vm2463_vm8, 1.0, %v10730_v22  ;;  %v6902_v44 = vsel %vm2462_vm15, 1.0, %v10730_v22 }
 0x896   :  { %8175 = vrcp.f32 %v6390_v40  ;;  %v6502_v17 = vmul.f32 %v9846_v50, %v2521_v28  ;;  %v2523_v33 = vmul.f32 %v6903_v42, %v9410_v43  ;;  %v2522_v15 = vmul.f32 %v6902_v44, %v9395_v20  ;;  %v10781_v20 = vld [vmem:[#allocation29_spill] sm:$0xff]  ;;  %v10784_v44 = vld [vmem:[#allocation34_spill] sm:$0xff] }
 0x897   :  { %v8164_v45 = vpop.eup %8163  ;;  %v6501_v16 = vmul.f32 %v9848_v61, %v2520_v32  ;;  %vm2465_vm2 = vcmp.gt.f32.partialorder %v10775_v63, 0.0  ;;  %vm2464_vm0 = vcmp.gt.f32.partialorder %v10776_v39, 0.0  ;;  %vm2467_vm3 = vcmp.gt.f32.partialorder %v10777_v41, 0.0  ;;  %v10789_v41 = vld [vmem:[#allocation52_spill] sm:$0xff] }
 0x898   :  { %vm2466_vm4 = vcmp.gt.f32.partialorder %v10778_v14, 0.0  ;;  %v6504_v1 = vmul.f32 %v9852_v46, %v2523_v33  ;;  %v6503_v47 = vmul.f32 %v9850_v7, %v2522_v15  ;;  %vm2468_vm1 = vcmp.gt.f32.partialorder %v10780_v11, 0.0  ;;  %v10787_v33 = vld [vmem:[#allocation38_spill] sm:$0xff]  ;;  %v10788_v15 = vld [vmem:[#allocation37_spill] sm:$0xff] }
 0x899   :  { %v6521_v13 = vadd.f32 %v6502_v17, %v6501_v16  ;;  %v6905_v43 = vsel %vm2465_vm2, 1.0, %v10730_v22  ;;  %vm2471_vm6 = vcmp.gt.f32.partialorder %v10781_v20, 0.0  ;;  %v6904_v40 = vsel %vm2464_vm0, 1.0, %v10730_v22  ;;  %v10785_v17 = vld [vmem:[#allocation35_spill] sm:$0xff] }
 0x89a   :  { %v8166_v36 = vpop.eup %8165  ;;  %v6528_v59 = vadd.f32 %v6504_v1, %v6503_v47  ;;  %v6908_v38 = vsel %vm2468_vm1, 1.0, %v10730_v22  ;;  %vm2472_vm10 = vcmp.gt.f32.partialorder %v10784_v44, 0.0  ;;  %vm2475_vm11 = vcmp.gt.f32.partialorder %v10785_v17, 0.0  ;;  %v10790_v1 = vld [vmem:[#allocation51_spill] sm:$0xff]  ;;  %v10392_v17 = vpop.permute.xlu0 %6598 }
 0x89b   :  { %v8168_v58 = vpop.eup %8167  ;;  %v6522_v18 = vrot.slane %v6521_v13, 4  ;;  %vm2476_vm13 = vcmp.gt.f32.partialorder %v10787_v33, 0.0  ;;  %vm2477_vm14 = vcmp.gt.f32.partialorder %v10788_v15, 0.0  ;;  %v10798_v33 = vld [vmem:[#allocation56_spill] sm:$0xff]  ;;  %vm6781_vm2 = vcmask 1041409  }
 0x89c   :  { %v8170_v51 = vpop.eup %8169  ;;  %v6529_v16 = vrot.slane %v6528_v59, 4  ;;  %vm6783_vm0 = vcmask 1042434   ;;  %vm6791_vm1 = vcmask 1046534  }
 0x89d   :  { %v8172_v27 = vpop.eup %8171 }
 0x89e   :  { %v8174_v5 = vpop.eup %8173 }
 0x8a0   :  { %v8176_v53 = vpop.eup %8175 }
 0x8a1   :  { %6613 = vperm.xlu1 %7976, %v8164_v45   ;;  %v10779_v45 = vld [vmem:[#allocation26_spill] sm:$0xff] }
 0x8a2   :  { %vm2469_vm5 = vcmp.gt.f32.partialorder %v10779_v45, 0.0 }
 0x8a3   :  { %v6909_v62 = vsel %vm2469_vm5, 1.0, %v10730_v22  ;;  %vm6789_vm5 = vcmask 1045509  }
 0x8a4   :  { %v2529_v28 = vmul.f32 %v6909_v62, %v9441_v8  ;;  %v10786_v8 = vld [vmem:[#allocation36_spill] sm:$0xff]  ;;  %v6530_v62 = vadd.f32 %v6529_v16, %v6528_v59  ;;  %v10800_v16 = vld [vmem:[#allocation58_spill] sm:$0xff] }
 0x8a5   :  { %6623 = vperm.xlu1 %7976, %v8166_v36   ;;  %v10782_v36 = vld [vmem:[#allocation31_spill] sm:$0xff]  ;;  %vm2474_vm12 = vcmp.gt.f32.partialorder %v10786_v8, 0.0 }
 0x8a6   :  { %vm2470_vm7 = vcmp.gt.f32.partialorder %v10782_v36, 0.0  ;;  %v6510_v14 = vmul.f32 %v10789_v41, %v2529_v28  ;;  %v10794_v28 = vld [vmem:[#allocation54_spill] sm:$0xff] }
 0x8a7   :  { %6608 = vperm.xlu0 %7975, %v8168_v58   ;;  %v6907_v58 = vsel %vm2467_vm3, 1.0, %v10730_v22  ;;  %v6910_v32 = vsel %vm2470_vm7, 1.0, %v10730_v22  ;;  %vm6785_vm3 = vcmask 1043459  }
 0x8a8   :  { %v2527_v9 = vmul.f32 %v6907_v58, %v9468_v10  ;;  %v2530_v11 = vmul.f32 %v6910_v32, %v10747_v37  ;;  %v6917_v37 = vsel %vm2477_vm14, 1.0, %v10730_v22 }
 0x8a9   :  { %6633 = vperm.xlu1 %7976, %v8170_v51   ;;  %v2525_v51 = vmul.f32 %v6905_v43, %v9434_v6  ;;  %v2528_v6 = vmul.f32 %v6908_v38, %v9355_v19  ;;  %v6523_v19 = vadd.f32 %v6522_v18, %v6521_v13  ;;  %v6912_v43 = vsel %vm2472_vm10, 1.0, %v10730_v22 }
 0x8aa   :  { %v6508_v63 = vmul.f32 %v9860_v49, %v2527_v9  ;;  %v6915_v13 = vsel %vm2475_vm11, 1.0, %v10730_v22 }
 0x8ab   :  { %6618 = vperm.xlu0 %7975, %v8172_v27   ;;  %v2524_v27 = vmul.f32 %v6904_v40, %v9417_v30  ;;  %v6911_v30 = vsel %vm2471_vm6, 1.0, %v10730_v22  ;;  %v6506_v10 = vmul.f32 %v9856_v52, %v2525_v51  ;;  %v6509_v47 = vmul.f32 %v10790_v1, %v2528_v6  ;;  %v10791_v40 = vld [vmem:[#allocation41_spill] sm:$0xff] }
 0x8ac   :  { %v2531_v45 = vmul.f32 %v6911_v30, %v10746_v12  ;;  %v2532_v58 = vmul.f32 %v6912_v43, %v10791_v40  ;;  %v6914_v51 = vsel %vm2474_vm12, 1.0, %v10730_v22  ;;  %v6916_v12 = vsel %vm2476_vm13, 1.0, %v10730_v22  ;;  %v10795_v30 = vld [vmem:[#allocation53_spill] sm:$0xff]  ;;  %v10799_v43 = vld [vmem:[#allocation55_spill] sm:$0xff] }
 0x8ad   :  { %v6549_v38 = vadd.f32 %v6510_v14, %v6509_v47  ;;  %v6524_v9 = vrot.slane %v6523_v19, 2  ;;  %v6511_v32 = vmul.f32 %v10795_v30, %v2530_v11  ;;  %v10802_v47 = vld [vmem:[#allocation61_spill] sm:$0xff]  ;;  %v6531_v11 = vrot.slane %v6530_v62, 2 }
 0x8ae   :  { %v6512_v6 = vmul.f32 %v10794_v28, %v2531_v45  ;;  %v6513_v59 = vmul.f32 %v10799_v43, %v2532_v58  ;;  %v10804_v28 = vld [vmem:[#allocation40_spill] sm:$0xff]  ;;  %vm6793_vm6 = vcmask 1047559  }
 0x8af   :  { %6628 = vperm.xlu0 %7975, %v8174_v5   ;;  %v6906_v5 = vsel %vm2466_vm4, 1.0, %v10730_v22  ;;  %v6525_v40 = vadd.f32 %v6524_v9, %v6523_v19  ;;  %vm2478_vm15 = vcmp.gt.f32.partialorder %v10804_v28, 0.0  ;;  %v6532_v19 = vadd.f32 %v6531_v11, %v6530_v62 }
 0x8b0   :  { %v2526_v21 = vmul.f32 %v6906_v5, %v9446_v0  ;;  %v6505_v0 = vmul.f32 %v9854_v56, %v2524_v27  ;;  %v10792_v27 = vld [vmem:[#allocation48_spill] sm:$0xff]  ;;  %vm6787_vm4 = vcmask 1044484  }
 0x8b1   :  { %v2535_v5 = vmul.f32 %v6915_v13, %v10792_v27  ;;  %v6550_v27 = vrot.slane %v6549_v38, 4 }
 0x8b2   :  { %v6507_v39 = vmul.f32 %v9858_v35, %v2526_v21  ;;  %v6535_v20 = vadd.f32 %v6506_v10, %v6505_v0  ;;  %v10386_v21 = vpop.permute.xlu1 %6603  ;;  %v10797_v10 = vld [vmem:[#allocation46_spill] sm:$0xff] }
 0x8b3   :  { %6638 = vperm.xlu0 %7975, %v8176_v53   ;;  %v10783_v53 = vld [vmem:[#allocation33_spill] sm:$0xff]  ;;  %v2537_v0 = vmul.f32 %v6917_v37, %v10797_v10 }
 0x8b4   :  { %vm2473_vm9 = vcmp.gt.f32.partialorder %v10783_v53, 0.0  ;;  %v10793_v53 = vld [vmem:[#allocation47_spill] sm:$0xff]  ;;  %v6536_v8 = vrot.slane %v6535_v20, 4 }
 0x8b5   :  { %v6913_v42 = vsel %vm2473_vm9, 1.0, %v10730_v22  ;;  %v2534_v18 = vmul.f32 %v6914_v51, %v10793_v53  ;;  %v6518_v13 = vmul.f32 %v10802_v47, %v2537_v0  ;;  %v6556_v53 = vadd.f32 %v6512_v6, %v6511_v32  ;;  %v10805_v0 = vld [vmem:[#allocation39_spill] sm:$0xff] }
 0x8b6   :  { %v2533_v36 = vmul.f32 %v6913_v42, %v10743_v54  ;;  %v6542_v54 = vadd.f32 %v6508_v63, %v6507_v39  ;;  %v10796_v42 = vld [vmem:[#allocation44_spill] sm:$0xff]  ;;  %v6516_v63 = vmul.f32 %v10800_v16, %v2535_v5  ;;  %v10801_v39 = vld [vmem:[#allocation57_spill] sm:$0xff]  ;;  %v6537_v29 = vadd.f32 %v6536_v8, %v6535_v20 }
 0x8b7   :  { %v2536_v44 = vmul.f32 %v6916_v12, %v10796_v42  ;;  %v6515_v14 = vmul.f32 %v10801_v39, %v2534_v18  ;;  %v10803_v12 = vld [vmem:[#allocation59_spill] sm:$0xff]  ;;  %vm2479_vm8 = vcmp.gt.f32.partialorder %v10805_v0, 0.0  ;;  %v6551_v39 = vadd.f32 %v6550_v27, %v6549_v38 }
 0x8b8   :  { %v6514_v15 = vmul.f32 %v10798_v33, %v2533_v36  ;;  %v6543_v45 = vrot.slane %v6542_v54, 4  ;;  %v6557_v30 = vrot.slane %v6556_v53, 4  ;;  %v6526_v6 = vrot.slane %v6525_v40, 1 }
 0x8b9   :  { %v6517_v37 = vmul.f32 %v10803_v12, %v2536_v44  ;;  %v6570_v58 = vadd.f32 %v6516_v63, %v6515_v14  ;;  %v6533_v63 = vrot.slane %v6532_v19, 1  ;;  %v6552_v11 = vrot.slane %v6551_v39, 2 }
 0x8ba   :  { %v6563_v36 = vadd.f32 %v6514_v15, %v6513_v59  ;;  %v6544_v16 = vadd.f32 %v6543_v45, %v6542_v54  ;;  %v6918_v54 = vsel %vm2478_vm15, 1.0, %v10730_v22  ;;  %v10405_v38 = vadd.f32 %v6526_v6, %v6525_v40 }
 0x8bb   :  { %v6577_v5 = vadd.f32 %v6518_v13, %v6517_v37  ;;  %v6571_v8 = vrot.slane %v6570_v58, 4  ;;  %v6919_v13 = vsel %vm2479_vm8, 1.0, %v10730_v22  ;;  %v10411_v12 = vadd.f32 %v6533_v63, %v6532_v19 }
 0x8bc   :  { %v6564_v44 = vrot.slane %v6563_v36, 4  ;;  %v6545_v62 = vrot.slane %v6544_v16, 2  ;;  %v2539_v28 = vmul.f32 %v6919_v13, %v10752_v48  ;;  %v2538_v22 = vmul.f32 %v6918_v54, %v10753_v2 }
 0x8bd   :  { %v6578_v15 = vrot.slane %v6577_v5, 4 }
 0x8be   :  { %v6565_v27 = vadd.f32 %v6564_v44, %v6563_v36  ;;  %v6520_v0 = vmul.f32 %v10172_v25, %v2539_v28  ;;  %v10423_v28 = vld [vmem:[%s10612_s11] ss:$0 sm:$0xff] }
 0x8c0   :  { %v6566_v44 = vrot.slane %v6565_v27, 2 }
 0x8f6   :  { %v6103_v51 = vpop.xlane.xlu1 %6102 }
 0x8f7   :  { %v6141_v42 = vmul.f32 0.0625, %v6103_v51  ;;  %v6101_v10 = vpop.xlane.xlu0 %6100  ;;  %v6538_v51 = vrot.slane %v6537_v29, 2 }
 0x8f8   :  { %v6140_v60 = vmul.f32 0.0625, %v6101_v10 }
 0x8f9   :  { %v6161_v18 = vadd.f32 1e-05, %v6141_v42  ;;  %v6539_v37 = vadd.f32 %v6538_v51, %v6537_v29  ;;  %v6553_v29 = vadd.f32 %v6552_v11, %v6551_v39  ;;  %v10806_v51 = vld [vmem:[#allocation60_spill] sm:$0xff] }
 0x8fa   :  { %v6160_v9 = vadd.f32 1e-05, %v6140_v60  ;;  %v6558_v60 = vadd.f32 %v6557_v30, %v6556_v53  ;;  %v10413_v53 = vadd.f32 %v6545_v62, %v6544_v16 }
 0x8fb   :  { %8177 = vrsqrt.f32 %v6161_v18  ;;  %v6107_v32 = vpop.xlane.xlu1 %6106  ;;  %v6572_v18 = vadd.f32 %v6571_v8, %v6570_v58 }
 0x8fc   :  { %8179 = vrsqrt.f32 %v6160_v9  ;;  %v6143_v20 = vmul.f32 0.0625, %v6107_v32  ;;  %v6105_v59 = vpop.xlane.xlu0 %6104  ;;  %v6579_v9 = vadd.f32 %v6578_v15, %v6577_v5  ;;  %v6559_v6 = vrot.slane %v6558_v60, 2 }
 0x8fd   :  { %v6142_v14 = vmul.f32 0.0625, %v6105_v59  ;;  %v6573_v15 = vrot.slane %v6572_v18, 2 }
 0x8fe   :  { %v6163_v42 = vadd.f32 1e-05, %v6143_v20  ;;  %v6519_v20 = vmul.f32 %v10806_v51, %v2538_v22  ;;  %v6580_v8 = vrot.slane %v6579_v9, 2  ;;  %v6560_v13 = vadd.f32 %v6559_v6, %v6558_v60 }
 0x8ff   :  { %v6111_v45 = vpop.xlane.xlu1 %6110  ;;  %v6162_v32 = vadd.f32 1e-05, %v6142_v14 }
 0x900   :  { %v6145_v10 = vmul.f32 0.0625, %v6111_v45  ;;  %v6109_v59 = vpop.xlane.xlu0 %6108  ;;  %8181 = vrsqrt.f32 %v6163_v42  ;;  %v6584_v14 = vadd.f32 %v6520_v0, %v6519_v20  ;;  %v6567_v42 = vadd.f32 %v6566_v44, %v6565_v27 }
 0x901   :  { %v6144_v40 = vmul.f32 0.0625, %v6109_v59  ;;  %8183 = vrsqrt.f32 %v6162_v32  ;;  %v6581_v59 = vadd.f32 %v6580_v8, %v6579_v9  ;;  %v6547_v27 = vrot.slane %v10413_v53, 1 }
 0x902   :  { %v6165_v30 = vadd.f32 1e-05, %v6145_v10  ;;  %v6540_v10 = vrot.slane %v6539_v37, 1  ;;  %v6585_v22 = vrot.slane %v6584_v14, 4  ;;  %v6561_v6 = vrot.slane %v6560_v13, 1 }
 0x903   :  { %v6119_v36 = vpop.xlane.xlu1 %6118  ;;  %v6164_v58 = vadd.f32 1e-05, %v6144_v40  ;;  %v6568_v44 = vrot.slane %v6567_v42, 1 }
 0x904   :  { %v6149_v5 = vmul.f32 0.0625, %v6119_v36  ;;  %v6117_v19 = vpop.xlane.xlu0 %6116  ;;  %8185 = vrsqrt.f32 %v6165_v30  ;;  %v6574_v30 = vadd.f32 %v6573_v15, %v6572_v18  ;;  %v6554_v36 = vrot.slane %v6553_v29, 1  ;;  %v10433_v18 = vld [vmem:[%s10613_s12] ss:$0 sm:$0xff]  ;;  %s8346_s12 = smov [#allocation10]  }
 0x905   :  { %v8178_v48 = vpop.eup %8177  ;;  %v6148_v54 = vmul.f32 0.0625, %v6117_v19  ;;  %8187 = vrsqrt.f32 %v6164_v58  ;;  %v6582_v19 = vrot.slane %v6581_v59, 1  ;;  %s6805_s0 = sshll.u32 %s8346_s12, 4  ;;  %s6806_s0 = int_to_ptr.vmem [resolvable:$true] %s6805_s0 }
 0x906   :  { %v8180_v16 = vpop.eup %8179  ;;  %v6201_v63 = vmul.f32 %v8178_v48, %v10177_v55  ;;  %v6169_v2 = vadd.f32 1e-05, %v6149_v5  ;;  %v10428_v48 = vadd.f32 %v6540_v10, %v6539_v37  ;;  %v6575_v8 = vrot.slane %v6574_v30, 1  ;;  %s8308_s19 = scalar_lea.vmem %s6806_s0, 256  ;;  %p8313_p5 = scmp.lt.s32.totalorder %s6806_s0, %s6806_s0 }
 0x907   :  { %v6200_v39 = vmul.f32 %v8180_v16, %v10180_v23  ;;  %v6115_v62 = vpop.xlane.xlu1 %6114  ;;  %v6168_v45 = vadd.f32 1e-05, %v6148_v54  ;;  %p8309_p4 = scmp.ne.s32.totalorder %s6806_s0, %s8308_s19  ;;  %p8314_p6 = scmp.lt.s32.totalorder %s8308_s19, %s8308_s19 }
 0x908   :  { %8189 = vrsqrt.f32 %v6169_v2  ;;  %v6147_v11 = vmul.f32 0.0625, %v6115_v62  ;;  %v6221_v55 = vmul.f32 %v10423_v28, %v6201_v63  ;;  %v6113_v32 = vpop.xlane.xlu0 %6112  ;;  %v10439_v62 = vadd.f32 %v6554_v36, %v6553_v29 }
 0x909   :  { %v6220_v23 = vmul.f32 %v10423_v28, %v6200_v39  ;;  %8191 = vrsqrt.f32 %v6168_v45  ;;  %v6146_v60 = vmul.f32 0.0625, %v6113_v32  ;;  %v10437_v39 = vadd.f32 %v6585_v22, %v6584_v14  ;;  %p8315_p7 = por %p8314_p6, %p8313_p5 }
 0x90a   :  { %v6167_v40 = vadd.f32 1e-05, %v6147_v11  ;;  %v6241_v9 = vadd.f32 %v10433_v18, %v6221_v55  ;;  %v8182_v15 = vpop.eup %8181  ;;  %v10442_v45 = vadd.f32 %v6547_v27, %v10413_v53  ;;  %v10444_v11 = vadd.f32 %v6561_v6, %v6560_v13 }
 0x90b   :  { %v6127_v0 = vpop.xlane.xlu1 %6126  ;;  %v6166_v58 = vadd.f32 1e-05, %v6146_v60  ;;  %v6240_v16 = vadd.f32 %v10433_v18, %v6220_v23  ;;  %v8184_v54 = vpop.eup %8183  ;;  %v6203_v14 = vmul.f32 %v8182_v15, %v10188_v26  ;;  %v10452_v29 = vadd.f32 %v6575_v8, %v6574_v30  ;;  %p8316_p8 = pnand %p8315_p7, %p8309_p4 }
 0x90c   :  { %8193 = vrsqrt.f32 %v6167_v40  ;;  %v6153_v5 = vmul.f32 0.0625, %v6127_v0  ;;  %v6125_v20 = vpop.xlane.xlu0 %6124  ;;  %v10446_v40 = vadd.f32 %v6568_v44, %v6567_v42  ;;  %v6652_v60 = vmul.f32 %v9846_v50, %v6241_v9  ;;  %v10807_v9 = vld [vmem:[#allocation42_spill] sm:$0xff] }
 0x90d   :  { %8195 = vrsqrt.f32 %v6166_v58  ;;  %v6152_v2 = vmul.f32 0.0625, %v6125_v20  ;;  %v10450_v0 = vadd.f32 %v6582_v19, %v6581_v59  ;;  %v6651_v13 = vmul.f32 %v9848_v61, %v6240_v16  ;;  %v10808_v19 = vld [vmem:[#allocation19_spill] sm:$0xff] }
 0x90e   :  { %v6173_v63 = vadd.f32 1e-05, %v6153_v5  ;;  %v8186_v10 = vpop.eup %8185  ;;  %v10457_v42 = vmul.f32 %v10170_v4, %v10405_v38  ;;  %v6587_v59 = vrot.slane %v10437_v39, 2  ;;  %v6223_v44 = vmul.f32 %v10423_v28, %v6203_v14 }
 0x90f   :  { %v6123_v37 = vpop.xlane.xlu1 %6122  ;;  %v6172_v55 = vadd.f32 1e-05, %v6152_v2  ;;  %v8188_v23 = vpop.eup %8187  ;;  %v6205_v6 = vmul.f32 %v8186_v10, %v10198_v34  ;;  %v6202_v20 = vmul.f32 %v8184_v54, %v10807_v9 }
 0x910   :  { %8197 = vrsqrt.f32 %v6173_v63  ;;  %v6151_v32 = vmul.f32 0.0625, %v6123_v37  ;;  %v6121_v22 = vpop.xlane.xlu0 %6120  ;;  %v6204_v30 = vmul.f32 %v8188_v23, %v10204_v31  ;;  %v10809_v37 = vld [vmem:[#allocation45_spill] sm:$0xff] }
 0x911   :  { %8199 = vrsqrt.f32 %v6172_v55  ;;  %v6150_v27 = vmul.f32 0.0625, %v6121_v22  ;;  %v6225_v31 = vmul.f32 %v10423_v28, %v6205_v6 }
 0x912   :  { %v8190_v53 = vpop.eup %8189  ;;  %v6171_v36 = vadd.f32 1e-05, %v6151_v32  ;;  %v6224_v23 = vmul.f32 %v10423_v28, %v6204_v30 }
 0x913   :  { %v6209_v50 = vmul.f32 %v8190_v53, %v10210_v3  ;;  %v6135_v26 = vpop.xlane.xlu1 %6134  ;;  %v8192_v58 = vpop.eup %8191  ;;  %v6170_v5 = vadd.f32 1e-05, %v6150_v27  ;;  %v10467_v3 = vadd.f32 %v6652_v60, %v6651_v13  ;;  %v10810_v53 = vld [vmem:[#allocation43_spill] sm:$0xff] }
 0x914   :  { %8201 = vrsqrt.f32 %v6171_v36  ;;  %v6157_v61 = vmul.f32 0.0625, %v6135_v26  ;;  %v6208_v8 = vmul.f32 %v8192_v58, %v10808_v19  ;;  %v6133_v34 = vpop.xlane.xlu0 %6132  ;;  %v6222_v26 = vmul.f32 %v10423_v28, %v6202_v20 }
 0x915   :  { %v6229_v38 = vmul.f32 %v10423_v28, %v6209_v50  ;;  %8203 = vrsqrt.f32 %v6170_v5  ;;  %v6156_v63 = vmul.f32 0.0625, %v6133_v34  ;;  %v6245_v34 = vadd.f32 %v10433_v18, %v6225_v31 }
 0x916   :  { %v8194_v15 = vpop.eup %8193  ;;  %v6177_v16 = vadd.f32 1e-05, %v6157_v61  ;;  %v6228_v2 = vmul.f32 %v10423_v28, %v6208_v8  ;;  %v10811_v61 = vld [vmem:[#allocation50_spill] sm:$0xff]  ;;  %v6672_v31 = vrot.slane %v10467_v3, 4 }
 0x917   :  { %v6207_v10 = vmul.f32 %v8194_v15, %v10809_v37  ;;  %v6131_v55 = vpop.xlane.xlu1 %6130  ;;  %v6249_v54 = vadd.f32 %v10433_v18, %v6229_v38  ;;  %v8196_v32 = vpop.eup %8195  ;;  %v6176_v14 = vadd.f32 1e-05, %v6156_v63 }
 0x918   :  { %8205 = vrsqrt.f32 %v6177_v16  ;;  %v6155_v22 = vmul.f32 0.0625, %v6131_v55  ;;  %v6206_v13 = vmul.f32 %v8196_v32, %v10810_v53  ;;  %v6129_v36 = vpop.xlane.xlu0 %6128  ;;  %v6248_v6 = vadd.f32 %v10433_v18, %v6228_v2  ;;  %v10812_v16 = vld [vmem:[#allocation49_spill] sm:$0xff] }
 0x919   :  { %v6227_v60 = vmul.f32 %v10423_v28, %v6207_v10  ;;  %v6660_v27 = vmul.f32 %v10789_v41, %v6249_v54  ;;  %8207 = vrsqrt.f32 %v6176_v14  ;;  %v6154_v5 = vmul.f32 0.0625, %v6129_v36 }
 0x91a   :  { %v8198_v50 = vpop.eup %8197  ;;  %v6175_v58 = vadd.f32 1e-05, %v6155_v22  ;;  %v6226_v30 = vmul.f32 %v10423_v28, %v6206_v13  ;;  %v6659_v38 = vmul.f32 %v10790_v1, %v6248_v6  ;;  %v6244_v41 = vadd.f32 %v10433_v18, %v6224_v23 }
 0x91b   :  { %v6213_v9 = vmul.f32 %v8198_v50, %v10811_v61  ;;  %v6247_v19 = vadd.f32 %v10433_v18, %v6227_v60  ;;  %v8200_v8 = vpop.eup %8199  ;;  %v6174_v15 = vadd.f32 1e-05, %v6154_v5  ;;  %v6243_v55 = vadd.f32 %v10433_v18, %v6223_v44 }
 0x91c   :  { %8209 = vrsqrt.f32 %v6175_v58  ;;  %v6212_v63 = vmul.f32 %v8200_v8, %v10812_v16  ;;  %v6699_v2 = vadd.f32 %v6660_v27, %v6659_v38  ;;  %v6246_v37 = vadd.f32 %v10433_v18, %v6226_v30 }
 0x91d   :  { %v6233_v20 = vmul.f32 %v10423_v28, %v6213_v9  ;;  %8211 = vrsqrt.f32 %v6174_v15  ;;  %v6658_v1 = vmul.f32 %v9860_v49, %v6247_v19  ;;  %v6588_v54 = vadd.f32 %v6587_v59, %v10437_v39  ;;  %v6139_v14 = vpop.xlane.xlu1 %6138  ;;  %v10813_v59 = vld [vmem:[#allocation25_spill] sm:$0xff]  ;;  %v10814_v9 = vld [vmem:[#allocation30_spill] sm:$0xff] }
 0x91e   :  { %v8202_v10 = vpop.eup %8201  ;;  %v6242_v32 = vadd.f32 %v10433_v18, %v6222_v26  ;;  %v6232_v23 = vmul.f32 %v10423_v28, %v6212_v63  ;;  %v6656_v53 = vmul.f32 %v9856_v52, %v6245_v34  ;;  %v6159_v44 = vmul.f32 0.0625, %v6139_v14  ;;  %v6137_v36 = vpop.xlane.xlu0 %6136 }
 0x91f   :  { %v6253_v22 = vadd.f32 %v10433_v18, %v6233_v20  ;;  %v8204_v60 = vpop.eup %8203  ;;  %v6211_v13 = vmul.f32 %v8202_v10, %v10256_v57  ;;  %v6657_v49 = vmul.f32 %v9858_v35, %v6246_v37  ;;  %v6655_v39 = vmul.f32 %v9854_v56, %v6244_v41 }
 0x920   :  { %v6210_v27 = vmul.f32 %v8204_v60, %v10813_v59  ;;  %v6158_v6 = vmul.f32 0.0625, %v6137_v36  ;;  %v6700_v50 = vrot.slane %v6699_v2, 4  ;;  %v6179_v58 = vadd.f32 1e-05, %v6159_v44  ;;  %v10816_v60 = vld [vmem:[#allocation28_spill] sm:$0xff] }
 0x921   :  { %v6664_v5 = vmul.f32 %v10798_v33, %v6253_v22  ;;  %v6252_v30 = vadd.f32 %v10433_v18, %v6232_v23  ;;  %v6692_v61 = vadd.f32 %v6658_v1, %v6657_v49  ;;  %v6654_v52 = vmul.f32 %v9852_v46, %v6243_v55  ;;  %v10815_v33 = vld [vmem:[#allocation20_spill] sm:$0xff] }
 0x922   :  { %v8206_v26 = vpop.eup %8205  ;;  %v6653_v57 = vmul.f32 %v9850_v7, %v6242_v32  ;;  %v6178_v35 = vadd.f32 1e-05, %v6158_v6  ;;  %v6231_v56 = vmul.f32 %v10423_v28, %v6211_v13  ;;  %8213 = vrsqrt.f32 %v6179_v58 }
 0x923   :  { %v6217_v38 = vmul.f32 %v8206_v26, %v10814_v9  ;;  %v8208_v19 = vpop.eup %8207  ;;  %v6663_v8 = vmul.f32 %v10799_v43, %v6252_v30  ;;  %v6693_v34 = vrot.slane %v6692_v61, 4  ;;  %v6230_v41 = vmul.f32 %v10423_v28, %v6210_v27  ;;  %v10817_v26 = vld [vmem:[#allocation59_spill] sm:$0xff]  ;;  %v10819_v9 = vld [vmem:[#allocation54_spill] sm:$0xff] }
 0x924   :  { %v6216_v15 = vmul.f32 %v8208_v19, %v10815_v33  ;;  %8215 = vrsqrt.f32 %v6178_v35  ;;  %v10511_v7 = vmul.f32 2.0, %v10457_v42  ;;  %v6685_v16 = vadd.f32 %v6656_v53, %v6655_v39  ;;  %v10526_v39 = vpop.permute.xlu1 %6613 }
 0x925   :  { %v6237_v20 = vmul.f32 %v10423_v28, %v6217_v38  ;;  %v6701_v63 = vadd.f32 %v6700_v50, %v6699_v2  ;;  %v6713_v37 = vadd.f32 %v6664_v5, %v6663_v8  ;;  %v6589_v43 = vrot.slane %v6588_v54, 1 }
 0x926   :  { %v8210_v46 = vpop.eup %8209  ;;  %v6236_v55 = vmul.f32 %v10423_v28, %v6216_v15  ;;  %v6673_v1 = vadd.f32 %v6672_v31, %v10467_v3  ;;  %v6643_v23 = vmul.f32 %v10386_v21, %v10428_v48  ;;  %v6642_v14 = vmul.f32 %v10392_v17, %v10411_v12 }
 0x927   :  { %v6257_v10 = vadd.f32 %v10433_v18, %v6237_v20  ;;  %v8212_v32 = vpop.eup %8211  ;;  %v6678_v22 = vadd.f32 %v6654_v52, %v6653_v57  ;;  %v6694_v42 = vadd.f32 %v6693_v34, %v6692_v61  ;;  %v6215_v53 = vmul.f32 %v8210_v46, %v10816_v60  ;;  %v10537_v61 = vpop.permute.xlu0 %6608  ;;  %v10818_v52 = vld [vmem:[#allocation53_spill] sm:$0xff]  ;;  %v10820_v34 = vld [vmem:[#allocation32_spill] sm:$0xff]  ;;  %v10821_v46 = vld [vmem:[#allocation62_spill] sm:$0xff] }
 0x928   :  { %v6214_v2 = vmul.f32 %v8212_v32, %v10295_v24  ;;  %v6250_v13 = vadd.f32 %v10433_v18, %v6230_v41  ;;  %v6251_v44 = vadd.f32 %v10433_v18, %v6231_v56  ;;  %v6686_v36 = vrot.slane %v6685_v16, 4 }
 0x929   :  { %v6702_v49 = vrot.slane %v6701_v63, 2  ;;  %v6714_v3 = vrot.slane %v6713_v37, 4  ;;  %v6256_v31 = vadd.f32 %v10433_v18, %v6236_v55  ;;  %v6668_v12 = vmul.f32 %v10802_v47, %v6257_v10 }
 0x92a   :  { %v6234_v48 = vmul.f32 %v10423_v28, %v6214_v2  ;;  %v10529_v59 = vadd.f32 %v6589_v43, %v6588_v54  ;;  %v6674_v27 = vrot.slane %v6673_v1, 2  ;;  %v10531_v6 = vmul.f32 2.0, %v6643_v23  ;;  %v10546_v23 = vpop.permute.xlu1 %6623 }
 0x92b   :  { %v10533_v24 = vmul.f32 2.0, %v6642_v14  ;;  %v6695_v50 = vrot.slane %v6694_v42, 2  ;;  %v6667_v58 = vmul.f32 %v10817_v26, %v6256_v31  ;;  %v6679_v5 = vrot.slane %v6678_v22, 4 }
 0x92c   :  { %v6235_v30 = vmul.f32 %v10423_v28, %v6215_v53  ;;  %v6661_v57 = vmul.f32 %v10818_v52, %v6250_v13  ;;  %v6662_v38 = vmul.f32 %v10819_v9, %v6251_v44  ;;  %v8214_v47 = vpop.eup %8213  ;;  %v6687_v54 = vadd.f32 %v6686_v36, %v6685_v16  ;;  %v6619_v36 = vpop.permute.xlu0 %6618 }
 0x92d   :  { %v6703_v35 = vadd.f32 %v6702_v49, %v6701_v63  ;;  %v6715_v19 = vadd.f32 %v6714_v3, %v6713_v37  ;;  %v6727_v56 = vadd.f32 %v6668_v12, %v6667_v58  ;;  %v6219_v41 = vmul.f32 %v8214_v47, %v10820_v34  ;;  %v10822_v37 = vld [vmem:[#allocation57_spill] sm:$0xff]  ;;  %v10823_v49 = vld [vmem:[#allocation58_spill] sm:$0xff] }
 0x92e   :  { %v8216_v8 = vpop.eup %8215  ;;  %v6706_v33 = vadd.f32 %v6662_v38, %v6661_v57  ;;  %v6254_v15 = vadd.f32 %v10433_v18, %v6234_v48  ;;  %v6675_v20 = vadd.f32 %v6674_v27, %v6673_v1  ;;  %v6645_v55 = vmul.f32 %v10526_v39, %v10439_v62 }
 0x92f   :  { %v6218_v10 = vmul.f32 %v8216_v8, %v10821_v46  ;;  %v6696_v43 = vadd.f32 %v6695_v50, %v6694_v42  ;;  %v6728_v32 = vrot.slane %v6727_v56, 4  ;;  %v6255_v63 = vadd.f32 %v10433_v18, %v6235_v30 }
 0x930   :  { %v6707_v16 = vrot.slane %v6706_v33, 4  ;;  %v6665_v14 = vmul.f32 %v10822_v37, %v6254_v15  ;;  %v6680_v60 = vadd.f32 %v6679_v5, %v6678_v22  ;;  %v6704_v53 = vrot.slane %v6703_v35, 1 }
 0x931   :  { %v6716_v2 = vrot.slane %v6715_v19, 2  ;;  %v6729_v13 = vadd.f32 %v6728_v32, %v6727_v56  ;;  %v6238_v1 = vmul.f32 %v10423_v28, %v6218_v10  ;;  %v6666_v3 = vmul.f32 %v10823_v49, %v6255_v63  ;;  %v6634_v32 = vpop.permute.xlu1 %6633 }
 0x932   :  { %v6708_v44 = vadd.f32 %v6707_v16, %v6706_v33  ;;  %v6239_v62 = vmul.f32 %v10423_v28, %v6219_v41  ;;  %v6676_v42 = vrot.slane %v6675_v20, 1  ;;  %v10553_v31 = vmul.f32 2.0, %v6645_v55 }
 0x933   :  { %v10557_v48 = vmul.f32 %v10546_v23, %v10446_v40  ;;  %v6697_v12 = vrot.slane %v6696_v43, 1  ;;  %v6258_v22 = vadd.f32 %v10433_v18, %v6238_v1  ;;  %v6730_v27 = vrot.slane %v6729_v13, 2 }
 0x934   :  { %v6709_v50 = vrot.slane %v6708_v44, 2  ;;  %v6720_v26 = vadd.f32 %v6666_v3, %v6665_v14  ;;  %v6259_v58 = vadd.f32 %v10433_v18, %v6239_v62  ;;  %v6705_v5 = vadd.f32 %v6704_v53, %v6703_v35  ;;  %v6629_v35 = vpop.permute.xlu0 %6628 }
 0x935   :  { %v6717_v30 = vadd.f32 %v6716_v2, %v6715_v19  ;;  %v6669_v52 = vmul.f32 %v10806_v51, %v6258_v22  ;;  %v6681_v28 = vrot.slane %v6680_v60, 2  ;;  %v6644_v57 = vmul.f32 %v10537_v61, %v10442_v45 }
 0x936   :  { %v6710_v9 = vadd.f32 %v6709_v50, %v6708_v44  ;;  %v6721_v38 = vrot.slane %v6720_v26, 4  ;;  %v6670_v40 = vmul.f32 %v10172_v25, %v6259_v58  ;;  %v6698_v47 = vadd.f32 %v6697_v12, %v6696_v43 }
 0x937   :  { %v6677_v56 = vadd.f32 %v6676_v42, %v6675_v20  ;;  %v6682_v8 = vadd.f32 %v6681_v28, %v6680_v60  ;;  %v6688_v34 = vrot.slane %v6687_v54, 2  ;;  %v6731_v41 = vadd.f32 %v6730_v27, %v6729_v13 }
 0x938   :  { %v6711_v33 = vrot.slane %v6710_v9, 1  ;;  %v6722_v18 = vadd.f32 %v6721_v38, %v6720_v26  ;;  %v6734_v19 = vadd.f32 %v6670_v40, %v6669_v52  ;;  %v6745_v51 = vmul.f32 %v6705_v5, %v10526_v39 }
 0x939   :  { %v6718_v15 = vrot.slane %v6717_v30, 1  ;;  %v6683_v46 = vrot.slane %v6682_v8, 1  ;;  %v6689_v45 = vadd.f32 %v6688_v34, %v6687_v54  ;;  %v6754_v10 = vmul.f32 2.0, %v6644_v57 }
 0x93a   :  { %v6712_v55 = vadd.f32 %v6711_v33, %v6710_v9  ;;  %v6723_v25 = vrot.slane %v6722_v18, 2  ;;  %v6735_v43 = vrot.slane %v6734_v19, 4  ;;  %v6744_v20 = vmul.f32 %v6698_v47, %v10537_v61 }
 0x93b   :  { %v6646_v16 = vmul.f32 %v6619_v36, %v10444_v11  ;;  %v6684_v63 = vadd.f32 %v6683_v46, %v6682_v8  ;;  %v6690_v37 = vrot.slane %v6689_v45, 1  ;;  %v6732_v14 = vrot.slane %v6731_v41, 1  ;;  %v6639_v11 = vpop.permute.xlu0 %6638 }
 0x93c   :  { %v6724_v60 = vadd.f32 %v6723_v25, %v6722_v18  ;;  %v6736_v39 = vadd.f32 %v6735_v43, %v6734_v19  ;;  %v6741_v53 = vmul.f32 %v6677_v56, %v10170_v4  ;;  %v6719_v54 = vadd.f32 %v6718_v15, %v6717_v30 }
 0x93d   :  { %v6648_v2 = vmul.f32 %v6629_v35, %v10452_v29  ;;  %v6691_v13 = vadd.f32 %v6690_v37, %v6689_v45  ;;  %v6742_v1 = vmul.f32 %v6684_v63, %v10392_v17  ;;  %v6649_v44 = vmul.f32 %v6634_v32, %v10450_v0 }
 0x93e   :  { %v6746_v61 = vmul.f32 %v6712_v55, %v6619_v36  ;;  %v6725_v49 = vrot.slane %v6724_v60, 1  ;;  %v6737_v3 = vrot.slane %v6736_v39, 2  ;;  %v6764_v62 = vadd.f32 %v6754_v10, %v6744_v20 }
 0x93f   :  { %v6756_v42 = vmul.f32 2.0, %v6646_v16  ;;  %v6743_v12 = vmul.f32 %v6691_v13, %v10386_v21  ;;  %v6762_v22 = vadd.f32 %v10533_v24, %v6742_v1  ;;  %v6733_v27 = vadd.f32 %v6732_v14, %v6731_v41 }
 0x940   :  { %v6726_v4 = vadd.f32 %v6725_v49, %v6724_v60  ;;  %v6738_v50 = vadd.f32 %v6737_v3, %v6736_v39  ;;  %v6761_v29 = vadd.f32 %v10511_v7, %v6741_v53  ;;  %v6747_v26 = vmul.f32 %v6719_v54, %v10546_v23 }
 0x941   :  { %v6758_v17 = vmul.f32 2.0, %v6648_v2  ;;  %v6650_v0 = vmul.f32 %v6639_v11, %v10529_v59  ;;  %v6763_v36 = vadd.f32 %v10531_v6, %v6743_v12  ;;  %v6766_v58 = vadd.f32 %v6756_v42, %v6746_v61 }
 0x942   :  { %v6748_v5 = vmul.f32 %v6726_v4, %v6629_v35  ;;  %v6739_v30 = vrot.slane %v6738_v50, 1  ;;  %v6782_v52 = vsel %vm6781_vm2, %v6762_v22, %v6761_v29  ;;  %v6765_v21 = vadd.f32 %v10553_v31, %v6745_v51 }
 0x943   :  { %v6757_v24 = vmul.f32 2.0, %v10557_v48  ;;  %v6784_v28 = vsel %vm6783_vm0, %v6763_v36, %v6782_v52  ;;  %v6749_v7 = vmul.f32 %v6733_v27, %v6634_v32  ;;  %v6759_v38 = vmul.f32 2.0, %v6649_v44 }
 0x944   :  { %v6768_v57 = vadd.f32 %v6758_v17, %v6748_v5  ;;  %v6740_v23 = vadd.f32 %v6739_v30, %v6738_v50  ;;  %v6786_v9 = vsel %vm6785_vm3, %v6764_v62, %v6784_v28  ;;  %v6760_v47 = vmul.f32 2.0, %v6650_v0 }
 0x945   :  { %v6767_v59 = vadd.f32 %v6757_v24, %v6747_v26  ;;  %v6788_v6 = vsel %vm6787_vm4, %v6765_v21, %v6786_v9  ;;  %v6769_v48 = vadd.f32 %v6759_v38, %v6749_v7 }
 0x946   :  { %v6750_v40 = vmul.f32 %v6740_v23, %v6639_v11  ;;  %v6790_v56 = vsel %vm6789_vm5, %v6766_v58, %v6788_v6 }
 0x947   :  { %v6792_v31 = vsel %vm6791_vm1, %v6767_v59, %v6790_v56 }
 0x948   :  { %v6770_v8 = vadd.f32 %v6760_v47, %v6750_v40  ;;  %v6794_v34 = vsel %vm6793_vm6, %v6768_v57, %v6792_v31 }
 0x949   :  { %6798 = vst [vmem:[#allocation10] sm:$0xff] %v6794_v34 }
 0x94a   :  { %v6795_v41 = vsel %vm6781_vm2, %v6770_v8, %v6769_v48 }
 0x94b   :  { %6799 = vst [vmem:[#allocation10 + $0x8] sm:$0x3] %v6795_v41 }
 0x94c   :  { %8319 = shalt.err (!%p8316_p8)
}
 0x94d   :  { %s8320_s25 = scalar_lea.hbm %s10614_s13, 256 }
 0x94e   :  { %p8321_p9 = scmp.ne.s32.totalorder %s10614_s13, %s8320_s25  ;;  %p8324_p10 = scmp.lt.u32.totalorder %s8320_s25, %s10614_s13 }
 0x950   :  { %p8326_p11 = pnand %p8324_p10, %p8321_p9 }
 0x952   :  { %8329 = shalt.err (!%p8326_p11)
}
 0x953   :  { %6811 = dma.vmem_to_hbm [thread:$0]  %s6806_s0, 256, %s10614_s13, [#allocation4], %s8340_s20, %s8340_s20, %s8341_s21  }
 0x954   :  { %8336 = dma.done.wait [#allocation4], 256  }
 0x955   :  { %8337 = vsyncadd [#allocation4], 4294967040 }
 0x956   :  { %6815 = vsyncpa [#allocation3], 1 }
 0x957   :  { %6816 = vsyncpa [#allocation6], 1 }
 0x958   :  { %6817 = vsyncpa [#allocation9], 1 }
 0x959   :  { %6818 = vsyncpa [#allocation4], 1 }

</bundles_post_ra>
